<compile_context>
chip_gen: v7x
topology: tpu7x:2x2x1
jax: 0.10.0
libtpu: 0.0.40
codegen_flags: <defaults>
</compile_context>

<pallas_src>
import math
from functools import partial

import jax
import jax.numpy as jnp
from jax import lax
from jax.experimental import pallas as pl
from jax.experimental.pallas import tpu as pltpu

# ---- constants from the PyTorch module's __init__ ----
SAMPLE_RATE = 2000
LOWPASS_HZ = 400
Q_FACTOR = 0.707            # torchaudio lowpass_biquad default Q
PREEMPH = 0.97              # torchaudio preemphasis default coeff
N_FFT = 512
HOP = 128
N_MELS = 64
N_MFCC = 13
TOP_DB = 80.0               # torchaudio MFCC default (log_mels=False -> AmplitudeToDB)
AMIN = 1e-10
N_FREQS = N_FFT // 2 + 1    # 257
NF = 256                    # freq bins 1..256 (DC dropped; its mel weight is exactly 0)
FEAT = 3 * N_MFCC           # 39
FEAT_PAD = 128              # lane-dense output feature dim (wrapper slices [:39])
CHUNKS_PER_FRAME = N_FFT // HOP  # 4 (frames are HOP-chunk aligned)
TARGET_M = 512              # MXU rows per grid step (perf review: 256-512)


def _round_up(n, m):
    return -(-n // m) * m


# ---------------- host-side constant builders ----------------
def _hann(n):
    i = jnp.arange(n, dtype=jnp.float32)
    return 0.5 * (1.0 - jnp.cos(2.0 * jnp.pi * i / n))       # periodic hann (torch default)


def _dft_matrix(mxu_dtype):
    """Windowed DFT as a single (N_FFT, 2*NF) matrix [re | im] over bins 1..256."""
    n = jnp.arange(N_FFT, dtype=jnp.float32)[:, None]
    k = jnp.arange(1, NF + 1, dtype=jnp.float32)[None, :]    # DC bin dropped (mel weight 0)
    ang = 2.0 * jnp.pi * n * k / N_FFT
    win = _hann(N_FFT)[:, None]
    re = win * jnp.cos(ang)
    im = win * (-jnp.sin(ang))
    return jnp.concatenate([re, im], axis=1).astype(mxu_dtype)   # (512, 512)


def _mel_fbank(mxu_dtype):
    # torchaudio defaults: f_min=0, f_max=sr/2, mel_scale='htk', norm=None
    def hz_to_mel(f):
        return 2595.0 * jnp.log10(1.0 + f / 700.0)

    def mel_to_hz(m):
        return 700.0 * (10.0 ** (m / 2595.0) - 1.0)

    all_freqs = jnp.linspace(0.0, SAMPLE_RATE / 2.0, N_FREQS)
    m_pts = jnp.linspace(hz_to_mel(0.0), hz_to_mel(SAMPLE_RATE / 2.0), N_MELS + 2)
    f_pts = mel_to_hz(m_pts)
    f_diff = f_pts[1:] - f_pts[:-1]
    slopes = f_pts[None, :] - all_freqs[:, None]
    down = -slopes[:, :-2] / f_diff[:-1]
    up = slopes[:, 2:] / f_diff[1:]
    fb = jnp.maximum(0.0, jnp.minimum(down, up))             # (257, 64)
    fb = fb[1:N_FREQS]                                       # drop DC bin (exactly 0) -> (256, 64)
    return fb.astype(mxu_dtype)


def _dct_matrix(dtype):
    # torchaudio create_dct(norm='ortho')
    n = jnp.arange(N_MELS, dtype=jnp.float32)
    k = jnp.arange(N_MFCC, dtype=jnp.float32)[:, None]
    dct = jnp.cos(jnp.pi / N_MELS * (n + 0.5) * k)           # (n_mfcc, n_mels)
    dct = dct.at[0].multiply(1.0 / math.sqrt(2.0))
    dct = dct * math.sqrt(2.0 / N_MELS)
    return dct.T.astype(dtype)                               # (N_MELS, N_MFCC)


# ---------------- lowpass biquad: exact chunked-IIR matrices ----------------
def _biquad_coeffs():
    w0 = 2.0 * math.pi * LOWPASS_HZ / SAMPLE_RATE
    alpha = math.sin(w0) / (2.0 * Q_FACTOR)
    b0 = (1.0 - math.cos(w0)) / 2.0
    b1 = 1.0 - math.cos(w0)
    b2 = b0
    a0 = 1.0 + alpha
    a1 = -2.0 * math.cos(w0)
    a2 = 1.0 - alpha
    return b0 / a0, b1 / a0, b2 / a0, a1 / a0, a2 / a0


def _biquad_chunk_matrices():
    """M1[k,m]=h[m-k] (zero-state in-chunk response), M2 = response to the
    4-dim boundary state [x[-1], x[-2], y[-1], y[-2]] (padded to 8 rows)."""
    b0, b1, b2, a1, a2 = _biquad_coeffs()
    H = HOP
    g = [0.0] * H                               # AR impulse response
    for n in range(H):
        v = 1.0 if n == 0 else 0.0
        if n >= 1:
            v -= a1 * g[n - 1]
        if n >= 2:
            v -= a2 * g[n - 2]
        g[n] = v

    def gi(n):
        return g[n] if n >= 0 else 0.0

    h = [b0 * gi(n) + b1 * gi(n - 1) + b2 * gi(n - 2) for n in range(H)]
    m1 = [[h[m - k] if m >= k else 0.0 for m in range(H)] for k in range(H)]
    r_x1 = [b1 * gi(n) + b2 * gi(n - 1) for n in range(H)]
    r_x2 = [b2 * gi(n) for n in range(H)]
    r_y1 = [-a1 * gi(n) - a2 * gi(n - 1) for n in range(H)]
    r_y2 = [-a2 * gi(n) for n in range(H)]
    m2 = [r_x1, r_x2, r_y1, r_y2] + [[0.0] * H for _ in range(4)]   # (8, H)
    return jnp.array(m1, dtype=jnp.float32), jnp.array(m2, dtype=jnp.float32)


# TODO(synk): the chunk-to-chunk boundary-state recursion of the IIR is inherently
# time-serial over a 2-dim state; it has no efficient Pallas mapping, so it stays
# as a tiny length-ncp lax.scan in plain JAX (everything heavy is in the kernel).
def _biquad_boundary_states(chunks, m1, m2):
    """chunks: (R, ncp, HOP) raw waveform -> S: (R, ncp, 8) per-chunk boundary state
    [x[jH-1], x[jH-2], y[jH-1], y[jH-2], 0, 0, 0, 0] (zeros for chunk 0)."""
    R, ncp, H = chunks.shape
    xl = chunks[:, :, H - 1]
    xl2 = chunks[:, :, H - 2]
    pxl = jnp.pad(xl, ((0, 0), (1, 0)))[:, :ncp]              # previous-chunk x tails
    pxl2 = jnp.pad(xl2, ((0, 0), (1, 0)))[:, :ncp]
    y0l = jnp.einsum('rjh,h->rj', chunks, m1[:, H - 1])        # zero-state y tails per chunk
    y0l2 = jnp.einsum('rjh,h->rj', chunks, m1[:, H - 2])
    m2c1 = m2[:4, H - 1]
    m2c2 = m2[:4, H - 2]

    def step(carry, inp):
        yl, yl2 = carry                                        # y tails entering this chunk
        pxl_j, pxl2_j, y0l_j, y0l2_j = inp
        s = jnp.stack([pxl_j, pxl2_j, yl, yl2], axis=-1)       # (R, 4)
        new_yl = y0l_j + s @ m2c1                              # this chunk's (unclamped) y tails
        new_yl2 = y0l2_j + s @ m2c2
        return (new_yl, new_yl2), s

    zeros = jnp.zeros((R,), jnp.float32)
    _, S = lax.scan(step, (zeros, zeros), (pxl.T, pxl2.T, y0l.T, y0l2.T))   # (ncp, R, 4)
    S = jnp.transpose(S, (1, 0, 2))                            # (R, ncp, 4)
    return jnp.pad(S, ((0, 0), (0, 0), (0, 4)))                # (R, ncp, 8)


# ---------------- Pallas kernel: biquad + preemph + DFT + mel + dB + DCT + deltas ----
def _mfcc_kernel(ch_ref, s_ref, m1_ref, m2_ref, w_ref, mel_ref, dct_ref, o_ref,
                 *, n_frames, channels):
    # ch_ref : (G, NCP, HOP)   raw HOP-chunked waveform for G = gb*channels rows
    # s_ref  : (G, NCP, 8)     precomputed per-chunk IIR boundary states
    # m1_ref : (HOP, HOP)      in-chunk biquad impulse-response matrix (f32)
    # m2_ref : (8, HOP)        boundary-state response rows (f32)
    # w_ref  : (N_FFT, 2*NF)   windowed DFT [re | im], DC bin dropped
    # mel_ref: (NF, N_MELS)
    # dct_ref: (N_MELS, N_MFCC)
    # o_ref  : (G, FP, FEAT_PAD)  [mfcc | d1 | d2 | 0-pad] per frame, lane-dense
    g, ncp, hop = ch_ref.shape
    fp = o_ref.shape[1]                      # frames padded to a multiple of 8
    gb = g // channels                       # batch elements in this grid step

    x = ch_ref[...]                                           # (G, NCP, HOP) f32

    # --- lowpass biquad: exact chunked IIR (zero-state matmul + boundary matmul) ---
    y0 = jnp.dot(x.reshape(g * ncp, hop), m1_ref[...],
                 preferred_element_type=jnp.float32)          # (G*NCP, HOP)
    bound = jnp.dot(s_ref[...].reshape(g * ncp, 8), m2_ref[...],
                    preferred_element_type=jnp.float32)       # (G*NCP, HOP)
    y = (y0 + bound).reshape(g, ncp, hop)
    y = jnp.clip(y, -1.0, 1.0)                                # torchaudio lfilter(clamp=True)

    # --- preemphasis: y[n] = y[n] - 0.97*y[n-1], y[-1] = 0 ---
    lastlane = y[:, :, hop - 1:hop]                           # (G, NCP, 1)
    lastlane_prev = jnp.concatenate(
        [jnp.zeros((g, 1, 1), jnp.float32), lastlane[:, :ncp - 1]], axis=1)
    prev = jnp.concatenate([lastlane_prev, y[:, :, :hop - 1]], axis=2)
    y = y - PREEMPH * prev                                    # (G, NCP, HOP)

    # --- framing: frame f = chunks [f, f+1, f+2, f+3]  (N_FFT = 4*HOP) ---
    # TODO(synk): the s=1..3 slices are sublane-unaligned; could be replaced with
    # pltpu.roll (XLU slot) if profiling shows this copy filler matters.
    framed = jnp.concatenate(
        [y[:, s:s + fp] for s in range(CHUNKS_PER_FRAME)], axis=2)   # (G, FP, N_FFT)
    frames = framed.reshape(g * fp, N_FFT)

    # --- windowed DFT (one fused MXU matmul, bf16 weights by default) + power ---
    spec = jnp.dot(frames.astype(w_ref.dtype), w_ref[...],
                   preferred_element_type=jnp.float32)        # (G*FP, 2*NF)
    re = spec[:, :NF]
    im = spec[:, NF:]
    power = re * re + im * im                                 # (G*FP, NF)

    # --- mel filterbank ---
    mel = jnp.dot(power.astype(mel_ref.dtype), mel_ref[...],
                  preferred_element_type=jnp.float32)         # (G*FP, N_MELS)

    # --- AmplitudeToDB('power', top_db=80); max per batch element over (C, mels, frames)
    mel_b = mel.reshape(gb, channels * fp, N_MELS)
    db = 10.0 * jnp.log10(jnp.maximum(mel_b, AMIN))
    row = lax.broadcasted_iota(jnp.int32, (1, channels * fp, 1), 1)
    is_real = (row % fp) < n_frames                           # mask zero-padded frames
    db_for_max = jnp.where(is_real, db, -1e30)
    mx = jnp.max(jnp.max(db_for_max, axis=2, keepdims=True), axis=1, keepdims=True)
    db = jnp.maximum(db, mx - TOP_DB)

    # --- DCT-II (ortho) -> MFCC ---
    mfcc = jnp.dot(db.reshape(g * fp, N_MELS), dct_ref[...],
                   preferred_element_type=jnp.float32)        # (G*FP, N_MFCC)
    mfcc = mfcc.reshape(g, fp, N_MFCC)

    # --- compute_deltas (win=5, replicate) x2 via shifted slices along time ---
    fidx = lax.broadcasted_iota(jnp.int32, (1, fp, 1), 1)

    def fix_tail(v):  # padded frames := replicate of the last real frame
        return jnp.where(fidx >= n_frames, v[:, n_frames - 1:n_frames], v)

    def deltas(v):    # (-2*x[t-2] - x[t-1] + x[t+1] + 2*x[t+2]) / 10, replicate bounds
        first = v[:, :1]
        last = v[:, fp - 1:fp]
        xm1 = jnp.concatenate([first, v[:, :fp - 1]], axis=1)
        xm2 = jnp.concatenate([first, first, v[:, :fp - 2]], axis=1)
        xp1 = jnp.concatenate([v[:, 1:], last], axis=1)
        xp2 = jnp.concatenate([v[:, 2:], last, last], axis=1)
        return (2.0 * xp2 + xp1 - xm1 - 2.0 * xm2) * 0.1

    m0 = fix_tail(mfcc)
    d1 = fix_tail(deltas(m0))
    d2 = deltas(d1)

    pad = jnp.zeros((g, fp, FEAT_PAD - FEAT), jnp.float32)
    o_ref[...] = jnp.concatenate([m0, d1, d2, pad], axis=2)   # single lane-dense store


# ---------------- wrapper ----------------
def _num_tensorcores():
    try:
        kind = jax.devices()[0].device_kind.lower().replace(" ", "")
    except Exception:
        return 1
    return 2 if any(t in kind for t in ("v7", "v5p", "v4", "v3", "v2")) else 1


def _pick_group(B, C, fp, ncp):
    """Batch elements per grid step: target ~TARGET_M MXU rows, VMEM-capped;
    force >= 2 balanced steps only on multi-TensorCore chips."""
    rows_per_b = C * fp
    gb = max(1, TARGET_M // rows_per_b)
    chunk_bytes_per_b = C * ncp * HOP * 4
    gb = min(gb, max(1, (4 * 1024 * 1024) // chunk_bytes_per_b))
    gb = min(gb, B)
    num_tc = _num_tensorcores()
    if num_tc > 1 and B >= num_tc:
        n_steps = max(num_tc, -(-B // gb))
        n_steps = -(-n_steps // num_tc) * num_tc              # balanced across cores
        gb = -(-B // n_steps)
    return max(1, gb)


def mfcc_features(x, *, use_bf16_mxu=True):
    """x: (B, C, T) float32 waveform -> (B, C, 3*N_MFCC, n_frames) float32.

    use_bf16_mxu=True (default) casts the DFT/mel matrices and matmul LHS to bf16
    (f32 accumulation) for MXU-native throughput (~1e-3 rel. error); pass False
    for an all-f32 parity path.  Biquad and DCT matmuls stay f32 either way.
    """
    B, C, T = x.shape
    if T < N_FFT:
        raise ValueError("T must be >= n_fft (center=False framing)")
    n_frames = (T - N_FFT) // HOP + 1                 # center=False
    fp = _round_up(n_frames, 8)                       # sublane-aligned frame count
    ncp = _round_up(fp + CHUNKS_PER_FRAME - 1, 8)     # HOP-chunks per row (padded)
    mxu_dtype = jnp.bfloat16 if use_bf16_mxu else jnp.float32

    gb = _pick_group(B, C, fp, ncp)
    b_pad = _round_up(B, gb)
    g = gb * C                                        # (b, c) rows per grid step
    R = b_pad * C

    # HOP-chunked raw waveform (frames are chunk-aligned since N_FFT = 4*HOP)
    total = ncp * HOP
    keep = min(T, total)
    wave = x.reshape(B * C, T).astype(jnp.float32)
    chunks = jnp.zeros((R, total), jnp.float32)
    chunks = chunks.at[:B * C, :keep].set(wave[:, :keep])
    chunks = chunks.reshape(R, ncp, HOP)

    # biquad chunk matrices + tiny serial boundary-state scan (plain JAX)
    m1, m2 = _biquad_chunk_matrices()
    S = _biquad_boundary_states(chunks, m1, m2)       # (R, ncp, 8)

    w_dft = _dft_matrix(mxu_dtype)
    mel_fb = _mel_fbank(mxu_dtype)
    dct_m = _dct_matrix(jnp.float32)

    kernel = partial(_mfcc_kernel, n_frames=n_frames, channels=C)

    out = pl.pallas_call(
        kernel,
        out_shape=jax.ShapeDtypeStruct((R, fp, FEAT_PAD), jnp.float32),
        grid_spec=pltpu.PrefetchScalarGridSpec(
            num_scalar_prefetch=0,
            grid=(b_pad // gb,),
            in_specs=[
                pl.BlockSpec((g, ncp, HOP), lambda i: (i, 0, 0)),      # chunked waveform
                pl.BlockSpec((g, ncp, 8), lambda i: (i, 0, 0)),        # IIR boundary states
                pl.BlockSpec((HOP, HOP), lambda i: (0, 0)),            # biquad M1
                pl.BlockSpec((8, HOP), lambda i: (0, 0)),              # biquad M2
                pl.BlockSpec((N_FFT, 2 * NF), lambda i: (0, 0)),       # windowed DFT
                pl.BlockSpec((NF, N_MELS), lambda i: (0, 0)),          # mel filterbank
                pl.BlockSpec((N_MELS, N_MFCC), lambda i: (0, 0)),      # DCT matrix
            ],
            out_specs=pl.BlockSpec((g, fp, FEAT_PAD), lambda i: (i, 0, 0)),
        ),
        compiler_params=pltpu.CompilerParams(
            dimension_semantics=("parallel",),
            vmem_limit_bytes=32 * 1024 * 1024,
        ),
    )(chunks, S, m1, m2, w_dft, mel_fb, dct_m)

    # drop batch/frame/feature padding; (BC, F, 39) -> (B, C, 39, F)
    out = out[:B * C, :n_frames, :FEAT]
    out = jnp.transpose(out, (0, 2, 1)).reshape(B, C, FEAT, n_frames)
    return out


if __name__ == "__main__":
    key = jax.random.PRNGKey(0)
    B, C, T = 2, 4, 2048                       # 2048 samples -> 13 STFT frames
    x = jax.random.uniform(key, (B, C, T), dtype=jnp.float32, minval=-1.0, maxval=1.0)

    y = jax.jit(mfcc_features)(x)
    y = jax.block_until_ready(y)

    n_frames = (T - N_FFT) // HOP + 1
    assert y.shape == (B, C, FEAT, n_frames), y.shape
    assert bool(jnp.all(jnp.isfinite(y)))
    print("KERNEL_OK")
</pallas_src>

<mosaic_0001>
module attributes {stable_mosaic.version = 11 : i64} {
  func.func @_mfcc_kernel(%arg0: i32, %arg1: memref<8x24x128xf32, #tpu.memory_space<vmem>>, %arg2: memref<8x24x8xf32, #tpu.memory_space<vmem>>, %arg3: memref<128x128xf32, #tpu.memory_space<vmem>>, %arg4: memref<8x128xf32, #tpu.memory_space<vmem>>, %arg5: memref<512x512xbf16, #tpu.memory_space<vmem>>, %arg6: memref<256x64xbf16, #tpu.memory_space<vmem>>, %arg7: memref<64x13xf32, #tpu.memory_space<vmem>>, %arg8: memref<8x16x128xf32, #tpu.memory_space<vmem>>) attributes {dimension_semantics = [#tpu.dimension_semantics<parallel>], iteration_bounds = array<i64: 1>, scalar_prefetch = 0 : i64, scratch_operands = 0 : i64, tpu.core_type = #tpu.core_type<tc>, window_params = [{transform_indices = @transform_0, window_bounds = array<i64: 8, 24, 128>}, {transform_indices = @transform_1, window_bounds = array<i64: 8, 24, 8>}, {pipeline_mode = #tpu.pipeline_mode<synchronous>, transform_indices = @transform_2, window_bounds = array<i64: 128, 128>}, {pipeline_mode = #tpu.pipeline_mode<synchronous>, transform_indices = @transform_3, window_bounds = array<i64: 8, 128>}, {pipeline_mode = #tpu.pipeline_mode<synchronous>, transform_indices = @transform_4, window_bounds = array<i64: 512, 512>}, {pipeline_mode = #tpu.pipeline_mode<synchronous>, transform_indices = @transform_5, window_bounds = array<i64: 256, 64>}, {pipeline_mode = #tpu.pipeline_mode<synchronous>, transform_indices = @transform_6, window_bounds = array<i64: 64, 13>}, {transform_indices = @transform_7, window_bounds = array<i64: 8, 16, 128>}]} {
    %c0 = arith.constant 0 : index
    %c0_0 = arith.constant 0 : index
    %c0_1 = arith.constant 0 : index
    %0 = vector.load %arg1[%c0, %c0_0, %c0_1] : memref<8x24x128xf32, #tpu.memory_space<vmem>>, vector<8x24x128xf32>
    %1 = vector.shape_cast %0 : vector<8x24x128xf32> to vector<192x128xf32>
    %c0_2 = arith.constant 0 : index
    %c0_3 = arith.constant 0 : index
    %2 = vector.load %arg3[%c0_2, %c0_3] : memref<128x128xf32, #tpu.memory_space<vmem>>, vector<128x128xf32>
    %cst = arith.constant dense<0.000000e+00> : vector<192x128xf32>
    %3 = tpu.matmul %1, %2, %cst {dimension_numbers = #tpu.dot_dimension_numbers<[1], [0], [0], [1], [0, 0, 1, 1], [], []>} : vector<192x128xf32>, vector<128x128xf32>, vector<192x128xf32> -> vector<192x128xf32>
    %c0_4 = arith.constant 0 : index
    %c0_5 = arith.constant 0 : index
    %c0_6 = arith.constant 0 : index
    %4 = vector.load %arg2[%c0_4, %c0_5, %c0_6] : memref<8x24x8xf32, #tpu.memory_space<vmem>>, vector<8x24x8xf32>
    %5 = vector.shape_cast %4 : vector<8x24x8xf32> to vector<192x8xf32>
    %c0_7 = arith.constant 0 : index
    %c0_8 = arith.constant 0 : index
    %6 = vector.load %arg4[%c0_7, %c0_8] : memref<8x128xf32, #tpu.memory_space<vmem>>, vector<8x128xf32>
    %cst_9 = arith.constant dense<0.000000e+00> : vector<192x128xf32>
    %7 = tpu.matmul %5, %6, %cst_9 {dimension_numbers = #tpu.dot_dimension_numbers<[1], [0], [0], [1], [0, 0, 1, 1], [], []>} : vector<192x8xf32>, vector<8x128xf32>, vector<192x128xf32> -> vector<192x128xf32>
    %8 = arith.addf %3, %7 : vector<192x128xf32>
    %9 = vector.shape_cast %8 : vector<192x128xf32> to vector<8x24x128xf32>
    %cst_10 = arith.constant -1.000000e+00 : f32
    %cst_11 = arith.constant 1.000000e+00 : f32
    %10 = vector.broadcast %cst_10 : f32 to vector<8x24x128xf32>
    %11 = arith.maximumf %10, %9 : vector<8x24x128xf32>
    %12 = vector.broadcast %cst_11 : f32 to vector<8x24x128xf32>
    %13 = arith.minimumf %12, %11 : vector<8x24x128xf32>
    %14 = vector.extract_strided_slice %13 {offsets = [0, 0, 127], sizes = [8, 24, 1], strides = [1, 1, 1]} : vector<8x24x128xf32> to vector<8x24x1xf32>
    %cst_12 = arith.constant 0.000000e+00 : f32
    %15 = vector.broadcast %cst_12 : f32 to vector<8x1x1xf32>
    %16 = vector.extract_strided_slice %14 {offsets = [0, 0, 0], sizes = [8, 23, 1], strides = [1, 1, 1]} : vector<8x24x1xf32> to vector<8x23x1xf32>
    %17 = tpu.concatenate %15, %16 in 1 : vector<8x1x1xf32>, vector<8x23x1xf32> -> vector<8x24x1xf32>
    %18 = vector.extract_strided_slice %13 {offsets = [0, 0, 0], sizes = [8, 24, 127], strides = [1, 1, 1]} : vector<8x24x128xf32> to vector<8x24x127xf32>
    %19 = tpu.concatenate %17, %18 in 2 : vector<8x24x1xf32>, vector<8x24x127xf32> -> vector<8x24x128xf32>
    %cst_13 = arith.constant 9.700000e-01 : f32
    %20 = vector.broadcast %cst_13 : f32 to vector<8x24x128xf32>
    %21 = arith.mulf %20, %19 : vector<8x24x128xf32>
    %22 = arith.subf %13, %21 : vector<8x24x128xf32>
    %23 = vector.extract_strided_slice %22 {offsets = [0, 0, 0], sizes = [8, 16, 128], strides = [1, 1, 1]} : vector<8x24x128xf32> to vector<8x16x128xf32>
    %24 = vector.extract_strided_slice %22 {offsets = [0, 1, 0], sizes = [8, 16, 128], strides = [1, 1, 1]} : vector<8x24x128xf32> to vector<8x16x128xf32>
    %25 = vector.extract_strided_slice %22 {offsets = [0, 2, 0], sizes = [8, 16, 128], strides = [1, 1, 1]} : vector<8x24x128xf32> to vector<8x16x128xf32>
    %26 = vector.extract_strided_slice %22 {offsets = [0, 3, 0], sizes = [8, 16, 128], strides = [1, 1, 1]} : vector<8x24x128xf32> to vector<8x16x128xf32>
    %27 = tpu.concatenate %23, %24, %25, %26 in 2 : vector<8x16x128xf32>, vector<8x16x128xf32>, vector<8x16x128xf32>, vector<8x16x128xf32> -> vector<8x16x512xf32>
    %28 = vector.shape_cast %27 : vector<8x16x512xf32> to vector<128x512xf32>
    %29 = arith.truncf %28 : vector<128x512xf32> to vector<128x512xbf16>
    %c0_14 = arith.constant 0 : index
    %c0_15 = arith.constant 0 : index
    %30 = vector.load %arg5[%c0_14, %c0_15] : memref<512x512xbf16, #tpu.memory_space<vmem>>, vector<512x512xbf16>
    %cst_16 = arith.constant dense<0.000000e+00> : vector<128x512xf32>
    %31 = tpu.matmul %29, %30, %cst_16 {dimension_numbers = #tpu.dot_dimension_numbers<[1], [0], [0], [1], [0, 0, 1, 1], [], []>} : vector<128x512xbf16>, vector<512x512xbf16>, vector<128x512xf32> -> vector<128x512xf32>
    %32 = vector.extract_strided_slice %31 {offsets = [0, 0], sizes = [128, 256], strides = [1, 1]} : vector<128x512xf32> to vector<128x256xf32>
    %33 = vector.extract_strided_slice %31 {offsets = [0, 256], sizes = [128, 256], strides = [1, 1]} : vector<128x512xf32> to vector<128x256xf32>
    %34 = arith.mulf %32, %32 : vector<128x256xf32>
    %35 = arith.mulf %33, %33 : vector<128x256xf32>
    %36 = arith.addf %34, %35 : vector<128x256xf32>
    %37 = arith.truncf %36 : vector<128x256xf32> to vector<128x256xbf16>
    %c0_17 = arith.constant 0 : index
    %c0_18 = arith.constant 0 : index
    %38 = vector.load %arg6[%c0_17, %c0_18] : memref<256x64xbf16, #tpu.memory_space<vmem>>, vector<256x64xbf16>
    %cst_19 = arith.constant dense<0.000000e+00> : vector<128x64xf32>
    %39 = tpu.matmul %37, %38, %cst_19 {dimension_numbers = #tpu.dot_dimension_numbers<[1], [0], [0], [1], [0, 0, 1, 1], [], []>} : vector<128x256xbf16>, vector<256x64xbf16>, vector<128x64xf32> -> vector<128x64xf32>
    %40 = vector.shape_cast %39 : vector<128x64xf32> to vector<2x64x64xf32>
    %cst_20 = arith.constant 1.000000e-10 : f32
    %41 = vector.broadcast %cst_20 : f32 to vector<2x64x64xf32>
    %42 = arith.maximumf %40, %41 : vector<2x64x64xf32>
    %43 = math.log %42 : vector<2x64x64xf32>
    %cst_21 = arith.constant 0.434294492 : f32
    %44 = vector.broadcast %cst_21 : f32 to vector<2x64x64xf32>
    %45 = arith.mulf %43, %44 : vector<2x64x64xf32>
    %cst_22 = arith.constant 1.000000e+01 : f32
    %46 = vector.broadcast %cst_22 : f32 to vector<2x64x64xf32>
    %47 = arith.mulf %46, %45 : vector<2x64x64xf32>
    %48 = tpu.iota {dimensions = array<i32: 1>} : vector<1x64x1xi32>
    %c16_i32 = arith.constant 16 : i32
    %c0_i32 = arith.constant 0 : i32
    %49 = arith.cmpi eq, %c16_i32, %c0_i32 : i32
    %c1_i32 = arith.constant 1 : i32
    %50 = arith.select %49, %c1_i32, %c16_i32 : i32
    %51 = vector.broadcast %50 : i32 to vector<1x64x1xi32>
    %52 = arith.remsi %48, %51 : vector<1x64x1xi32>
    %c0_i32_23 = arith.constant 0 : i32
    %53 = vector.broadcast %c0_i32_23 : i32 to vector<1x64x1xi32>
    %54 = arith.cmpi ne, %52, %53 : vector<1x64x1xi32>
    %c0_i32_24 = arith.constant 0 : i32
    %55 = vector.broadcast %c0_i32_24 : i32 to vector<1x64x1xi32>
    %56 = arith.cmpi slt, %52, %55 : vector<1x64x1xi32>
    %c0_i32_25 = arith.constant 0 : i32
    %57 = arith.cmpi slt, %50, %c0_i32_25 : i32
    %58 = vector.broadcast %57 : i1 to vector<1x64x1xi1>
    %59 = vector.broadcast %58 : vector<1x64x1xi1> to vector<1x64x1xi1>
    %60 = arith.xori %56, %59 : vector<1x64x1xi1>
    %61 = arith.andi %60, %54 : vector<1x64x1xi1>
    %62 = vector.broadcast %50 : i32 to vector<1x64x1xi32>
    %63 = arith.addi %52, %62 : vector<1x64x1xi32>
    %64 = arith.select %61, %63, %52 : vector<1x64x1xi1>, vector<1x64x1xi32>
    %c13_i32 = arith.constant 13 : i32
    %65 = vector.broadcast %c13_i32 : i32 to vector<1x64x1xi32>
    %66 = arith.cmpi slt, %64, %65 : vector<1x64x1xi32>
    %cst_26 = arith.constant -1.000000e+30 : f32
    %67 = vector.shape_cast %66 : vector<1x64x1xi1> to vector<1x64x1xi1>
    %68 = vector.broadcast %67 : vector<1x64x1xi1> to vector<2x64x64xi1>
    %69 = vector.broadcast %cst_26 : f32 to vector<2x64x64xf32>
    %70 = arith.select %68, %47, %69 : vector<2x64x64xi1>, vector<2x64x64xf32>
    %cst_27 = arith.constant dense<0xFF800000> : vector<2x64xf32>
    %71 = vector.multi_reduction <maximumf>, %70, %cst_27 [2] : vector<2x64x64xf32> to vector<2x64xf32>
    %72 = vector.shape_cast %71 : vector<2x64xf32> to vector<2x64x1xf32>
    %cst_28 = arith.constant dense<0xFF800000> : vector<2x1xf32>
    %73 = vector.multi_reduction <maximumf>, %72, %cst_28 [1] : vector<2x64x1xf32> to vector<2x1xf32>
    %74 = vector.shape_cast %73 : vector<2x1xf32> to vector<2x1x1xf32>
    %cst_29 = arith.constant 8.000000e+01 : f32
    %75 = vector.broadcast %cst_29 : f32 to vector<2x1x1xf32>
    %76 = arith.subf %74, %75 : vector<2x1x1xf32>
    %77 = vector.broadcast %76 : vector<2x1x1xf32> to vector<2x64x64xf32>
    %78 = arith.maximumf %47, %77 : vector<2x64x64xf32>
    %79 = vector.shape_cast %78 : vector<2x64x64xf32> to vector<128x64xf32>
    %c0_30 = arith.constant 0 : index
    %c0_31 = arith.constant 0 : index
    %80 = vector.load %arg7[%c0_30, %c0_31] : memref<64x13xf32, #tpu.memory_space<vmem>>, vector<64x13xf32>
    %cst_32 = arith.constant dense<0.000000e+00> : vector<128x13xf32>
    %81 = tpu.matmul %79, %80, %cst_32 {dimension_numbers = #tpu.dot_dimension_numbers<[1], [0], [0], [1], [0, 0, 1, 1], [], []>} : vector<128x64xf32>, vector<64x13xf32>, vector<128x13xf32> -> vector<128x13xf32>
    %82 = vector.shape_cast %81 : vector<128x13xf32> to vector<8x16x13xf32>
    %83 = tpu.iota {dimensions = array<i32: 1>} : vector<1x16x1xi32>
    %c13_i32_33 = arith.constant 13 : i32
    %84 = vector.broadcast %c13_i32_33 : i32 to vector<1x16x1xi32>
    %85 = arith.cmpi sge, %83, %84 : vector<1x16x1xi32>
    %86 = vector.extract_strided_slice %82 {offsets = [0, 12, 0], sizes = [8, 1, 13], strides = [1, 1, 1]} : vector<8x16x13xf32> to vector<8x1x13xf32>
    %87 = vector.shape_cast %85 : vector<1x16x1xi1> to vector<1x16x1xi1>
    %88 = vector.broadcast %87 : vector<1x16x1xi1> to vector<8x16x13xi1>
    %89 = vector.shape_cast %86 : vector<8x1x13xf32> to vector<8x1x13xf32>
    %90 = vector.broadcast %89 : vector<8x1x13xf32> to vector<8x16x13xf32>
    %91 = arith.select %88, %90, %82 : vector<8x16x13xi1>, vector<8x16x13xf32>
    %92 = vector.extract_strided_slice %91 {offsets = [0, 0, 0], sizes = [8, 1, 13], strides = [1, 1, 1]} : vector<8x16x13xf32> to vector<8x1x13xf32>
    %93 = vector.extract_strided_slice %91 {offsets = [0, 15, 0], sizes = [8, 1, 13], strides = [1, 1, 1]} : vector<8x16x13xf32> to vector<8x1x13xf32>
    %94 = vector.extract_strided_slice %91 {offsets = [0, 0, 0], sizes = [8, 15, 13], strides = [1, 1, 1]} : vector<8x16x13xf32> to vector<8x15x13xf32>
    %95 = tpu.concatenate %92, %94 in 1 : vector<8x1x13xf32>, vector<8x15x13xf32> -> vector<8x16x13xf32>
    %96 = vector.extract_strided_slice %91 {offsets = [0, 0, 0], sizes = [8, 14, 13], strides = [1, 1, 1]} : vector<8x16x13xf32> to vector<8x14x13xf32>
    %97 = tpu.concatenate %92, %92, %96 in 1 : vector<8x1x13xf32>, vector<8x1x13xf32>, vector<8x14x13xf32> -> vector<8x16x13xf32>
    %98 = vector.extract_strided_slice %91 {offsets = [0, 1, 0], sizes = [8, 15, 13], strides = [1, 1, 1]} : vector<8x16x13xf32> to vector<8x15x13xf32>
    %99 = tpu.concatenate %98, %93 in 1 : vector<8x15x13xf32>, vector<8x1x13xf32> -> vector<8x16x13xf32>
    %100 = vector.extract_strided_slice %91 {offsets = [0, 2, 0], sizes = [8, 14, 13], strides = [1, 1, 1]} : vector<8x16x13xf32> to vector<8x14x13xf32>
    %101 = tpu.concatenate %100, %93, %93 in 1 : vector<8x14x13xf32>, vector<8x1x13xf32>, vector<8x1x13xf32> -> vector<8x16x13xf32>
    %cst_34 = arith.constant 2.000000e+00 : f32
    %102 = vector.broadcast %cst_34 : f32 to vector<8x16x13xf32>
    %103 = arith.mulf %102, %101 : vector<8x16x13xf32>
    %104 = arith.addf %103, %99 : vector<8x16x13xf32>
    %105 = arith.subf %104, %95 : vector<8x16x13xf32>
    %cst_35 = arith.constant 2.000000e+00 : f32
    %106 = vector.broadcast %cst_35 : f32 to vector<8x16x13xf32>
    %107 = arith.mulf %106, %97 : vector<8x16x13xf32>
    %108 = arith.subf %105, %107 : vector<8x16x13xf32>
    %cst_36 = arith.constant 1.000000e-01 : f32
    %109 = vector.broadcast %cst_36 : f32 to vector<8x16x13xf32>
    %110 = arith.mulf %108, %109 : vector<8x16x13xf32>
    %c13_i32_37 = arith.constant 13 : i32
    %111 = vector.broadcast %c13_i32_37 : i32 to vector<1x16x1xi32>
    %112 = arith.cmpi sge, %83, %111 : vector<1x16x1xi32>
    %113 = vector.extract_strided_slice %110 {offsets = [0, 12, 0], sizes = [8, 1, 13], strides = [1, 1, 1]} : vector<8x16x13xf32> to vector<8x1x13xf32>
    %114 = vector.shape_cast %112 : vector<1x16x1xi1> to vector<1x16x1xi1>
    %115 = vector.broadcast %114 : vector<1x16x1xi1> to vector<8x16x13xi1>
    %116 = vector.shape_cast %113 : vector<8x1x13xf32> to vector<8x1x13xf32>
    %117 = vector.broadcast %116 : vector<8x1x13xf32> to vector<8x16x13xf32>
    %118 = arith.select %115, %117, %110 : vector<8x16x13xi1>, vector<8x16x13xf32>
    %119 = vector.extract_strided_slice %118 {offsets = [0, 0, 0], sizes = [8, 1, 13], strides = [1, 1, 1]} : vector<8x16x13xf32> to vector<8x1x13xf32>
    %120 = vector.extract_strided_slice %118 {offsets = [0, 15, 0], sizes = [8, 1, 13], strides = [1, 1, 1]} : vector<8x16x13xf32> to vector<8x1x13xf32>
    %121 = vector.extract_strided_slice %118 {offsets = [0, 0, 0], sizes = [8, 15, 13], strides = [1, 1, 1]} : vector<8x16x13xf32> to vector<8x15x13xf32>
    %122 = tpu.concatenate %119, %121 in 1 : vector<8x1x13xf32>, vector<8x15x13xf32> -> vector<8x16x13xf32>
    %123 = vector.extract_strided_slice %118 {offsets = [0, 0, 0], sizes = [8, 14, 13], strides = [1, 1, 1]} : vector<8x16x13xf32> to vector<8x14x13xf32>
    %124 = tpu.concatenate %119, %119, %123 in 1 : vector<8x1x13xf32>, vector<8x1x13xf32>, vector<8x14x13xf32> -> vector<8x16x13xf32>
    %125 = vector.extract_strided_slice %118 {offsets = [0, 1, 0], sizes = [8, 15, 13], strides = [1, 1, 1]} : vector<8x16x13xf32> to vector<8x15x13xf32>
    %126 = tpu.concatenate %125, %120 in 1 : vector<8x15x13xf32>, vector<8x1x13xf32> -> vector<8x16x13xf32>
    %127 = vector.extract_strided_slice %118 {offsets = [0, 2, 0], sizes = [8, 14, 13], strides = [1, 1, 1]} : vector<8x16x13xf32> to vector<8x14x13xf32>
    %128 = tpu.concatenate %127, %120, %120 in 1 : vector<8x14x13xf32>, vector<8x1x13xf32>, vector<8x1x13xf32> -> vector<8x16x13xf32>
    %cst_38 = arith.constant 2.000000e+00 : f32
    %129 = vector.broadcast %cst_38 : f32 to vector<8x16x13xf32>
    %130 = arith.mulf %129, %128 : vector<8x16x13xf32>
    %131 = arith.addf %130, %126 : vector<8x16x13xf32>
    %132 = arith.subf %131, %122 : vector<8x16x13xf32>
    %cst_39 = arith.constant 2.000000e+00 : f32
    %133 = vector.broadcast %cst_39 : f32 to vector<8x16x13xf32>
    %134 = arith.mulf %133, %124 : vector<8x16x13xf32>
    %135 = arith.subf %132, %134 : vector<8x16x13xf32>
    %cst_40 = arith.constant 1.000000e-01 : f32
    %136 = vector.broadcast %cst_40 : f32 to vector<8x16x13xf32>
    %137 = arith.mulf %135, %136 : vector<8x16x13xf32>
    %cst_41 = arith.constant 0.000000e+00 : f32
    %138 = vector.broadcast %cst_41 : f32 to vector<8x16x89xf32>
    %139 = tpu.concatenate %91, %118, %137, %138 in 2 : vector<8x16x13xf32>, vector<8x16x13xf32>, vector<8x16x13xf32>, vector<8x16x89xf32> -> vector<8x16x128xf32>
    %c0_42 = arith.constant 0 : index
    %c0_43 = arith.constant 0 : index
    %c0_44 = arith.constant 0 : index
    %140 = vector.load %arg8[%c0_42, %c0_43, %c0_44] : memref<8x16x128xf32, #tpu.memory_space<vmem>>, vector<8x16x128xf32>
    tpu.vector_store %arg8[%c0_42, %c0_43, %c0_44], %139 {strides = array<i32>} : memref<8x16x128xf32, #tpu.memory_space<vmem>>, vector<8x16x128xf32>,
    return
  }
  func.func @transform_0(%arg0: i32) -> (i32, i32, i32) {
    %c0_i32 = arith.constant 0 : i32
    %c0_i32_0 = arith.constant 0 : i32
    %c0_i32_1 = arith.constant 0 : i32
    return %arg0, %c0_i32, %c0_i32_0 : i32, i32, i32
  }
  func.func @transform_1(%arg0: i32) -> (i32, i32, i32) {
    %c0_i32 = arith.constant 0 : i32
    %c0_i32_0 = arith.constant 0 : i32
    %c0_i32_1 = arith.constant 0 : i32
    return %arg0, %c0_i32, %c0_i32_0 : i32, i32, i32
  }
  func.func @transform_2(%arg0: i32) -> (i32, i32) {
    %c0_i32 = arith.constant 0 : i32
    %c0_i32_0 = arith.constant 0 : i32
    %c0_i32_1 = arith.constant 0 : i32
    return %c0_i32, %c0_i32_0 : i32, i32
  }
  func.func @transform_3(%arg0: i32) -> (i32, i32) {
    %c0_i32 = arith.constant 0 : i32
    %c0_i32_0 = arith.constant 0 : i32
    %c0_i32_1 = arith.constant 0 : i32
    return %c0_i32, %c0_i32_0 : i32, i32
  }
  func.func @transform_4(%arg0: i32) -> (i32, i32) {
    %c0_i32 = arith.constant 0 : i32
    %c0_i32_0 = arith.constant 0 : i32
    %c0_i32_1 = arith.constant 0 : i32
    return %c0_i32, %c0_i32_0 : i32, i32
  }
  func.func @transform_5(%arg0: i32) -> (i32, i32) {
    %c0_i32 = arith.constant 0 : i32
    %c0_i32_0 = arith.constant 0 : i32
    %c0_i32_1 = arith.constant 0 : i32
    return %c0_i32, %c0_i32_0 : i32, i32
  }
  func.func @transform_6(%arg0: i32) -> (i32, i32) {
    %c0_i32 = arith.constant 0 : i32
    %c0_i32_0 = arith.constant 0 : i32
    %c0_i32_1 = arith.constant 0 : i32
    return %c0_i32, %c0_i32_0 : i32, i32
  }
  func.func @transform_7(%arg0: i32) -> (i32, i32, i32) {
    %c0_i32 = arith.constant 0 : i32
    %c0_i32_0 = arith.constant 0 : i32
    %c0_i32_1 = arith.constant 0 : i32
    return %arg0, %c0_i32, %c0_i32_0 : i32, i32, i32
  }
}

</mosaic_0001>

<bundles_post_ra>
// kernel: custom-call
= control target key start
LH: loop header
LB: loop body
LE: loop exit
PB: predicated region body
PF: predicated region fallthrough
CT: control target
= control target key end

     0   :  { %s6_s0 = inlined_call_operand.vmem [shape: f32[8], index: 0, kind: output, shape index: {}]  }

// kernel: custom-call.2
= control target key start
LH: loop header
LB: loop body
LE: loop exit
PB: predicated region body
PF: predicated region fallthrough
CT: control target
= control target key end

     0   :  { %s6_s0 = inlined_call_operand.vmem [shape: f32[24,8,4], index: 0, kind: output, shape index: {}]  }

// kernel: mfcc_features.1
= control target key start
LH: loop header
LB: loop body
LE: loop exit
PB: predicated region body
PF: predicated region fallthrough
CT: control target
= control target key end

     0   :  { %vm92_vm0 = vcmask 64512   ;;  %s4974_s11 = smov 1   ;;  %vm607_vm1 = vcmask 1040384   ;;  %vm800_vm2 = vcmask 7168   ;;  %vm1011_vm3 = vcmask 1044480   ;;  %s4976_s12 = smov 26   ;;  %s6945_s2 = inlined_call_operand.vmem [shape: f32[128,128], index: 2, kind: input, shape index: {}]   ;;  %s6946_s3 = inlined_call_operand.vmem [shape: f32[8,128], index: 3, kind: input, shape index: {}]   ;;  %s6947_s1 = inlined_call_operand.vmem [shape: f32[8,24,8], index: 1, kind: input, shape index: {}]   ;;  %s6948_s0 = inlined_call_operand.vmem [shape: f32[8,24,128], index: 0, kind: input, shape index: {}]   ;;  %s6949_s4 = inlined_call_operand.vmem [shape: bf16[512,512], index: 4, kind: input, shape index: {}]   ;;  %s6950_s5 = inlined_call_operand.vmem [shape: bf16[256,64], index: 5, kind: input, shape index: {}]   ;;  %s6951_s6 = inlined_call_operand.vmem [shape: f32[64,13], index: 6, kind: input, shape index: {}]   ;;  %s6952_s7 = inlined_call_operand.vmem [shape: f32[8,16,128], index: 7, kind: output, shape index: {}]  }
   0x1   :  { %v51_v0 = vld [vmem:[%s6945_s2] sm:$0xff]  ;;  %v52_v1 = vld [vmem:[%s6945_s2 + $0x8] sm:$0xff]  ;;  %v53_v2 = vld [vmem:[%s6945_s2 + $0x10] sm:$0xff]  ;;  %vm954_vm4 = vcmask 1045504   ;;  %vm897_vm5 = vcmask 1046528   ;;  %vm2882_vm6 = vcmask 523264  }
   0x2   :  { %v4595_v3 = vpack.c.bf16 %v52_v1, %v51_v0  ;;  %v54_v4 = vld [vmem:[%s6945_s2 + $0x18] sm:$0xff]  ;;  %v55_v6 = vld [vmem:[%s6945_s2 + $0x20] sm:$0xff]  ;;  %v56_v7 = vld [vmem:[%s6945_s2 + $0x28] sm:$0xff]  ;;  %vm3294_vm12 = vcmask 1041408   ;;  %vm4015_vm13 = vcmask 105472   ;;  %vm4032_vm14 = vcmask 211968  }
   0x3   :  { %v4599_v5 = vpack.c.bf16 %v54_v4, %v53_v2  ;;  %v4603_v8 = vpack.c.bf16 %v56_v7, %v55_v6  ;;  %v57_v9 = vld [vmem:[%s6945_s2 + $0x30] sm:$0xff]  ;;  %v91_v10 = vld [vmem:[%s6946_s3] sm:$0xff]  ;;  %v58_v12 = vld [vmem:[%s6945_s2 + $0x38] sm:$0xff]  ;;  %vm4049_vm15 = vcmask 318464  }
   0x4   :  { %4596 = vmatprep.subr.bf16.mxu0 %v4595_v3  ;;  %v67_v11 = vld [vmem:[%s6947_s1] sm:$0xff]  ;;  %4449 = vmatprep.subr.mxu1 %v91_v10  ;;  %v68_v13 = vld [vmem:[%s6947_s1 + $0x8] sm:$0xff]  ;;  %v69_v15 = vld [vmem:[%s6947_s1 + $0x10] sm:$0xff]  ;;  %v4607_v16 = vpack.c.bf16 %v58_v12, %v57_v9 }
   0x5   :  { %4598 = vmatpush3.bf16.msra.mxu0 %v4595_v3  ;;  %4451 = vmatprep.mubr.msk.f32.mxu1 %vm92_vm0, %v67_v11  ;;  %v27_v14 = vld [vmem:[%s6948_s0] sm:$0xff]  ;;  %v70_v17 = vld [vmem:[%s6947_s1 + $0x18] sm:$0xff]  ;;  %v60_v19 = vld [vmem:[%s6945_s2 + $0x48] sm:$0xff] }
   0x6   :  { %4600 = vmatprep.subr.bf16.mxu0 %v4599_v5  ;;  %4450 = vmatpush3.msra.mxu1 %v91_v10  ;;  %v59_v18 = vld [vmem:[%s6945_s2 + $0x40] sm:$0xff]  ;;  %v72_v22 = vld [vmem:[%s6947_s1 + $0x28] sm:$0xff]  ;;  %v61_v23 = vld [vmem:[%s6945_s2 + $0x50] sm:$0xff] }
   0x7   :  { %4519 = vmatprep.mubr.f32.mxu0 %v27_v14  ;;  %4452 = vmatmul.mubr.msk.f32.vlgmr.msra.gmra.mrb[0].mxu1 %vm92_vm0, %v68_v13  ;;  %v71_v20 = vld [vmem:[%s6947_s1 + $0x20] sm:$0xff]  ;;  %v4611_v21 = vpack.c.bf16 %v60_v19, %v59_v18  ;;  %v62_v24 = vld [vmem:[%s6945_s2 + $0x58] sm:$0xff]  ;;  %v73_v25 = vld [vmem:[%s6947_s1 + $0x30] sm:$0xff] }
   0x8   :  { %4454 = vmatprep.mubr.msk.f32.mxu1 %vm92_vm0, %v69_v15  ;;  %v4615_v26 = vpack.c.bf16 %v62_v24, %v61_v23  ;;  %v74_v27 = vld [vmem:[%s6947_s1 + $0x38] sm:$0xff]  ;;  %v63_v28 = vld [vmem:[%s6945_s2 + $0x60] sm:$0xff]  ;;  %v64_v29 = vld [vmem:[%s6945_s2 + $0x68] sm:$0xff] }
   0x9   :  { %4602 = vmatpush3.bf16.msra.mxu0 %v4599_v5  ;;  %v75_v30 = vld [vmem:[%s6947_s1 + $0x40] sm:$0xff]  ;;  %v4619_v31 = vpack.c.bf16 %v64_v29, %v63_v28  ;;  %v76_v32 = vld [vmem:[%s6947_s1 + $0x48] sm:$0xff]  ;;  %v65_v33 = vld [vmem:[%s6945_s2 + $0x70] sm:$0xff] }
   0xa   :  { %4604 = vmatprep.subr.bf16.mxu0 %v4603_v8  ;;  %v66_v34 = vld [vmem:[%s6945_s2 + $0x78] sm:$0xff]  ;;  %v77_v35 = vld [vmem:[%s6947_s1 + $0x50] sm:$0xff]  ;;  %v79_v38 = vld [vmem:[%s6947_s1 + $0x60] sm:$0xff] }
   0xb   :  { %4455 = vmatmul.mubr.msk.f32.gmra.mrb[2].mxu1 %vm92_vm0, %v70_v17  ;;  %v4623_v36 = vpack.c.bf16 %v66_v34, %v65_v33  ;;  %v78_v37 = vld [vmem:[%s6947_s1 + $0x58] sm:$0xff]  ;;  %v80_v39 = vld [vmem:[%s6947_s1 + $0x68] sm:$0xff]  ;;  %v81_v40 = vld [vmem:[%s6947_s1 + $0x70] sm:$0xff] }
   0xc   :  { %4457 = vmatprep.mubr.msk.f32.mxu1 %vm92_vm0, %v71_v20  ;;  %v28_v41 = vld [vmem:[%s6948_s0 + $0x8] sm:$0xff]  ;;  %v29_v42 = vld [vmem:[%s6948_s0 + $0x10] sm:$0xff]  ;;  %v82_v43 = vld [vmem:[%s6947_s1 + $0x78] sm:$0xff] }
   0xd   :  { %4606 = vmatpush3.bf16.msra.mxu0 %v4603_v8  ;;  %v83_v44 = vld [vmem:[%s6947_s1 + $0x80] sm:$0xff]  ;;  %v30_v45 = vld [vmem:[%s6948_s0 + $0x18] sm:$0xff]  ;;  %v84_v47 = vld [vmem:[%s6947_s1 + $0x88] sm:$0xff] }
   0xe   :  { %4608 = vmatprep.subr.bf16.mxu0 %v4607_v16  ;;  %v31_v46 = vld [vmem:[%s6948_s0 + $0x20] sm:$0xff]  ;;  %v85_v48 = vld [vmem:[%s6947_s1 + $0x90] sm:$0xff]  ;;  %v32_v49 = vld [vmem:[%s6948_s0 + $0x28] sm:$0xff] }
   0xf   :  { %4458 = vmatmul.mubr.msk.f32.gmra.mrb[4].mxu1 %vm92_vm0, %v72_v22  ;;  %v33_v50 = vld [vmem:[%s6948_s0 + $0x30] sm:$0xff]  ;;  %v86_v51 = vld [vmem:[%s6947_s1 + $0x98] sm:$0xff]  ;;  %v87_v52 = vld [vmem:[%s6947_s1 + $0xa0] sm:$0xff] }
  0x10   :  { %4460 = vmatprep.mubr.msk.f32.mxu1 %vm92_vm0, %v73_v25  ;;  %v34_v53 = vld [vmem:[%s6948_s0 + $0x38] sm:$0xff]  ;;  %v35_v54 = vld [vmem:[%s6948_s0 + $0x40] sm:$0xff]  ;;  %v88_v55 = vld [vmem:[%s6947_s1 + $0xa8] sm:$0xff] }
  0x11   :  { %4610 = vmatpush3.bf16.msra.mxu0 %v4607_v16  ;;  %v89_v56 = vld [vmem:[%s6947_s1 + $0xb0] sm:$0xff]  ;;  %v36_v57 = vld [vmem:[%s6948_s0 + $0x48] sm:$0xff]  ;;  %v90_v59 = vld [vmem:[%s6947_s1 + $0xb8] sm:$0xff] }
  0x12   :  { %4612 = vmatprep.subr.bf16.mxu0 %v4611_v21  ;;  %v37_v58 = vld [vmem:[%s6948_s0 + $0x50] sm:$0xff]  ;;  %v38_v60 = vld [vmem:[%s6948_s0 + $0x58] sm:$0xff]  ;;  %v39_v61 = vld [vmem:[%s6948_s0 + $0x60] sm:$0xff] }
  0x13   :  { %4461 = vmatmul.mubr.msk.f32.gmra.mrb[6].mxu1 %vm92_vm0, %v74_v27  ;;  %v40_v62 = vld [vmem:[%s6948_s0 + $0x68] sm:$0xff]  ;;  %v41_v63 = vld [vmem:[%s6948_s0 + $0x70] sm:$0xff]  ;;  %v42_v0 = vld [vmem:[%s6948_s0 + $0x78] sm:$0xff] }
  0x14   :  { %4463 = vmatprep.mubr.msk.f32.mxu1 %vm92_vm0, %v75_v30  ;;  %v43_v1 = vld [vmem:[%s6948_s0 + $0x80] sm:$0xff]  ;;  %v44_v2 = vld [vmem:[%s6948_s0 + $0x88] sm:$0xff]  ;;  %v45_v3 = vld [vmem:[%s6948_s0 + $0x90] sm:$0xff] }
  0x15   :  { %4614 = vmatpush3.bf16.msra.mxu0 %v4611_v21  ;;  %v46_v4 = vld [vmem:[%s6948_s0 + $0x98] sm:$0xff]  ;;  %v47_v5 = vld [vmem:[%s6948_s0 + $0xa0] sm:$0xff]  ;;  %v48_v6 = vld [vmem:[%s6948_s0 + $0xa8] sm:$0xff] }
  0x16   :  { %4616 = vmatprep.subr.bf16.mxu0 %v4615_v26  ;;  %v49_v7 = vld [vmem:[%s6948_s0 + $0xb0] sm:$0xff]  ;;  %v50_v8 = vld [vmem:[%s6948_s0 + $0xb8] sm:$0xff] }
  0x17   :  { %4464 = vmatmul.mubr.msk.f32.gmra.mrb[8].mxu1 %vm92_vm0, %v76_v32  ;;  %v4734_v9 = vld [vmem:[%s6949_s4] ss:$16 sps:$4 sm:$0xff]   ;;  %v4736_v10 = vld [vmem:[%s6949_s4 + $0x4] ss:$16 sps:$4 sm:$0xff]   ;;  %v4737_v11 = vld [vmem:[%s6949_s4 + $0x8] ss:$16 sps:$4 sm:$0xff]  }
  0x18   :  { %4466 = vmatprep.mubr.msk.f32.mxu1 %vm92_vm0, %v77_v35  ;;  %v4739_v12 = vld [vmem:[%s6949_s4 + $0xc] ss:$16 sps:$4 sm:$0xff]   ;;  %1868 = vmatprep.subr.bf16.mxu1 %v4736_v10  ;;  %v4740_v13 = vld [vmem:[%s6949_s4 + $0x20] ss:$16 sps:$4 sm:$0xff]   ;;  %v4742_v14 = vld [vmem:[%s6949_s4 + $0x24] ss:$16 sps:$4 sm:$0xff]  }
  0x19   :  { %4618 = vmatpush3.bf16.msra.mxu0 %v4615_v26  ;;  %1869 = vmatpush1.bf16.msra.mxu1 %v4734_v9  ;;  %v4743_v15 = vld [vmem:[%s6949_s4 + $0x28] ss:$16 sps:$4 sm:$0xff]   ;;  %v4745_v16 = vld [vmem:[%s6949_s4 + $0x2c] ss:$16 sps:$4 sm:$0xff]   ;;  %v4746_v17 = vld [vmem:[%s6949_s4 + $0x40] ss:$16 sps:$4 sm:$0xff]  }
  0x1a   :  { %4620 = vmatprep.subr.bf16.mxu0 %v4619_v31  ;;  %1870 = vmatprep.subr.bf16.mxu1 %v4742_v14  ;;  %v4748_v18 = vld [vmem:[%s6949_s4 + $0x44] ss:$16 sps:$4 sm:$0xff]   ;;  %v4749_v19 = vld [vmem:[%s6949_s4 + $0x48] ss:$16 sps:$4 sm:$0xff]   ;;  %v4751_v20 = vld [vmem:[%s6949_s4 + $0x4c] ss:$16 sps:$4 sm:$0xff]  }
  0x1b   :  { %4467 = vmatmul.mubr.msk.f32.gmra.mrb[10].mxu1 %vm92_vm0, %v78_v37  ;;  %v4752_v21 = vld [vmem:[%s6949_s4 + $0x60] ss:$16 sps:$4 sm:$0xff]   ;;  %v4754_v22 = vld [vmem:[%s6949_s4 + $0x64] ss:$16 sps:$4 sm:$0xff]   ;;  %v4755_v23 = vld [vmem:[%s6949_s4 + $0x68] ss:$16 sps:$4 sm:$0xff]  }
  0x1c   :  { %4469 = vmatprep.mubr.msk.f32.mxu1 %vm92_vm0, %v79_v38  ;;  %v4757_v24 = vld [vmem:[%s6949_s4 + $0x6c] ss:$16 sps:$4 sm:$0xff]   ;;  %v4758_v25 = vld [vmem:[%s6949_s4 + $0x80] ss:$16 sps:$4 sm:$0xff]   ;;  %v4760_v26 = vld [vmem:[%s6949_s4 + $0x84] ss:$16 sps:$4 sm:$0xff]  }
  0x1d   :  { %4622 = vmatpush3.bf16.msra.mxu0 %v4619_v31  ;;  %1871 = vmatpush1.bf16.msra.mxu1 %v4740_v13  ;;  %v4761_v27 = vld [vmem:[%s6949_s4 + $0x88] ss:$16 sps:$4 sm:$0xff]   ;;  %v4763_v28 = vld [vmem:[%s6949_s4 + $0x8c] ss:$16 sps:$4 sm:$0xff]   ;;  %v4764_v29 = vld [vmem:[%s6949_s4 + $0xa0] ss:$16 sps:$4 sm:$0xff]  }
  0x1e   :  { %4624 = vmatprep.subr.bf16.mxu0 %v4623_v36  ;;  %1872 = vmatprep.subr.bf16.mxu1 %v4748_v18  ;;  %v4766_v30 = vld [vmem:[%s6949_s4 + $0xa4] ss:$16 sps:$4 sm:$0xff]   ;;  %v4767_v31 = vld [vmem:[%s6949_s4 + $0xa8] ss:$16 sps:$4 sm:$0xff]   ;;  %v4769_v32 = vld [vmem:[%s6949_s4 + $0xac] ss:$16 sps:$4 sm:$0xff]  }
  0x1f   :  { %4470 = vmatmul.mubr.msk.f32.gmra.mrb[12].mxu1 %vm92_vm0, %v80_v39  ;;  %v4772_v33 = vld [vmem:[%s6949_s4 + $0xc4] ss:$16 sps:$4 sm:$0xff]   ;;  %v4775_v34 = vld [vmem:[%s6949_s4 + $0xcc] ss:$16 sps:$4 sm:$0xff]   ;;  %v4770_v37 = vld [vmem:[%s6949_s4 + $0xc0] ss:$16 sps:$4 sm:$0xff]  }
  0x20   :  { %4472 = vmatprep.mubr.msk.f32.mxu1 %vm92_vm0, %v81_v40  ;;  %v4773_v38 = vld [vmem:[%s6949_s4 + $0xc8] ss:$16 sps:$4 sm:$0xff]   ;;  %v4778_v39 = vld [vmem:[%s6949_s4 + $0xe4] ss:$16 sps:$4 sm:$0xff]   ;;  %v4776_v40 = vld [vmem:[%s6949_s4 + $0xe0] ss:$16 sps:$4 sm:$0xff]  }
  0x21   :  { %4626 = vmatpush3.bf16.msra.mxu0 %v4623_v36  ;;  %1873 = vmatpush1.bf16.msra.mxu1 %v4746_v17  ;;  %v4806_v9 = vld [vmem:[%s6949_s4 + $0x180] ss:$16 sps:$4 sm:$0xff]   ;;  %v4809_v10 = vld [vmem:[%s6949_s4 + $0x188] ss:$16 sps:$4 sm:$0xff]   ;;  %v4814_v17 = vld [vmem:[%s6949_s4 + $0x1a4] ss:$16 sps:$4 sm:$0xff]  }
  0x22   :  { %2094 = vmatprep.subr.bf16.mxu0 %v4739_v12  ;;  %1874 = vmatprep.subr.bf16.mxu1 %v4754_v22  ;;  %v4817_v18 = vld [vmem:[%s6949_s4 + $0x1ac] ss:$16 sps:$4 sm:$0xff]  }
  0x23   :  { %4473 = vmatmul.mubr.msk.f32.gmra.mrb[14].mxu1 %vm92_vm0, %v82_v43  ;;  %v4779_v43 = vld [vmem:[%s6949_s4 + $0xe8] ss:$16 sps:$4 sm:$0xff]  }
  0x24   :  { %4520 = vmatmul.mubr.f32.vlgmr.msra.gmra.mrb[0].mxu0 %v28_v41  ;;  %4475 = vmatprep.mubr.msk.f32.mxu1 %vm92_vm0, %v83_v44  ;;  %v4781_v41 = vld [vmem:[%s6949_s4 + $0xec] ss:$16 sps:$4 sm:$0xff]   ;;  %v4784_v44 = vld [vmem:[%s6949_s4 + $0x104] ss:$16 sps:$4 sm:$0xff]  }
  0x25   :  { %4522 = vmatprep.mubr.f32.mxu0 %v29_v42  ;;  %2095 = vmatpush1.bf16.msra.mxu0 %v4737_v11 }
  0x26   :  { %2096 = vmatprep.subr.bf16.mxu0 %v4745_v16  ;;  %1875 = vmatpush1.bf16.msra.mxu1 %v4752_v21  ;;  %v4815_v21 = vld [vmem:[%s6949_s4 + $0x1a8] ss:$16 sps:$4 sm:$0xff]  }
  0x27   :  { %4476 = vmatmul.mubr.msk.f32.gmra.mrb[16].mxu1 %vm92_vm0, %v84_v47  ;;  %1876 = vmatprep.subr.bf16.mxu1 %v4760_v26  ;;  %v4782_v47 = vld [vmem:[%s6949_s4 + $0x100] ss:$16 sps:$4 sm:$0xff]  }
  0x28   :  { %4523 = vmatmul.mubr.f32.gmra.mrb[2].mxu0 %v30_v45  ;;  %4478 = vmatprep.mubr.msk.f32.mxu1 %vm92_vm0, %v85_v48 }
  0x29   :  { %4525 = vmatprep.mubr.f32.mxu0 %v31_v46  ;;  %2097 = vmatpush1.bf16.msra.mxu0 %v4743_v15  ;;  %v4787_v46 = vld [vmem:[%s6949_s4 + $0x10c] ss:$16 sps:$4 sm:$0xff]  }
  0x2a   :  { %2098 = vmatprep.subr.bf16.mxu0 %v4751_v20  ;;  %1877 = vmatpush1.bf16.msra.mxu1 %v4758_v25  ;;  %v4812_v20 = vld [vmem:[%s6949_s4 + $0x1a0] ss:$16 sps:$4 sm:$0xff]  }
  0x2b   :  { %4479 = vmatmul.mubr.msk.f32.gmra.mrb[18].mxu1 %vm92_vm0, %v86_v51  ;;  %1878 = vmatprep.subr.bf16.mxu1 %v4766_v30  ;;  %v4820_v30 = vld [vmem:[%s6949_s4 + $0x1c4] ss:$16 sps:$4 sm:$0xff]  }
  0x2c   :  { %4526 = vmatmul.mubr.f32.gmra.mrb[4].mxu0 %v32_v49  ;;  %4481 = vmatprep.mubr.msk.f32.mxu1 %vm92_vm0, %v87_v52  ;;  %v4785_v49 = vld [vmem:[%s6949_s4 + $0x108] ss:$16 sps:$4 sm:$0xff]   ;;  %v4793_v52 = vld [vmem:[%s6949_s4 + $0x12c] ss:$16 sps:$4 sm:$0xff]  }
  0x2d   :  { %4528 = vmatprep.mubr.f32.mxu0 %v33_v50  ;;  %2099 = vmatpush1.bf16.msra.mxu0 %v4749_v19  ;;  %v4790_v50 = vld [vmem:[%s6949_s4 + $0x124] ss:$16 sps:$4 sm:$0xff]  }
  0x2e   :  { %2100 = vmatprep.subr.bf16.mxu0 %v4757_v24  ;;  %1879 = vmatpush1.bf16.msra.mxu1 %v4764_v29 }
  0x2f   :  { %4482 = vmatmul.mubr.msk.f32.gmra.mrb[20].mxu1 %vm92_vm0, %v88_v55  ;;  %1880 = vmatprep.subr.bf16.mxu1 %v4772_v33  ;;  %v4791_v55 = vld [vmem:[%s6949_s4 + $0x128] ss:$16 sps:$4 sm:$0xff]   ;;  %v4818_v33 = vld [vmem:[%s6949_s4 + $0x1c0] ss:$16 sps:$4 sm:$0xff]  }
  0x30   :  { %4529 = vmatmul.mubr.f32.gmra.mrb[6].mxu0 %v34_v53  ;;  %4484 = vmatprep.mubr.msk.f32.mxu1 %vm92_vm0, %v89_v56  ;;  %v4788_v53 = vld [vmem:[%s6949_s4 + $0x120] ss:$16 sps:$4 sm:$0xff]  }
  0x31   :  { %4531 = vmatprep.mubr.f32.mxu0 %v35_v54  ;;  %2101 = vmatpush1.bf16.msra.mxu0 %v4755_v23 }
  0x32   :  { %2102 = vmatprep.subr.bf16.mxu0 %v4763_v28  ;;  %1881 = vmatpush1.bf16.msra.mxu1 %v4770_v37 }
  0x33   :  { %4485 = vmatmul.mubr.msk.f32.gmra.mrb[22].mxu1 %vm92_vm0, %v90_v59  ;;  %1882 = vmatprep.subr.bf16.mxu1 %v4778_v39  ;;  %v4796_v59 = vld [vmem:[%s6949_s4 + $0x144] ss:$16 sps:$4 sm:$0xff]  }
  0x34   :  { %4532 = vmatmul.mubr.f32.gmra.mrb[8].mxu0 %v36_v57 }
  0x35   :  { %4534 = vmatprep.mubr.f32.mxu0 %v37_v58  ;;  %2103 = vmatpush1.bf16.msra.mxu0 %v4761_v27 }
  0x36   :  { %2104 = vmatprep.subr.bf16.mxu0 %v4769_v32  ;;  %1883 = vmatpush1.bf16.msra.mxu1 %v4776_v40 }
  0x37   :  { %1884 = vmatprep.subr.bf16.mxu1 %v4784_v44  ;;  %v4829_v44 = vld [vmem:[%s6949_s4 + $0x1ec] ss:$16 sps:$4 sm:$0xff]  }
  0x38   :  { %4535 = vmatmul.mubr.f32.gmra.mrb[10].mxu0 %v38_v60  ;;  %v4799_v60 = vld [vmem:[%s6949_s4 + $0x14c] ss:$16 sps:$4 sm:$0xff]  }
  0x39   :  { %4537 = vmatprep.mubr.f32.mxu0 %v39_v61  ;;  %2105 = vmatpush1.bf16.msra.mxu0 %v4767_v31  ;;  %v4794_v61 = vld [vmem:[%s6949_s4 + $0x140] ss:$16 sps:$4 sm:$0xff]   ;;  %v4823_v31 = vld [vmem:[%s6949_s4 + $0x1cc] ss:$16 sps:$4 sm:$0xff]  }
  0x3a   :  { %2106 = vmatprep.subr.bf16.mxu0 %v4775_v34  ;;  %1885 = vmatpush1.bf16.msra.mxu1 %v4782_v47  ;;  %v4821_v34 = vld [vmem:[%s6949_s4 + $0x1c8] ss:$16 sps:$4 sm:$0xff]  }
  0x3b   :  { %1886 = vmatprep.subr.bf16.mxu1 %v4790_v50 }
  0x3c   :  { %4538 = vmatmul.mubr.f32.gmra.mrb[12].mxu0 %v40_v62  ;;  %v4797_v62 = vld [vmem:[%s6949_s4 + $0x148] ss:$16 sps:$4 sm:$0xff]  }
  0x3d   :  { %4540 = vmatprep.mubr.f32.mxu0 %v41_v63  ;;  %2107 = vmatpush1.bf16.msra.mxu0 %v4773_v38 }
  0x3e   :  { %2108 = vmatprep.subr.bf16.mxu0 %v4781_v41  ;;  %1887 = vmatpush1.bf16.msra.mxu1 %v4788_v53 }
  0x3f   :  { %1888 = vmatprep.subr.bf16.mxu1 %v4796_v59 }
  0x40   :  { %4541 = vmatmul.mubr.f32.gmra.mrb[14].mxu0 %v42_v0 }
  0x41   :  { %4543 = vmatprep.mubr.f32.mxu0 %v43_v1  ;;  %2109 = vmatpush1.bf16.msra.mxu0 %v4779_v43  ;;  %v4802_v1 = vld [vmem:[%s6949_s4 + $0x164] ss:$16 sps:$4 sm:$0xff]  }
  0x42   :  { %2110 = vmatprep.subr.bf16.mxu0 %v4787_v46  ;;  %1889 = vmatpush1.bf16.msra.mxu1 %v4794_v61  ;;  %v4826_v43 = vld [vmem:[%s6949_s4 + $0x1e4] ss:$16 sps:$4 sm:$0xff]   ;;  %v4827_v46 = vld [vmem:[%s6949_s4 + $0x1e8] ss:$16 sps:$4 sm:$0xff]  }
  0x43   :  { %1890 = vmatprep.subr.bf16.mxu1 %v4802_v1 }
  0x44   :  { %4544 = vmatmul.mubr.f32.gmra.mrb[16].mxu0 %v44_v2  ;;  %v4805_v2 = vld [vmem:[%s6949_s4 + $0x16c] ss:$16 sps:$4 sm:$0xff]  }
  0x45   :  { %4546 = vmatprep.mubr.f32.mxu0 %v45_v3  ;;  %2111 = vmatpush1.bf16.msra.mxu0 %v4785_v49  ;;  %v4800_v3 = vld [vmem:[%s6949_s4 + $0x160] ss:$16 sps:$4 sm:$0xff]  }
  0x46   :  { %2112 = vmatprep.subr.bf16.mxu0 %v4793_v52  ;;  %1891 = vmatpush1.bf16.msra.mxu1 %v4800_v3 }
  0x48   :  { %4547 = vmatmul.mubr.f32.gmra.mrb[18].mxu0 %v46_v4  ;;  %v4803_v4 = vld [vmem:[%s6949_s4 + $0x168] ss:$16 sps:$4 sm:$0xff]  }
  0x49   :  { %4549 = vmatprep.mubr.f32.mxu0 %v47_v5  ;;  %2113 = vmatpush1.bf16.msra.mxu0 %v4791_v55 }
  0x4a   :  { %2114 = vmatprep.subr.bf16.mxu0 %v4799_v60 }
  0x4c   :  { %4550 = vmatmul.mubr.f32.gmra.mrb[20].mxu0 %v48_v6 }
  0x4d   :  { %4552 = vmatprep.mubr.f32.mxu0 %v49_v7  ;;  %2115 = vmatpush1.bf16.msra.mxu0 %v4797_v62  ;;  %v4808_v7 = vld [vmem:[%s6949_s4 + $0x184] ss:$16 sps:$4 sm:$0xff]  }
  0x4e   :  { %2116 = vmatprep.subr.bf16.mxu0 %v4805_v2  ;;  %1892 = vmatprep.subr.bf16.mxu1 %v4808_v7 }
  0x4f   :  { %1893 = vmatpush1.bf16.msra.mxu1 %v4806_v9 }
  0x50   :  { %4553 = vmatmul.mubr.f32.gmra.mrb[22].mxu0 %v50_v8  ;;  %v4811_v8 = vld [vmem:[%s6949_s4 + $0x18c] ss:$16 sps:$4 sm:$0xff]   ;;  %1894 = vmatprep.subr.bf16.mxu1 %v4814_v17 }
  0x51   :  { %2117 = vmatpush1.bf16.msra.mxu0 %v4803_v4 }
  0x52   :  { %2118 = vmatprep.subr.bf16.mxu0 %v4811_v8 }
  0x53   :  { %1895 = vmatpush1.bf16.msra.mxu1 %v4812_v20 }
  0x54   :  { %1896 = vmatprep.subr.bf16.mxu1 %v4820_v30 }
  0x55   :  { %2119 = vmatpush1.bf16.msra.mxu0 %v4809_v10 }
  0x56   :  { %2120 = vmatprep.subr.bf16.mxu0 %v4817_v18 }
  0x57   :  { %1897 = vmatpush1.bf16.msra.mxu1 %v4818_v33 }
  0x58   :  { %1898 = vmatprep.subr.bf16.mxu1 %v4826_v43 }
  0x59   :  { %2121 = vmatpush1.bf16.msra.mxu0 %v4815_v21 }
  0x5a   :  { %2122 = vmatprep.subr.bf16.mxu0 %v4823_v31 }
  0x5d   :  { %2123 = vmatpush1.bf16.msra.mxu0 %v4821_v34 }
  0x5e   :  { %2124 = vmatprep.subr.bf16.mxu0 %v4829_v44 }
  0x61   :  { %2125 = vmatpush1.bf16.msra.mxu0 %v4827_v46 }
  0xda   :  { %v5314_v35 = vpop.f32.mrb[0].mxu1 }
  0xdb   :  { %v5316_v36 = vpop.f32.mrb[1].mxu1 }
  0xde   :  { %v5333_v42 = vpop.f32.mrb[2].mxu1 }
  0xdf   :  { %v5341_v45 = vpop.f32.mrb[3].mxu1 }
  0xe2   :  { %v5349_v48 = vpop.f32.mrb[4].mxu1 }
  0xe3   :  { %v5357_v51 = vpop.f32.mrb[5].mxu1 }
  0xe6   :  { %v5365_v54 = vpop.f32.mrb[6].mxu1 }
  0xe7   :  { %v5370_v56 = vpop.f32.mrb[7].mxu1 }
  0xea   :  { %v5372_v57 = vpop.f32.mrb[8].mxu1 }
  0xeb   :  { %v5374_v58 = vpop.f32.mrb[9].mxu1 }
  0xee   :  { %v5388_v63 = vpop.f32.mrb[10].mxu1 }
  0xef   :  { %v5390_v0 = vpop.f32.mrb[11].mxu1 }
  0xf2   :  { %v5404_v5 = vpop.f32.mrb[12].mxu1 }
  0xf3   :  { %v5406_v6 = vpop.f32.mrb[13].mxu1 }
  0xf6   :  { %v5421_v14 = vpop.f32.mrb[14].mxu1 }
  0xf7   :  { %v4521_v11 = vpop.f32.mrb[0].mxu0  ;;  %v5424_v16 = vpop.f32.mrb[15].mxu1 }
  0xf8   :  { %v422_v12 = vadd.f32 %v4521_v11, %v5314_v35  ;;  %v416_v13 = vpop.f32.mrb[1].mxu0 }
  0xf9   :  { %v417_v15 = vadd.f32 %v416_v13, %v5316_v36 }
  0xfa   :  { %v5432_v19 = vclamps-f32 %v422_v12, 1.0  ;;  %v5445_v26 = vpop.f32.mrb[16].mxu1 }
  0xfb   :  { %v5440_v22 = vclamps-f32 %v417_v15, 1.0  ;;  %v4524_v23 = vpop.f32.mrb[2].mxu0  ;;  %v5451_v29 = vpop.f32.mrb[17].mxu1 }
  0xfc   :  { %v432_v24 = vadd.f32 %v4524_v23, %v5333_v42  ;;  %730 = vrot.lane.b32.xlu0 %v5432_v19, %s4974_s11  ;;  %v426_v25 = vpop.f32.mrb[3].mxu0  ;;  %v609_v35 = vrot.slane %v5432_v19, 7 }
  0xfd   :  { %v427_v27 = vadd.f32 %v426_v25, %v5341_v45  ;;  %728 = vrot.lane.b32.xlu1 %v5440_v22, %s4974_s11  ;;  %v608_v28 = vrot.slane %v5440_v22, 7  ;;  %v4824_v45 = vld [vmem:[%s6949_s4 + $0x1e0] ss:$16 sps:$4 sm:$0xff]  }
  0xfe   :  { %v5459_v32 = vclamps-f32 %v432_v24, 1.0  ;;  %v5472_v40 = vpop.f32.mrb[18].mxu1  ;;  %1899 = vmatpush1.bf16.msra.mxu1 %v4824_v45 }
  0xff   :  { %v4527_v36 = vpop.f32.mrb[4].mxu0  ;;  %v5468_v37 = vclamps-f32 %v427_v27, 1.0  ;;  %v5477_v42 = vpop.f32.mrb[19].mxu1  ;;  %v610_v47 = vsel %vm607_vm1, %v608_v28, %v609_v35 }
 0x100   :  { %v442_v38 = vadd.f32 %v4527_v36, %v5349_v48  ;;  %v436_v39 = vpop.f32.mrb[5].mxu0  ;;  %648 = vrot.lane.b32.xlu0 %v608_v28, %s4974_s11  ;;  %v613_v60 = vrot.slane %v5459_v32, 7 }
 0x101   :  { %v437_v41 = vadd.f32 %v436_v39, %v5357_v51  ;;  %734 = vrot.lane.b32.xlu1 %v5459_v32, %s4974_s11  ;;  %v611_v49 = vrot.slane %v5468_v37, 7 }
 0x102   :  { %v5495_v52 = vpop.f32.mrb[20].mxu1  ;;  %v5497_v53 = vclamps-f32 %v442_v38, 1.0 }
 0x103   :  { %v4530_v48 = vpop.f32.mrb[6].mxu0  ;;  %v5502_v59 = vpop.f32.mrb[21].mxu1  ;;  %v5505_v61 = vclamps-f32 %v437_v41, 1.0  ;;  %v4832_v41 = vld [vmem:[%s6949_s4 + $0x204] ss:$16 sps:$4 sm:$0xff]  }
 0x104   :  { %650 = vrot.lane.b32.xlu0 %v610_v47, %s4974_s11  ;;  %v452_v50 = vadd.f32 %v4530_v48, %v5365_v54  ;;  %v446_v51 = vpop.f32.mrb[7].mxu0  ;;  %v612_v54 = vsel %vm607_vm1, %v609_v35, %v611_v49  ;;  %1981 = vmatprep.subr.bf16.mxu1 %v4832_v41 }
 0x105   :  { %732 = vrot.lane.b32.xlu1 %v5468_v37, %s4974_s11  ;;  %v447_v55 = vadd.f32 %v446_v51, %v5370_v56  ;;  %v616_v56 = vrot.slane %v5497_v53, 7  ;;  %v614_v8 = vrot.slane %v5505_v61, 7 }
 0x106   :  { %v5510_v3 = vpop.f32.mrb[22].mxu1 }
 0x107   :  { %v4533_v62 = vpop.f32.mrb[8].mxu0  ;;  %v5515_v7 = vpop.f32.mrb[23].mxu1  ;;  %v617_v11 = vsel %vm607_vm1, %v614_v8, %v616_v56  ;;  %v5527_v15 = vclamps-f32 %v447_v55, 1.0  ;;  %v615_v17 = vsel %vm607_vm1, %v613_v60, %v614_v8 }
 0x108   :  { %654 = vrot.lane.b32.xlu0 %v613_v60, %s4974_s11  ;;  %v462_v1 = vadd.f32 %v4533_v62, %v5372_v57  ;;  %v456_v2 = vpop.f32.mrb[9].mxu0 }
 0x109   :  { %652 = vrot.lane.b32.xlu1 %v612_v54, %s4974_s11  ;;  %v457_v4 = vadd.f32 %v456_v2, %v5374_v58  ;;  %v5525_v58 = vclamps-f32 %v452_v50, 1.0  ;;  %v618_v24 = vrot.slane %v5527_v15, 7 }
 0x10b   :  { %v4536_v9 = vpop.f32.mrb[10].mxu0  ;;  %v619_v23 = vrot.slane %v5525_v58, 7  ;;  %v5544_v28 = vclamps-f32 %v457_v4, 1.0 }
 0x10c   :  { %736 = vrot.lane.b32.xlu0 %v5505_v61, %s4974_s11  ;;  %v472_v10 = vadd.f32 %v4536_v9, %v5388_v63  ;;  %v466_v57 = vpop.f32.mrb[11].mxu0 }
 0x10d   :  { %738 = vrot.lane.b32.xlu1 %v5497_v53, %s4974_s11  ;;  %v467_v12 = vadd.f32 %v466_v57, %v5390_v0  ;;  %v5535_v0 = vclamps-f32 %v462_v1, 1.0  ;;  %v620_v30 = vsel %vm607_vm1, %v618_v24, %v619_v23  ;;  %v621_v35 = vrot.slane %v5544_v28, 7 }
 0x10e   :  { %v5555_v39 = vclamps-f32 %v472_v10, 1.0 }
 0x10f   :  { %v4539_v13 = vpop.f32.mrb[12].mxu0  ;;  %v623_v31 = vrot.slane %v5535_v0, 7  ;;  %v5566_v43 = vclamps-f32 %v467_v12, 1.0 }
 0x110   :  { %658 = vrot.lane.b32.xlu0 %v617_v11, %s4974_s11  ;;  %v482_v18 = vadd.f32 %v4539_v13, %v5404_v5  ;;  %v476_v63 = vpop.f32.mrb[13].mxu0 }
 0x111   :  { %656 = vrot.lane.b32.xlu1 %v615_v17, %s4974_s11  ;;  %v477_v20 = vadd.f32 %v476_v63, %v5406_v6  ;;  %v624_v48 = vrot.slane %v5566_v43, 7 }
 0x112   :  { %v5583_v60 = vclamps-f32 %v482_v18, 1.0 }
 0x113   :  { %v4542_v21 = vpop.f32.mrb[14].mxu0  ;;  %v625_v62 = vsel %vm607_vm1, %v623_v31, %v624_v48 }
 0x114   :  { %742 = vrot.lane.b32.xlu0 %v5525_v58, %s4974_s11  ;;  %v492_v25 = vadd.f32 %v4542_v21, %v5421_v14  ;;  %v486_v27 = vpop.f32.mrb[15].mxu0  ;;  %v629_v54 = vrot.slane %v5583_v60, 7 }
 0x115   :  { %740 = vrot.lane.b32.xlu1 %v5527_v15, %s4974_s11  ;;  %v487_v5 = vadd.f32 %v486_v27, %v5424_v16 }
 0x116   :  { %v5591_v1 = vclamps-f32 %v492_v25, 1.0 }
 0x117   :  { %v4545_v6 = vpop.f32.mrb[16].mxu0 }
 0x118   :  { %660 = vrot.lane.b32.xlu0 %v618_v24, %s4974_s11  ;;  %v502_v33 = vadd.f32 %v4545_v6, %v5445_v26  ;;  %v496_v34 = vpop.f32.mrb[17].mxu0  ;;  %v633_v4 = vrot.slane %v5591_v1, 7 }
 0x119   :  { %662 = vrot.lane.b32.xlu1 %v620_v30, %s4974_s11  ;;  %v497_v14 = vadd.f32 %v496_v34, %v5451_v29  ;;  %v4835_v29 = vld [vmem:[%s6949_s4 + $0x20c] ss:$16 sps:$4 sm:$0xff]  }
 0x11a   :  { %2207 = vmatprep.subr.bf16.mxu0 %v4835_v29  ;;  %v5606_v8 = vclamps-f32 %v502_v33, 1.0 }
 0x11b   :  { %v4548_v36 = vpop.f32.mrb[18].mxu0  ;;  %v5610_v9 = vclamps-f32 %v497_v14, 1.0 }
 0x11c   :  { %666 = vrot.lane.b32.xlu0 %v623_v31, %s4974_s11  ;;  %v512_v16 = vadd.f32 %v4548_v36, %v5472_v40  ;;  %v506_v38 = vpop.f32.mrb[19].mxu0  ;;  %v622_v40 = vsel %vm607_vm1, %v619_v23, %v621_v35  ;;  %v636_v57 = vrot.slane %v5606_v8, 7 }
 0x11d   :  { %746 = vrot.lane.b32.xlu1 %v5535_v0, %s4974_s11  ;;  %v507_v26 = vadd.f32 %v506_v38, %v5477_v42  ;;  %v626_v42 = vrot.slane %v5555_v39, 7  ;;  %v634_v11 = vrot.slane %v5610_v9, 7 }
 0x11e   :  { %v5623_v13 = vclamps-f32 %v512_v16, 1.0 }
 0x11f   :  { %v4551_v44 = vpop.f32.mrb[20].mxu0  ;;  %v637_v12 = vsel %vm607_vm1, %v634_v11, %v636_v57  ;;  %v5625_v17 = vclamps-f32 %v507_v26, 1.0  ;;  %v635_v18 = vsel %vm607_vm1, %v633_v4, %v634_v11 }
 0x120   :  { %664 = vrot.lane.b32.xlu0 %v622_v40, %s4974_s11  ;;  %v522_v45 = vadd.f32 %v4551_v44, %v5495_v52  ;;  %v516_v46 = vpop.f32.mrb[21].mxu0  ;;  %v627_v52 = vsel %vm607_vm1, %v624_v48, %v626_v42  ;;  %v639_v63 = vrot.slane %v5623_v13, 7 }
 0x121   :  { %744 = vrot.lane.b32.xlu1 %v5544_v28, %s4974_s11  ;;  %v517_v47 = vadd.f32 %v516_v46, %v5502_v59  ;;  %v5585_v59 = vclamps-f32 %v477_v20, 1.0  ;;  %v638_v21 = vrot.slane %v5625_v17, 7 }
 0x122   :  { %v5631_v20 = vclamps-f32 %v522_v45, 1.0 }
 0x123   :  { %v4554_v49 = vpop.f32.mrb[22].mxu0  ;;  %v628_v2 = vrot.slane %v5585_v59, 7  ;;  %v5638_v23 = vclamps-f32 %v517_v47, 1.0  ;;  %v640_v24 = vsel %vm607_vm1, %v638_v21, %v639_v63 }
 0x124   :  { %748 = vrot.lane.b32.xlu0 %v5566_v43, %s4974_s11  ;;  %v532_v50 = vadd.f32 %v4554_v49, %v5510_v3  ;;  %v526_v51 = vpop.f32.mrb[23].mxu0  ;;  %v5598_v3 = vclamps-f32 %v487_v5, 1.0  ;;  %v643_v25 = vrot.slane %v5631_v20, 7 }
 0x125   :  { %750 = vrot.lane.b32.xlu1 %v5555_v39, %s4974_s11  ;;  %v527_v55 = vadd.f32 %v526_v51, %v5515_v7  ;;  %v630_v56 = vsel %vm607_vm1, %v628_v2, %v629_v54  ;;  %v641_v5 = vrot.slane %v5638_v23, 7 }
 0x126   :  { %v631_v7 = vrot.slane %v5598_v3, 7  ;;  %v5643_v27 = vclamps-f32 %v532_v50, 1.0 }
 0x127   :  { %v5647_v6 = vclamps-f32 %v527_v55, 1.0  ;;  %v642_v33 = vsel %vm607_vm1, %v639_v63, %v641_v5 }
 0x128   :  { %670 = vrot.lane.b32.xlu0 %v627_v52, %s4974_s11  ;;  %v632_v10 = vsel %vm607_vm1, %v629_v54, %v631_v7  ;;  %v646_v30 = vrot.slane %v5643_v27, 7 }
 0x129   :  { %668 = vrot.lane.b32.xlu1 %v625_v62, %s4974_s11  ;;  %v644_v31 = vrot.slane %v5647_v6, 7 }
 0x12b   :  { %v647_v34 = vsel %vm607_vm1, %v644_v31, %v646_v30  ;;  %v645_v14 = vsel %vm607_vm1, %v643_v25, %v644_v31 }
 0x12c   :  { %754 = vrot.lane.b32.xlu0 %v5583_v60, %s4974_s11 }
 0x12d   :  { %752 = vrot.lane.b32.xlu1 %v5585_v59, %s4974_s11 }
 0x130   :  { %672 = vrot.lane.b32.xlu0 %v628_v2, %s4974_s11 }
 0x131   :  { %674 = vrot.lane.b32.xlu1 %v630_v56, %s4974_s11 }
 0x134   :  { %678 = vrot.lane.b32.xlu0 %v633_v4, %s4974_s11 }
 0x135   :  { %758 = vrot.lane.b32.xlu1 %v5591_v1, %s4974_s11 }
 0x138   :  { %676 = vrot.lane.b32.xlu0 %v632_v10, %s4974_s11 }
 0x139   :  { %756 = vrot.lane.b32.xlu1 %v5598_v3, %s4974_s11 }
 0x13c   :  { %760 = vrot.lane.b32.xlu0 %v5610_v9, %s4974_s11 }
 0x13d   :  { %762 = vrot.lane.b32.xlu1 %v5606_v8, %s4974_s11 }
 0x140   :  { %682 = vrot.lane.b32.xlu0 %v637_v12, %s4974_s11 }
 0x141   :  { %680 = vrot.lane.b32.xlu1 %v635_v18, %s4974_s11 }
 0x144   :  { %766 = vrot.lane.b32.xlu0 %v5623_v13, %s4974_s11 }
 0x145   :  { %764 = vrot.lane.b32.xlu1 %v5625_v17, %s4974_s11 }
 0x148   :  { %684 = vrot.lane.b32.xlu0 %v638_v21, %s4974_s11 }
 0x149   :  { %686 = vrot.lane.b32.xlu1 %v640_v24, %s4974_s11 }
 0x14c   :  { %690 = vrot.lane.b32.xlu0 %v643_v25, %s4974_s11 }
 0x14d   :  { %770 = vrot.lane.b32.xlu1 %v5631_v20, %s4974_s11 }
 0x150   :  { %688 = vrot.lane.b32.xlu0 %v642_v33, %s4974_s11 }
 0x151   :  { %768 = vrot.lane.b32.xlu1 %v5638_v23, %s4974_s11 }
 0x154   :  { %694 = vrot.lane.b32.xlu0 %v647_v34, %s4974_s11 }
 0x155   :  { %692 = vrot.lane.b32.xlu1 %v645_v14, %s4974_s11 }
 0x158   :  { %772 = vrot.lane.b32.xlu0 %v5647_v6, %s4974_s11 }
 0x159   :  { %774 = vrot.lane.b32.xlu1 %v5643_v27, %s4974_s11 }
 0x16e   :  { %v731_v35 = vpop.permute.xlu0 %730 }
 0x16f   :  { %v729_v36 = vpop.permute.xlu1 %728 }
 0x172   :  { %v649_v16 = vpop.permute.xlu0 %648 }
 0x173   :  { %v720_v38 = vsel %vm607_vm1, 0.0, %v649_v16  ;;  %v735_v26 = vpop.permute.xlu1 %734  ;;  %v4833_v16 = vld [vmem:[%s6949_s4 + $0x208] ss:$16 sps:$4 sm:$0xff]  }
 0x174   :  { %v801_v41 = vsel %vm800_vm2, %v720_v38, %v729_v36 }
 0x175   :  { %v825_v29 = vmul.f32 0.97, %v801_v41 }
 0x176   :  { %v651_v40 = vpop.permute.xlu0 %650 }
 0x177   :  { %v802_v44 = vsel %vm800_vm2, %v651_v40, %v731_v35  ;;  %v733_v45 = vpop.permute.xlu1 %732  ;;  %v849_v46 = vsub.f32 %v5440_v22, %v825_v29  ;;  %v4838_v29 = vld [vmem:[%s6949_s4 + $0x224] ss:$16 sps:$4 sm:$0xff]   ;;  %v4841_v40 = vld [vmem:[%s6949_s4 + $0x22c] ss:$16 sps:$4 sm:$0xff]  }
 0x178   :  { %v826_v42 = vmul.f32 0.97, %v802_v44 }
 0x179   :  { %v955_v51 = vrot.slane %v849_v46, 2  ;;  %v1012_v2 = vrot.slane %v849_v46, 3  ;;  %v898_v12 = vrot.slane %v849_v46, 1 }
 0x17a   :  { %v850_v47 = vsub.f32 %v5432_v19, %v826_v42  ;;  %v655_v48 = vpop.permute.xlu0 %654 }
 0x17b   :  { %v721_v49 = vsel %vm607_vm1, 0.0, %v655_v48  ;;  %v653_v50 = vpop.permute.xlu1 %652 }
 0x17c   :  { %v956_v52 = vrot.slane %v850_v47, 2  ;;  %v804_v55 = vsel %vm800_vm2, %v721_v49, %v735_v26  ;;  %v803_v62 = vsel %vm800_vm2, %v653_v50, %v733_v45  ;;  %v1013_v56 = vrot.slane %v850_v47, 3 }
 0x17d   :  { %v827_v54 = vmul.f32 0.97, %v803_v62  ;;  %v828_v4 = vmul.f32 0.97, %v804_v55  ;;  %v899_v7 = vrot.slane %v850_v47, 1  ;;  %v1068_v41 = vpack.c.bf16 %v850_v47, %v849_v46 }
 0x17e   :  { %v737_v22 = vpop.permute.xlu0 %736  ;;  %v957_v19 = vsel %vm954_vm4, %v955_v51, %v956_v52  ;;  %v1014_v11 = vsel %vm1011_vm3, %v1012_v2, %v1013_v56  ;;  %v4836_v46 = vld [vmem:[%s6949_s4 + $0x220] ss:$16 sps:$4 sm:$0xff]   ;;  %v4839_v47 = vld [vmem:[%s6949_s4 + $0x228] ss:$16 sps:$4 sm:$0xff]   ;;  %v4847_v62 = vld [vmem:[%s6949_s4 + $0x24c] ss:$16 sps:$4 sm:$0xff]  }
 0x17f   :  { %v851_v10 = vsub.f32 %v5468_v37, %v827_v54  ;;  %v739_v57 = vpop.permute.xlu1 %738  ;;  %v5678_v24 = vsub.f32 %v5459_v32, %v828_v4  ;;  %v900_v5 = vsel %vm897_vm5, %v898_v12, %v899_v7  ;;  %v4830_v32 = vld [vmem:[%s6949_s4 + $0x200] ss:$16 sps:$4 sm:$0xff]  }
 0x181   :  { %v901_v18 = vrot.slane %v851_v10, 1  ;;  %v958_v63 = vrot.slane %v851_v10, 2  ;;  %v1015_v21 = vrot.slane %v851_v10, 3  ;;  %v903_v51 = vrot.slane %v5678_v24, 1 }
 0x182   :  { %v659_v25 = vpop.permute.xlu0 %658 }
 0x183   :  { %v806_v30 = vsel %vm800_vm2, %v659_v25, %v739_v57  ;;  %v657_v31 = vpop.permute.xlu1 %656  ;;  %v902_v33 = vsel %vm897_vm5, %v899_v7, %v901_v18  ;;  %v1016_v37 = vsel %vm1011_vm3, %v1013_v56, %v1015_v21  ;;  %v959_v34 = vsel %vm954_vm4, %v956_v52, %v958_v63  ;;  %v4845_v25 = vld [vmem:[%s6949_s4 + $0x248] ss:$16 sps:$4 sm:$0xff]  }
 0x184   :  { %v830_v14 = vmul.f32 0.97, %v806_v30  ;;  %v805_v35 = vsel %vm800_vm2, %v657_v31, %v737_v22  ;;  %v1069_v36 = vpack.c.bf16 %v902_v33, %v900_v5  ;;  %v5692_v38 = vpack.c.bf16 %v1016_v37, %v1014_v11  ;;  %v4850_v5 = vld [vmem:[%s6949_s4 + $0x264] ss:$16 sps:$4 sm:$0xff]   ;;  %v4853_v33 = vld [vmem:[%s6949_s4 + $0x26c] ss:$16 sps:$4 sm:$0xff]  }
 0x185   :  { %v829_v26 = vmul.f32 0.97, %v805_v35  ;;  %v5700_v44 = vpack.c.bf16 %v959_v34, %v957_v19  ;;  %v960_v7 = vrot.slane %v5678_v24, 2 }
 0x186   :  { %v854_v45 = vsub.f32 %v5497_v53, %v830_v14  ;;  %1900 = vmatprep.mubr.bf16.mxu1 %v1069_v36  ;;  %2126 = vmatprep.mubr.bf16.mxu0 %v1069_v36  ;;  %v743_v42 = vpop.permute.xlu0 %742  ;;  %v4844_v53 = vld [vmem:[%s6949_s4 + $0x244] ss:$16 sps:$4 sm:$0xff]  }
 0x187   :  { %v853_v48 = vsub.f32 %v5505_v61, %v829_v26  ;;  %v741_v49 = vpop.permute.xlu1 %740  ;;  %1901 = vmatmul.mubr.bf16.vlgmr.msra.gmra.mrb[24].mxu1 %v1068_v41  ;;  %2127 = vmatmul.mubr.bf16.vlgmr.msra.gmra.mrb[24].mxu0 %v1068_v41  ;;  %v1017_v61 = vrot.slane %v5678_v24, 3 }
 0x188   :  { %v906_v50 = vrot.slane %v854_v45, 1  ;;  %1982 = vmatpush1.bf16.msra.mxu1 %v4830_v32  ;;  %2208 = vmatpush1.bf16.msra.mxu0 %v4833_v16  ;;  %v1020_v52 = vrot.slane %v854_v45, 3  ;;  %v963_v56 = vrot.slane %v854_v45, 2  ;;  %v4859_v45 = vld [vmem:[%s6949_s4 + $0x28c] ss:$16 sps:$4 sm:$0xff]  }
 0x189   :  { %v904_v55 = vrot.slane %v853_v48, 1  ;;  %1983 = vmatprep.subr.bf16.mxu1 %v4838_v29  ;;  %2209 = vmatprep.subr.bf16.mxu0 %v4841_v40  ;;  %v1018_v54 = vrot.slane %v853_v48, 3  ;;  %v961_v2 = vrot.slane %v853_v48, 2  ;;  %v1072_v22 = vpack.c.bf16 %v853_v48, %v5678_v24  ;;  %v4842_v24 = vld [vmem:[%s6949_s4 + $0x240] ss:$16 sps:$4 sm:$0xff]  }
 0x18a   :  { %v661_v4 = vpop.permute.xlu0 %660  ;;  %v4848_v40 = vld [vmem:[%s6949_s4 + $0x260] ss:$16 sps:$4 sm:$0xff]  }
 0x18b   :  { %v722_v19 = vsel %vm607_vm1, 0.0, %v661_v4  ;;  %v663_v10 = vpop.permute.xlu1 %662  ;;  %v905_v57 = vsel %vm897_vm5, %v903_v51, %v904_v55  ;;  %v907_v11 = vsel %vm897_vm5, %v904_v55, %v906_v50  ;;  %v1019_v12 = vsel %vm1011_vm3, %v1017_v61, %v1018_v54  ;;  %v4854_v61 = vld [vmem:[%s6949_s4 + $0x280] ss:$16 sps:$4 sm:$0xff]  }
 0x18c   :  { %v807_v18 = vsel %vm800_vm2, %v722_v19, %v741_v49  ;;  %v808_v63 = vsel %vm800_vm2, %v663_v10, %v743_v42  ;;  %v1073_v21 = vpack.c.bf16 %v907_v11, %v905_v57  ;;  %1984 = vmatpush1.bf16.msra.mxu1 %v4836_v46  ;;  %2210 = vmatpush1.bf16.msra.mxu0 %v4839_v47  ;;  %v4860_v11 = vld [vmem:[%s6949_s4 + $0x2a0] ss:$16 sps:$4 sm:$0xff]  }
 0x18d   :  { %v831_v30 = vmul.f32 0.97, %v807_v18  ;;  %v832_v31 = vmul.f32 0.97, %v808_v63  ;;  %1985 = vmatprep.subr.bf16.mxu1 %v4844_v53  ;;  %2211 = vmatprep.subr.bf16.mxu0 %v4847_v62  ;;  %v1021_v37 = vsel %vm1011_vm3, %v1018_v54, %v1020_v52  ;;  %v962_v34 = vsel %vm954_vm4, %v960_v7, %v961_v2  ;;  %v4857_v52 = vld [vmem:[%s6949_s4 + $0x288] ss:$16 sps:$4 sm:$0xff]  }
 0x18e   :  { %1910 = vmatprep.mubr.bf16.mxu1 %v1073_v21  ;;  %2136 = vmatprep.mubr.bf16.mxu0 %v1073_v21  ;;  %v667_v14 = vpop.permute.xlu0 %666  ;;  %v5740_v35 = vpack.c.bf16 %v1021_v37, %v1019_v12  ;;  %v964_v36 = vsel %vm954_vm4, %v961_v2, %v963_v56  ;;  %v4862_v2 = vld [vmem:[%s6949_s4 + $0x2a4] ss:$16 sps:$4 sm:$0xff]   ;;  %v4865_v56 = vld [vmem:[%s6949_s4 + $0x2ac] ss:$16 sps:$4 sm:$0xff]   ;;  %v4863_v12 = vld [vmem:[%s6949_s4 + $0x2a8] ss:$16 sps:$4 sm:$0xff]  }
 0x18f   :  { %v5744_v32 = vsub.f32 %v5527_v15, %v831_v30  ;;  %v5747_v16 = vsub.f32 %v5525_v58, %v832_v31  ;;  %v747_v26 = vpop.permute.xlu1 %746  ;;  %1911 = vmatmul.mubr.bf16.gmra.mrb[28].mxu1 %v1072_v22  ;;  %2137 = vmatmul.mubr.bf16.gmra.mrb[28].mxu0 %v1072_v22  ;;  %v5749_v41 = vpack.c.bf16 %v964_v36, %v962_v34  ;;  %v723_v29 = vsel %vm607_vm1, 0.0, %v667_v14  ;;  %v4851_v15 = vld [vmem:[%s6949_s4 + $0x268] ss:$16 sps:$4 sm:$0xff]   ;;  %v4856_v58 = vld [vmem:[%s6949_s4 + $0x284] ss:$16 sps:$4 sm:$0xff]  }
 0x190   :  { %1986 = vmatpush1.bf16.msra.mxu1 %v4842_v24  ;;  %2212 = vmatpush1.bf16.msra.mxu0 %v4845_v25  ;;  %v810_v50 = vsel %vm800_vm2, %v723_v29, %v747_v26  ;;  %v4868_v18 = vld [vmem:[%s6949_s4 + $0x2c4] ss:$16 sps:$4 sm:$0xff]   ;;  %v4871_v63 = vld [vmem:[%s6949_s4 + $0x2cc] ss:$16 sps:$4 sm:$0xff]   ;;  %v4866_v31 = vld [vmem:[%s6949_s4 + $0x2c0] ss:$16 sps:$4 sm:$0xff]  }
 0x191   :  { %1987 = vmatprep.subr.bf16.mxu1 %v4850_v5  ;;  %2213 = vmatprep.subr.bf16.mxu0 %v4853_v33  ;;  %v1022_v48 = vrot.slane %v5744_v32, 3  ;;  %v1023_v49 = vrot.slane %v5747_v16, 3  ;;  %v965_v46 = vrot.slane %v5744_v32, 2  ;;  %v966_v47 = vrot.slane %v5747_v16, 2  ;;  %v4869_v33 = vld [vmem:[%s6949_s4 + $0x2c8] ss:$16 sps:$4 sm:$0xff]  }
 0x192   :  { %v665_v42 = vpop.permute.xlu0 %664  ;;  %v834_v4 = vmul.f32 0.97, %v810_v50  ;;  %v908_v7 = vrot.slane %v5744_v32, 1  ;;  %v909_v19 = vrot.slane %v5747_v16, 1  ;;  %v4872_v50 = vld [vmem:[%s6949_s4 + $0x2e0] ss:$16 sps:$4 sm:$0xff]  }
 0x193   :  { %v745_v51 = vpop.permute.xlu1 %744  ;;  %v1024_v55 = vsel %vm1011_vm3, %v1022_v48, %v1023_v49  ;;  %v967_v62 = vsel %vm954_vm4, %v965_v46, %v966_v47  ;;  %v1076_v48 = vpack.c.bf16 %v5747_v16, %v5744_v32 }
 0x194   :  { %v809_v53 = vsel %vm800_vm2, %v665_v42, %v745_v51  ;;  %1988 = vmatpush1.bf16.msra.mxu1 %v4848_v40  ;;  %2214 = vmatpush1.bf16.msra.mxu0 %v4851_v15  ;;  %v5800_v25 = vsub.f32 %v5535_v0, %v834_v4  ;;  %v910_v30 = vsel %vm897_vm5, %v908_v7, %v909_v19  ;;  %v4874_v0 = vld [vmem:[%s6949_s4 + $0x2e4] ss:$16 sps:$4 sm:$0xff]   ;;  %v4875_v51 = vld [vmem:[%s6949_s4 + $0x2e8] ss:$16 sps:$4 sm:$0xff]  }
 0x195   :  { %v833_v54 = vmul.f32 0.97, %v809_v53  ;;  %1989 = vmatprep.subr.bf16.mxu1 %v4856_v58  ;;  %2215 = vmatprep.subr.bf16.mxu0 %v4859_v45  ;;  %v4877_v58 = vld [vmem:[%s6949_s4 + $0x2ec] ss:$16 sps:$4 sm:$0xff]  }
 0x196   :  { %v749_v22 = vpop.permute.xlu0 %748  ;;  %v913_v16 = vrot.slane %v5800_v25, 1 }
 0x197   :  { %v857_v10 = vsub.f32 %v5544_v28, %v833_v54  ;;  %v751_v57 = vpop.permute.xlu1 %750 }
 0x198   :  { %1990 = vmatpush1.bf16.msra.mxu1 %v4854_v61  ;;  %2216 = vmatpush1.bf16.msra.mxu0 %v4857_v52  ;;  %v4883_v61 = vld [vmem:[%s6949_s4 + $0x30c] ss:$16 sps:$4 sm:$0xff]  }
 0x199   :  { %v911_v28 = vrot.slane %v857_v10, 1  ;;  %v968_v21 = vrot.slane %v857_v10, 2  ;;  %v1025_v24 = vrot.slane %v857_v10, 3  ;;  %1991 = vmatprep.subr.bf16.mxu1 %v4862_v2  ;;  %2217 = vmatprep.subr.bf16.mxu0 %v4865_v56  ;;  %v4881_v10 = vld [vmem:[%s6949_s4 + $0x308] ss:$16 sps:$4 sm:$0xff]  }
 0x19a   :  { %v671_v5 = vpop.permute.xlu0 %670 }
 0x19b   :  { %v812_v37 = vsel %vm800_vm2, %v671_v5, %v751_v57  ;;  %v669_v34 = vpop.permute.xlu1 %668  ;;  %v912_v14 = vsel %vm897_vm5, %v909_v19, %v911_v28  ;;  %v1026_v36 = vsel %vm1011_vm3, %v1023_v49, %v1025_v24  ;;  %v969_v26 = vsel %vm954_vm4, %v966_v47, %v968_v21  ;;  %v4878_v19 = vld [vmem:[%s6949_s4 + $0x300] ss:$16 sps:$4 sm:$0xff]  }
 0x19c   :  { %v836_v29 = vmul.f32 0.97, %v812_v37  ;;  %v811_v40 = vsel %vm800_vm2, %v669_v34, %v749_v22  ;;  %v1077_v15 = vpack.c.bf16 %v912_v14, %v910_v30  ;;  %1992 = vmatpush1.bf16.msra.mxu1 %v4860_v11  ;;  %2218 = vmatpush1.bf16.msra.mxu0 %v4863_v12  ;;  %v5820_v45 = vpack.c.bf16 %v1026_v36, %v1024_v55  ;;  %v4884_v14 = vld [vmem:[%s6949_s4 + $0x320] ss:$16 sps:$4 sm:$0xff]  }
 0x19d   :  { %v835_v42 = vmul.f32 0.97, %v811_v40  ;;  %1993 = vmatprep.subr.bf16.mxu1 %v4868_v18  ;;  %2219 = vmatprep.subr.bf16.mxu0 %v4871_v63  ;;  %v5824_v49 = vpack.c.bf16 %v969_v26, %v967_v62  ;;  %v1027_v62 = vrot.slane %v5800_v25, 3 }
 0x19e   :  { %v860_v46 = vsub.f32 %v5555_v39, %v836_v29  ;;  %1920 = vmatprep.mubr.bf16.mxu1 %v1077_v15  ;;  %2146 = vmatprep.mubr.bf16.mxu0 %v1077_v15  ;;  %v755_v47 = vpop.permute.xlu0 %754  ;;  %v4880_v39 = vld [vmem:[%s6949_s4 + $0x304] ss:$16 sps:$4 sm:$0xff]  }
 0x19f   :  { %v859_v53 = vsub.f32 %v5566_v43, %v835_v42  ;;  %v753_v32 = vpop.permute.xlu1 %752  ;;  %1921 = vmatmul.mubr.bf16.gmra.mrb[32].mxu1 %v1076_v48  ;;  %2147 = vmatmul.mubr.bf16.gmra.mrb[32].mxu0 %v1076_v48  ;;  %v970_v43 = vrot.slane %v5800_v25, 2  ;;  %v4892_v48 = vld [vmem:[%s6949_s4 + $0x344] ss:$16 sps:$4 sm:$0xff]  }
 0x1a0   :  { %v916_v52 = vrot.slane %v860_v46, 1  ;;  %v973_v55 = vrot.slane %v860_v46, 2  ;;  %1994 = vmatpush1.bf16.msra.mxu1 %v4866_v31  ;;  %2220 = vmatpush1.bf16.msra.mxu0 %v4869_v33  ;;  %v1030_v54 = vrot.slane %v860_v46, 3  ;;  %v4889_v31 = vld [vmem:[%s6949_s4 + $0x32c] ss:$16 sps:$4 sm:$0xff]  }
 0x1a1   :  { %v914_v2 = vrot.slane %v859_v53, 1  ;;  %1995 = vmatprep.subr.bf16.mxu1 %v4874_v0  ;;  %2221 = vmatprep.subr.bf16.mxu0 %v4877_v58  ;;  %v1028_v56 = vrot.slane %v859_v53, 3  ;;  %v971_v4 = vrot.slane %v859_v53, 2  ;;  %v1080_v7 = vpack.c.bf16 %v859_v53, %v5800_v25  ;;  %v4886_v25 = vld [vmem:[%s6949_s4 + $0x324] ss:$16 sps:$4 sm:$0xff]  }
 0x1a2   :  { %v673_v22 = vpop.permute.xlu0 %672  ;;  %v4887_v0 = vld [vmem:[%s6949_s4 + $0x328] ss:$16 sps:$4 sm:$0xff]  }
 0x1a3   :  { %v724_v57 = vsel %vm607_vm1, 0.0, %v673_v22  ;;  %v675_v11 = vpop.permute.xlu1 %674  ;;  %v915_v12 = vsel %vm897_vm5, %v913_v16, %v914_v2  ;;  %v917_v18 = vsel %vm897_vm5, %v914_v2, %v916_v52  ;;  %v1029_v63 = vsel %vm1011_vm3, %v1027_v62, %v1028_v56 }
 0x1a4   :  { %v813_v28 = vsel %vm800_vm2, %v724_v57, %v753_v32  ;;  %v814_v21 = vsel %vm800_vm2, %v675_v11, %v755_v47  ;;  %v1081_v24 = vpack.c.bf16 %v917_v18, %v915_v12  ;;  %1996 = vmatpush1.bf16.msra.mxu1 %v4872_v50  ;;  %2222 = vmatpush1.bf16.msra.mxu0 %v4875_v51  ;;  %v4899_v57 = vld [vmem:[%s6949_s4 + $0x368] ss:$16 sps:$4 sm:$0xff]   ;;  %v4904_v11 = vld [vmem:[%s6949_s4 + $0x384] ss:$16 sps:$4 sm:$0xff]  }
 0x1a5   :  { %v837_v5 = vmul.f32 0.97, %v813_v28  ;;  %v838_v30 = vmul.f32 0.97, %v814_v21  ;;  %1997 = vmatprep.subr.bf16.mxu1 %v4880_v39  ;;  %2223 = vmatprep.subr.bf16.mxu0 %v4883_v61  ;;  %v1031_v33 = vsel %vm1011_vm3, %v1028_v56, %v1030_v54  ;;  %v972_v37 = vsel %vm954_vm4, %v970_v43, %v971_v4  ;;  %v4890_v39 = vld [vmem:[%s6949_s4 + $0x340] ss:$16 sps:$4 sm:$0xff]  }
 0x1a6   :  { %1930 = vmatprep.mubr.bf16.mxu1 %v1081_v24  ;;  %2156 = vmatprep.mubr.bf16.mxu0 %v1081_v24  ;;  %v679_v34 = vpop.permute.xlu0 %678  ;;  %v5870_v36 = vpack.c.bf16 %v1031_v33, %v1029_v63  ;;  %v974_v26 = vsel %vm954_vm4, %v971_v4, %v973_v55  ;;  %v4893_v61 = vld [vmem:[%s6949_s4 + $0x348] ss:$16 sps:$4 sm:$0xff]   ;;  %v4898_v43 = vld [vmem:[%s6949_s4 + $0x364] ss:$16 sps:$4 sm:$0xff]   ;;  %v4901_v54 = vld [vmem:[%s6949_s4 + $0x36c] ss:$16 sps:$4 sm:$0xff]  }
 0x1a7   :  { %v5874_v29 = vsub.f32 %v5585_v59, %v837_v5  ;;  %v5877_v40 = vsub.f32 %v5583_v60, %v838_v30  ;;  %v725_v15 = vsel %vm607_vm1, 0.0, %v679_v34  ;;  %v759_v58 = vpop.permute.xlu1 %758  ;;  %1931 = vmatmul.mubr.bf16.gmra.mrb[36].mxu1 %v1080_v7  ;;  %2157 = vmatmul.mubr.bf16.gmra.mrb[36].mxu0 %v1080_v7  ;;  %v5880_v42 = vpack.c.bf16 %v974_v26, %v972_v37  ;;  %v4895_v60 = vld [vmem:[%s6949_s4 + $0x34c] ss:$16 sps:$4 sm:$0xff]  }
 0x1a8   :  { %1998 = vmatpush1.bf16.msra.mxu1 %v4878_v19  ;;  %2224 = vmatpush1.bf16.msra.mxu0 %v4881_v10  ;;  %v816_v53 = vsel %vm800_vm2, %v725_v15, %v759_v58  ;;  %v4896_v10 = vld [vmem:[%s6949_s4 + $0x360] ss:$16 sps:$4 sm:$0xff]  }
 0x1a9   :  { %1999 = vmatprep.subr.bf16.mxu1 %v4886_v25  ;;  %2225 = vmatprep.subr.bf16.mxu0 %v4889_v31  ;;  %v1032_v46 = vrot.slane %v5874_v29, 3  ;;  %v1033_v47 = vrot.slane %v5877_v40, 3  ;;  %v975_v50 = vrot.slane %v5874_v29, 2  ;;  %v976_v51 = vrot.slane %v5877_v40, 2 }
 0x1aa   :  { %v677_v59 = vpop.permute.xlu0 %676  ;;  %v840_v2 = vmul.f32 0.97, %v816_v53  ;;  %v918_v4 = vrot.slane %v5874_v29, 1  ;;  %v919_v22 = vrot.slane %v5877_v40, 1  ;;  %v1084_v58 = vpack.c.bf16 %v5877_v40, %v5874_v29  ;;  %v4908_v40 = vld [vmem:[%s6949_s4 + $0x3a0] ss:$16 sps:$4 sm:$0xff]  }
 0x1ab   :  { %v757_v32 = vpop.permute.xlu1 %756  ;;  %v1034_v52 = vsel %vm1011_vm3, %v1032_v46, %v1033_v47  ;;  %v977_v55 = vsel %vm954_vm4, %v975_v50, %v976_v51 }
 0x1ac   :  { %v815_v16 = vsel %vm800_vm2, %v677_v59, %v757_v32  ;;  %2000 = vmatpush1.bf16.msra.mxu1 %v4884_v14  ;;  %2226 = vmatpush1.bf16.msra.mxu0 %v4887_v0  ;;  %v5924_v28 = vsub.f32 %v5591_v1, %v840_v2  ;;  %v920_v24 = vsel %vm897_vm5, %v918_v4, %v919_v22  ;;  %v4902_v1 = vld [vmem:[%s6949_s4 + $0x380] ss:$16 sps:$4 sm:$0xff]   ;;  %v4905_v0 = vld [vmem:[%s6949_s4 + $0x388] ss:$16 sps:$4 sm:$0xff]  }
 0x1ad   :  { %v839_v62 = vmul.f32 0.97, %v815_v16  ;;  %2001 = vmatprep.subr.bf16.mxu1 %v4892_v48  ;;  %2227 = vmatprep.subr.bf16.mxu0 %v4895_v60  ;;  %v4910_v48 = vld [vmem:[%s6949_s4 + $0x3a4] ss:$16 sps:$4 sm:$0xff]   ;;  %v4913_v60 = vld [vmem:[%s6949_s4 + $0x3ac] ss:$16 sps:$4 sm:$0xff]  }
 0x1ae   :  { %v761_v56 = vpop.permute.xlu0 %760  ;;  %v923_v32 = vrot.slane %v5924_v28, 1  ;;  %v980_v2 = vrot.slane %v5924_v28, 2 }
 0x1af   :  { %v863_v7 = vsub.f32 %v5598_v3, %v839_v62  ;;  %v763_v19 = vpop.permute.xlu1 %762  ;;  %v4907_v3 = vld [vmem:[%s6949_s4 + $0x38c] ss:$16 sps:$4 sm:$0xff]  }
 0x1b0   :  { %2002 = vmatpush1.bf16.msra.mxu1 %v4890_v39  ;;  %2228 = vmatpush1.bf16.msra.mxu0 %v4893_v61  ;;  %v4919_v61 = vld [vmem:[%s6949_s4 + $0x3cc] ss:$16 sps:$4 sm:$0xff]  }
 0x1b1   :  { %v921_v12 = vrot.slane %v863_v7, 1  ;;  %v978_v18 = vrot.slane %v863_v7, 2  ;;  %v1035_v63 = vrot.slane %v863_v7, 3  ;;  %2003 = vmatprep.subr.bf16.mxu1 %v4898_v43  ;;  %2229 = vmatprep.subr.bf16.mxu0 %v4901_v54 }
 0x1b2   :  { %v683_v21 = vpop.permute.xlu0 %682 }
 0x1b3   :  { %v818_v25 = vsel %vm800_vm2, %v683_v21, %v763_v19  ;;  %v681_v5 = vpop.permute.xlu1 %680  ;;  %v922_v30 = vsel %vm897_vm5, %v919_v22, %v921_v12  ;;  %v1036_v31 = vsel %vm1011_vm3, %v1033_v47, %v1035_v63  ;;  %v979_v33 = vsel %vm954_vm4, %v976_v51, %v978_v18  ;;  %v4911_v51 = vld [vmem:[%s6949_s4 + $0x3a8] ss:$16 sps:$4 sm:$0xff]   ;;  %v4914_v12 = vld [vmem:[%s6949_s4 + $0x3c0] ss:$16 sps:$4 sm:$0xff]   ;;  %v4922_v63 = vld [vmem:[%s6949_s4 + $0x3e4] ss:$16 sps:$4 sm:$0xff]  }
 0x1b4   :  { %v842_v37 = vmul.f32 0.97, %v818_v25  ;;  %v817_v34 = vsel %vm800_vm2, %v681_v5, %v761_v56  ;;  %v1085_v14 = vpack.c.bf16 %v922_v30, %v920_v24  ;;  %2004 = vmatpush1.bf16.msra.mxu1 %v4896_v10  ;;  %2230 = vmatpush1.bf16.msra.mxu0 %v4899_v57  ;;  %v5938_v26 = vpack.c.bf16 %v1036_v31, %v1034_v52  ;;  %v4917_v18 = vld [vmem:[%s6949_s4 + $0x3c8] ss:$16 sps:$4 sm:$0xff]   ;;  %v4925_v21 = vld [vmem:[%s6949_s4 + $0x3ec] ss:$16 sps:$4 sm:$0xff]  }
 0x1b5   :  { %v841_v15 = vmul.f32 0.97, %v817_v34  ;;  %2005 = vmatprep.subr.bf16.mxu1 %v4904_v11  ;;  %2231 = vmatprep.subr.bf16.mxu0 %v4907_v3  ;;  %v5948_v59 = vpack.c.bf16 %v979_v33, %v977_v55 }
 0x1b6   :  { %v866_v46 = vsub.f32 %v5606_v8, %v842_v37  ;;  %1940 = vmatprep.mubr.bf16.mxu1 %v1085_v14  ;;  %2166 = vmatprep.mubr.bf16.mxu0 %v1085_v14  ;;  %v767_v47 = vpop.permute.xlu0 %766  ;;  %v4916_v8 = vld [vmem:[%s6949_s4 + $0x3c4] ss:$16 sps:$4 sm:$0xff]  }
 0x1b7   :  { %v865_v50 = vsub.f32 %v5610_v9, %v841_v15  ;;  %v765_v29 = vpop.permute.xlu1 %764  ;;  %1941 = vmatmul.mubr.bf16.gmra.mrb[40].mxu1 %v1084_v58  ;;  %2167 = vmatmul.mubr.bf16.gmra.mrb[40].mxu0 %v1084_v58  ;;  %v1037_v9 = vrot.slane %v5924_v28, 3 }
 0x1b8   :  { %v926_v53 = vrot.slane %v866_v46, 1  ;;  %2006 = vmatpush1.bf16.msra.mxu1 %v4902_v1  ;;  %2232 = vmatpush1.bf16.msra.mxu0 %v4905_v0  ;;  %v1040_v16 = vrot.slane %v866_v46, 3  ;;  %v983_v62 = vrot.slane %v866_v46, 2  ;;  %v4920_v1 = vld [vmem:[%s6949_s4 + $0x3e0] ss:$16 sps:$4 sm:$0xff]  }
 0x1b9   :  { %v924_v39 = vrot.slane %v865_v50, 1  ;;  %2007 = vmatprep.subr.bf16.mxu1 %v4910_v48  ;;  %2233 = vmatprep.subr.bf16.mxu0 %v4913_v60  ;;  %v1038_v52 = vrot.slane %v865_v50, 3  ;;  %v981_v55 = vrot.slane %v865_v50, 2  ;;  %v1088_v54 = vpack.c.bf16 %v865_v50, %v5924_v28  ;;  %v4923_v0 = vld [vmem:[%s6949_s4 + $0x3e8] ss:$16 sps:$4 sm:$0xff]  }
 0x1ba   :  { %v685_v43 = vpop.permute.xlu0 %684 }
 0x1bb   :  { %v726_v56 = vsel %vm607_vm1, 0.0, %v685_v43  ;;  %v687_v4 = vpop.permute.xlu1 %686  ;;  %v925_v22 = vsel %vm897_vm5, %v923_v32, %v924_v39  ;;  %v927_v7 = vsel %vm897_vm5, %v924_v39, %v926_v53  ;;  %v1039_v19 = vsel %vm1011_vm3, %v1037_v9, %v1038_v52 }
 0x1bc   :  { %v819_v10 = vsel %vm800_vm2, %v726_v56, %v765_v29  ;;  %v820_v57 = vsel %vm800_vm2, %v687_v4, %v767_v47  ;;  %v1089_v11 = vpack.c.bf16 %v927_v7, %v925_v22  ;;  %2008 = vmatpush1.bf16.msra.mxu1 %v4908_v40  ;;  %2234 = vmatpush1.bf16.msra.mxu0 %v4911_v51 }
 0x1bd   :  { %v843_v3 = vmul.f32 0.97, %v819_v10  ;;  %v844_v28 = vmul.f32 0.97, %v820_v57  ;;  %2009 = vmatprep.subr.bf16.mxu1 %v4916_v8  ;;  %2235 = vmatprep.subr.bf16.mxu0 %v4919_v61  ;;  %v1041_v24 = vsel %vm1011_vm3, %v1038_v52, %v1040_v16  ;;  %v982_v25 = vsel %vm954_vm4, %v980_v2, %v981_v55 }
 0x1be   :  { %1950 = vmatprep.mubr.bf16.mxu1 %v1089_v11  ;;  %2176 = vmatprep.mubr.bf16.mxu0 %v1089_v11  ;;  %v691_v5 = vpop.permute.xlu0 %690  ;;  %v5988_v30 = vpack.c.bf16 %v1041_v24, %v1039_v19  ;;  %v984_v31 = vsel %vm954_vm4, %v981_v55, %v983_v62 }
 0x1bf   :  { %v5992_v33 = vsub.f32 %v5625_v17, %v843_v3  ;;  %v5995_v37 = vsub.f32 %v5623_v13, %v844_v28  ;;  %v771_v34 = vpop.permute.xlu1 %770  ;;  %1951 = vmatmul.mubr.bf16.gmra.mrb[44].mxu1 %v1088_v54  ;;  %2177 = vmatmul.mubr.bf16.gmra.mrb[44].mxu0 %v1088_v54  ;;  %v5997_v14 = vpack.c.bf16 %v984_v31, %v982_v25  ;;  %v4926_v13 = vld [vmem:[%s6950_s5 + $0x40] sm:$0xff]   ;;  %v727_v17 = vsel %vm607_vm1, 0.0, %v691_v5 }
 0x1c0   :  { %2010 = vmatpush1.bf16.msra.mxu1 %v4914_v12  ;;  %2236 = vmatpush1.bf16.msra.mxu0 %v4917_v18  ;;  %v822_v50 = vsel %vm800_vm2, %v727_v17, %v771_v34  ;;  %v4927_v31 = vld [vmem:[%s6950_s5] sm:$0xff]   ;;  %v4928_v34 = vld [vmem:[%s6950_s5 + $0x48] sm:$0xff]  }
 0x1c1   :  { %2011 = vmatprep.subr.bf16.mxu1 %v4922_v63  ;;  %2237 = vmatprep.subr.bf16.mxu0 %v4925_v21  ;;  %v985_v58 = vrot.slane %v5992_v33, 2  ;;  %v986_v48 = vrot.slane %v5995_v37, 2  ;;  %v928_v32 = vrot.slane %v5992_v33, 1  ;;  %v929_v8 = vrot.slane %v5995_v37, 1  ;;  %v4935_v17 = vld [vmem:[%s6950_s5 + $0x20] sm:$0xff]  }
 0x1c2   :  { %v689_v15 = vpop.permute.xlu0 %688  ;;  %v846_v9 = vmul.f32 0.97, %v822_v50  ;;  %v1092_v7 = vpack.c.bf16 %v5995_v37, %v5992_v33  ;;  %v4941_v50 = vld [vmem:[%s6950_s5 + $0x38] sm:$0xff]  }
 0x1c3   :  { %v769_v60 = vpop.permute.xlu1 %768  ;;  %v987_v47 = vsel %vm954_vm4, %v985_v58, %v986_v48  ;;  %v930_v62 = vsel %vm897_vm5, %v928_v32, %v929_v8  ;;  %v4939_v58 = vld [vmem:[%s6950_s5 + $0x30] sm:$0xff]  }
 0x1c4   :  { %v821_v46 = vsel %vm800_vm2, %v689_v15, %v769_v60  ;;  %2012 = vmatpush1.bf16.msra.mxu1 %v4920_v1  ;;  %2238 = vmatpush1.bf16.msra.mxu0 %v4923_v0  ;;  %v6026_v54 = vsub.f32 %v5631_v20, %v846_v9  ;;  %v4930_v1 = vld [vmem:[%s6950_s5 + $0x50] sm:$0xff]  }
 0x1c5   :  { %v845_v29 = vmul.f32 0.97, %v821_v46  ;;  %4361 = vmatprep.subr.bf16.mxu1 %v4926_v13  ;;  %v4931_v0 = vld [vmem:[%s6950_s5 + $0x10] sm:$0xff]   ;;  %v4934_v13 = vld [vmem:[%s6950_s5 + $0x60] sm:$0xff]  }
 0x1c6   :  { %v695_v40 = vpop.permute.xlu0 %694  ;;  %v933_v20 = vrot.slane %v6026_v54, 1  ;;  %v990_v12 = vrot.slane %v6026_v54, 2  ;;  %v4938_v15 = vld [vmem:[%s6950_s5 + $0x70] sm:$0xff]  }
 0x1c7   :  { %v6015_v51 = vsub.f32 %v5638_v23, %v845_v29  ;;  %v693_v53 = vpop.permute.xlu1 %692 }
 0x1c9   :  { %v931_v16 = vrot.slane %v6015_v51, 1  ;;  %v988_v39 = vrot.slane %v6015_v51, 2 }
 0x1ca   :  { %v773_v61 = vpop.permute.xlu0 %772 }
 0x1cb   :  { %v823_v52 = vsel %vm800_vm2, %v693_v53, %v773_v61  ;;  %v775_v55 = vpop.permute.xlu1 %774  ;;  %v932_v43 = vsel %vm897_vm5, %v929_v8, %v931_v16  ;;  %v989_v23 = vsel %vm954_vm4, %v986_v48, %v988_v39  ;;  %v1043_v48 = vrot.slane %v5995_v37, 3 }
 0x1cc   :  { %v847_v2 = vmul.f32 0.97, %v823_v52  ;;  %v824_v56 = vsel %vm800_vm2, %v695_v40, %v775_v55  ;;  %v1093_v4 = vpack.c.bf16 %v932_v43, %v930_v62  ;;  %v6031_v19 = vpack.c.bf16 %v989_v23, %v987_v47 }
 0x1cd   :  { %v848_v22 = vmul.f32 0.97, %v824_v56 }
 0x1ce   :  { %v6034_v10 = vsub.f32 %v5647_v6, %v847_v2  ;;  %1960 = vmatprep.mubr.bf16.mxu1 %v1093_v4  ;;  %2186 = vmatprep.mubr.bf16.mxu0 %v1093_v4 }
 0x1cf   :  { %v6037_v57 = vsub.f32 %v5643_v27, %v848_v22  ;;  %1961 = vmatmul.mubr.bf16.gmra.mrb[48].mxu1 %v1092_v7  ;;  %2187 = vmatmul.mubr.bf16.gmra.mrb[48].mxu0 %v1092_v7 }
 0x1d0   :  { %v934_v11 = vrot.slane %v6034_v10, 1  ;;  %v991_v18 = vrot.slane %v6034_v10, 2  ;;  %v1096_v5 = vpack.c.bf16 %v6034_v10, %v6026_v54 }
 0x1d1   :  { %v936_v63 = vrot.slane %v6037_v57, 1  ;;  %v993_v6 = vrot.slane %v6037_v57, 2  ;;  %v1050_v46 = vrot.slane %v6037_v57, 3 }
 0x1d2   :  { %v935_v3 = vsel %vm897_vm5, %v933_v20, %v934_v11  ;;  %v992_v28 = vsel %vm954_vm4, %v990_v12, %v991_v18 }
 0x1d3   :  { %v937_v27 = vsel %vm897_vm5, %v934_v11, %v936_v63  ;;  %v994_v21 = vsel %vm954_vm4, %v991_v18, %v993_v6 }
 0x1d4   :  { %v1097_v24 = vpack.c.bf16 %v937_v27, %v935_v3  ;;  %v6049_v25 = vpack.c.bf16 %v994_v21, %v992_v28 }
 0x1d6   :  { %1970 = vmatprep.mubr.bf16.mxu1 %v1097_v24  ;;  %2196 = vmatprep.mubr.bf16.mxu0 %v1097_v24 }
 0x1d7   :  { %1971 = vmatmul.mubr.bf16.gmra.mrb[52].mxu1 %v1096_v5  ;;  %2197 = vmatmul.mubr.bf16.gmra.mrb[52].mxu0 %v1096_v5 }
 0x1d8   :  { %2013 = vmatprep.mubr.bf16.mxu1 %v5692_v38  ;;  %2239 = vmatprep.mubr.bf16.mxu0 %v5692_v38  ;;  %v4929_v38 = vld [vmem:[%s6950_s5 + $0x8] sm:$0xff]  }
 0x1df   :  { %2014 = vmatmul.mubr.bf16.vlgmr.msra.gmra.mrb[24].mxu1 %v5700_v44  ;;  %2240 = vmatmul.mubr.bf16.vlgmr.msra.gmra.mrb[24].mxu0 %v5700_v44  ;;  %v4932_v44 = vld [vmem:[%s6950_s5 + $0x58] sm:$0xff]  }
 0x1e0   :  { %2023 = vmatprep.mubr.bf16.mxu1 %v5740_v35  ;;  %2249 = vmatprep.mubr.bf16.mxu0 %v5740_v35  ;;  %v4933_v35 = vld [vmem:[%s6950_s5 + $0x18] sm:$0xff]  }
 0x1e1   :  { %4362 = vmatpush3.bf16.msra.mxu1 %v4927_v31 }
 0x1e2   :  { %4363 = vmatprep.subr.bf16.mxu1 %v4928_v34 }
 0x1e5   :  { %4364 = vmatpush3.bf16.msra.mxu1 %v4929_v38 }
 0x1e6   :  { %4365 = vmatprep.subr.bf16.mxu1 %v4930_v1 }
 0x1e7   :  { %2024 = vmatmul.mubr.bf16.gmra.mrb[28].mxu1 %v5749_v41  ;;  %2250 = vmatmul.mubr.bf16.gmra.mrb[28].mxu0 %v5749_v41  ;;  %v4936_v41 = vld [vmem:[%s6950_s5 + $0x68] sm:$0xff]  }
 0x1e8   :  { %2033 = vmatprep.mubr.bf16.mxu1 %v5820_v45  ;;  %2259 = vmatprep.mubr.bf16.mxu0 %v5820_v45  ;;  %v4937_v45 = vld [vmem:[%s6950_s5 + $0x28] sm:$0xff]  }
 0x1e9   :  { %4366 = vmatpush3.bf16.msra.mxu1 %v4931_v0 }
 0x1ea   :  { %4367 = vmatprep.subr.bf16.mxu1 %v4932_v44 }
 0x1ed   :  { %4368 = vmatpush3.bf16.msra.mxu1 %v4933_v35 }
 0x1ee   :  { %4369 = vmatprep.subr.bf16.mxu1 %v4934_v13 }
 0x1ef   :  { %2034 = vmatmul.mubr.bf16.gmra.mrb[32].mxu1 %v5824_v49  ;;  %2260 = vmatmul.mubr.bf16.gmra.mrb[32].mxu0 %v5824_v49  ;;  %v1045_v49 = vrot.slane %v6015_v51, 3 }
 0x1f0   :  { %2043 = vmatprep.mubr.bf16.mxu1 %v5870_v36  ;;  %2269 = vmatprep.mubr.bf16.mxu0 %v5870_v36  ;;  %v1042_v36 = vrot.slane %v5992_v33, 3 }
 0x1f1   :  { %4370 = vmatpush3.bf16.msra.mxu1 %v4935_v17 }
 0x1f2   :  { %4371 = vmatprep.subr.bf16.mxu1 %v4936_v41  ;;  %v1044_v60 = vsel %vm1011_vm3, %v1042_v36, %v1043_v48 }
 0x1f5   :  { %4372 = vmatpush3.bf16.msra.mxu1 %v4937_v45 }
 0x1f6   :  { %4373 = vmatprep.subr.bf16.mxu1 %v4938_v15 }
 0x1f7   :  { %2044 = vmatmul.mubr.bf16.gmra.mrb[36].mxu1 %v5880_v42  ;;  %2270 = vmatmul.mubr.bf16.gmra.mrb[36].mxu0 %v5880_v42  ;;  %v1046_v42 = vsel %vm1011_vm3, %v1043_v48, %v1045_v49 }
 0x1f8   :  { %2053 = vmatprep.mubr.bf16.mxu1 %v5938_v26  ;;  %2279 = vmatprep.mubr.bf16.mxu0 %v5938_v26  ;;  %v1095_v26 = vpack.c.bf16 %v1046_v42, %v1044_v60 }
 0x1f9   :  { %4374 = vmatpush3.bf16.msra.mxu1 %v4939_v58 }
 0x1ff   :  { %2054 = vmatmul.mubr.bf16.gmra.mrb[40].mxu1 %v5948_v59  ;;  %2280 = vmatmul.mubr.bf16.gmra.mrb[40].mxu0 %v5948_v59  ;;  %v1048_v59 = vrot.slane %v6034_v10, 3 }
 0x200   :  { %2063 = vmatprep.mubr.bf16.mxu1 %v5988_v30  ;;  %2289 = vmatprep.mubr.bf16.mxu0 %v5988_v30  ;;  %v1047_v30 = vrot.slane %v6026_v54, 3 }
 0x201   :  { %v1051_v37 = vsel %vm1011_vm3, %v1048_v59, %v1050_v46 }
 0x202   :  { %v1049_v33 = vsel %vm1011_vm3, %v1047_v30, %v1048_v59 }
 0x203   :  { %v1099_v47 = vpack.c.bf16 %v1051_v37, %v1049_v33 }
 0x207   :  { %2064 = vmatmul.mubr.bf16.gmra.mrb[44].mxu1 %v5997_v14  ;;  %2290 = vmatmul.mubr.bf16.gmra.mrb[44].mxu0 %v5997_v14  ;;  %v4940_v14 = vld [vmem:[%s6950_s5 + $0x78] sm:$0xff]  }
 0x208   :  { %2073 = vmatprep.mubr.bf16.mxu1 %v1095_v26  ;;  %2299 = vmatprep.mubr.bf16.mxu0 %v1095_v26 }
 0x209   :  { %4375 = vmatprep.subr.bf16.mxu1 %v4940_v14 }
 0x20a   :  { %4376 = vmatpush3.bf16.msra.mxu1 %v4941_v50 }
 0x20f   :  { %2074 = vmatmul.mubr.bf16.gmra.mrb[48].mxu1 %v6031_v19  ;;  %2300 = vmatmul.mubr.bf16.gmra.mrb[48].mxu0 %v6031_v19 }
 0x210   :  { %2083 = vmatprep.mubr.bf16.mxu1 %v1099_v47  ;;  %2309 = vmatprep.mubr.bf16.mxu0 %v1099_v47 }
 0x217   :  { %2084 = vmatmul.mubr.bf16.gmra.mrb[52].mxu1 %v6049_v25  ;;  %2310 = vmatmul.mubr.bf16.gmra.mrb[52].mxu0 %v6049_v25 }
 0x2b2   :  { %v2015_v29 = vpop.f32.mrb[24].mxu1  ;;  %v2241_v40 = vpop.f32.mrb[24].mxu0 }
 0x2b3   :  { %v2320_v51 = vmul.f32 %v2015_v29, %v2015_v29  ;;  %v2352_v53 = vmul.f32 %v2241_v40, %v2241_v40  ;;  %v2017_v32 = vpop.f32.mrb[25].mxu1  ;;  %v2243_v8 = vpop.f32.mrb[25].mxu0 }
 0x2b4   :  { %v2321_v9 = vmul.f32 %v2017_v32, %v2017_v32  ;;  %v2353_v16 = vmul.f32 %v2243_v8, %v2243_v8  ;;  %v2019_v39 = vpop.f32.mrb[26].mxu1  ;;  %v2245_v61 = vpop.f32.mrb[26].mxu0 }
 0x2b5   :  { %v2384_v52 = vadd.f32 %v2352_v53, %v2320_v51  ;;  %v2322_v55 = vmul.f32 %v2019_v39, %v2019_v39  ;;  %v2354_v62 = vmul.f32 %v2245_v61, %v2245_v61  ;;  %v2021_v43 = vpop.f32.mrb[27].mxu1  ;;  %v2247_v23 = vpop.f32.mrb[27].mxu0 }
 0x2b6   :  { %v2385_v54 = vadd.f32 %v2353_v16, %v2321_v9  ;;  %v2323_v2 = vmul.f32 %v2021_v43, %v2021_v43  ;;  %v2355_v56 = vmul.f32 %v2247_v23, %v2247_v23 }
 0x2b7   :  { %v2386_v4 = vadd.f32 %v2354_v62, %v2322_v55 }
 0x2b8   :  { %v2387_v22 = vadd.f32 %v2355_v56, %v2323_v2 }
 0x2b9   :  { %v2416_v7 = vpack.c.bf16 %v2386_v4, %v2384_v52 }
 0x2ba   :  { %v2025_v19 = vpop.f32.mrb[28].mxu1  ;;  %v2251_v10 = vpop.f32.mrb[28].mxu0  ;;  %v2417_v57 = vpack.c.bf16 %v2387_v22, %v2385_v54 }
 0x2bb   :  { %v2324_v20 = vmul.f32 %v2025_v19, %v2025_v19  ;;  %v2356_v11 = vmul.f32 %v2251_v10, %v2251_v10  ;;  %v2027_v12 = vpop.f32.mrb[29].mxu1  ;;  %v2253_v18 = vpop.f32.mrb[29].mxu0 }
 0x2bc   :  { %v2325_v63 = vmul.f32 %v2027_v12, %v2027_v12  ;;  %v2357_v6 = vmul.f32 %v2253_v18, %v2253_v18  ;;  %v2029_v3 = vpop.f32.mrb[30].mxu1  ;;  %v2255_v28 = vpop.f32.mrb[30].mxu0  ;;  %2592 = vmatprep.mubr.bf16.mxu1 %v2417_v57 }
 0x2bd   :  { %v2388_v27 = vadd.f32 %v2356_v11, %v2324_v20  ;;  %v2326_v21 = vmul.f32 %v2029_v3, %v2029_v3  ;;  %v2358_v24 = vmul.f32 %v2255_v28, %v2255_v28  ;;  %v2031_v25 = vpop.f32.mrb[31].mxu1  ;;  %v2257_v5 = vpop.f32.mrb[31].mxu0  ;;  %2593 = vmatmul.mubr.bf16.vlgmr.msra.gmra.mrb[56].mxu1 %v2416_v7 }
 0x2be   :  { %v2389_v31 = vadd.f32 %v2357_v6, %v2325_v63  ;;  %v2327_v34 = vmul.f32 %v2031_v25, %v2031_v25  ;;  %v2359_v38 = vmul.f32 %v2257_v5, %v2257_v5 }
 0x2bf   :  { %v2390_v1 = vadd.f32 %v2358_v24, %v2326_v21 }
 0x2c0   :  { %v2391_v0 = vadd.f32 %v2359_v38, %v2327_v34 }
 0x2c1   :  { %v2418_v44 = vpack.c.bf16 %v2390_v1, %v2388_v27 }
 0x2c2   :  { %v2035_v35 = vpop.f32.mrb[32].mxu1  ;;  %v2261_v13 = vpop.f32.mrb[32].mxu0  ;;  %v2419_v17 = vpack.c.bf16 %v2391_v0, %v2389_v31 }
 0x2c3   :  { %v2328_v41 = vmul.f32 %v2035_v35, %v2035_v35  ;;  %v2360_v45 = vmul.f32 %v2261_v13, %v2261_v13  ;;  %v2037_v15 = vpop.f32.mrb[33].mxu1  ;;  %v2263_v58 = vpop.f32.mrb[33].mxu0 }
 0x2c4   :  { %v2329_v49 = vmul.f32 %v2037_v15, %v2037_v15  ;;  %v2361_v36 = vmul.f32 %v2263_v58, %v2263_v58  ;;  %v2039_v48 = vpop.f32.mrb[34].mxu1  ;;  %v2265_v42 = vpop.f32.mrb[34].mxu0  ;;  %2600 = vmatprep.mubr.bf16.mxu1 %v2419_v17 }
 0x2c5   :  { %v2392_v60 = vadd.f32 %v2360_v45, %v2328_v41  ;;  %v2330_v26 = vmul.f32 %v2039_v48, %v2039_v48  ;;  %v2362_v46 = vmul.f32 %v2265_v42, %v2265_v42  ;;  %v2041_v59 = vpop.f32.mrb[35].mxu1  ;;  %v2267_v30 = vpop.f32.mrb[35].mxu0  ;;  %2601 = vmatmul.mubr.bf16.gmra.mrb[60].mxu1 %v2418_v44 }
 0x2c6   :  { %v2393_v33 = vadd.f32 %v2361_v36, %v2329_v49  ;;  %v2331_v37 = vmul.f32 %v2041_v59, %v2041_v59  ;;  %v2363_v47 = vmul.f32 %v2267_v30, %v2267_v30 }
 0x2c7   :  { %v2394_v14 = vadd.f32 %v2362_v46, %v2330_v26 }
 0x2c8   :  { %v2395_v50 = vadd.f32 %v2363_v47, %v2331_v37 }
 0x2c9   :  { %v2420_v29 = vpack.c.bf16 %v2394_v14, %v2392_v60 }
 0x2ca   :  { %v2045_v40 = vpop.f32.mrb[36].mxu1  ;;  %v2271_v51 = vpop.f32.mrb[36].mxu0  ;;  %v2421_v53 = vpack.c.bf16 %v2395_v50, %v2393_v33 }
 0x2cb   :  { %v2332_v32 = vmul.f32 %v2045_v40, %v2045_v40  ;;  %v2364_v8 = vmul.f32 %v2271_v51, %v2271_v51  ;;  %v2047_v9 = vpop.f32.mrb[37].mxu1  ;;  %v2273_v16 = vpop.f32.mrb[37].mxu0 }
 0x2cc   :  { %v2333_v39 = vmul.f32 %v2047_v9, %v2047_v9  ;;  %v2365_v61 = vmul.f32 %v2273_v16, %v2273_v16  ;;  %v2049_v52 = vpop.f32.mrb[38].mxu1  ;;  %v2275_v55 = vpop.f32.mrb[38].mxu0  ;;  %2608 = vmatprep.mubr.bf16.mxu1 %v2421_v53 }
 0x2cd   :  { %v2396_v62 = vadd.f32 %v2364_v8, %v2332_v32  ;;  %v2334_v43 = vmul.f32 %v2049_v52, %v2049_v52  ;;  %v2366_v23 = vmul.f32 %v2275_v55, %v2275_v55  ;;  %v2051_v54 = vpop.f32.mrb[39].mxu1  ;;  %v2277_v2 = vpop.f32.mrb[39].mxu0  ;;  %2609 = vmatmul.mubr.bf16.gmra.mrb[64].mxu1 %v2420_v29 }
 0x2ce   :  { %v2397_v56 = vadd.f32 %v2365_v61, %v2333_v39  ;;  %v2335_v4 = vmul.f32 %v2051_v54, %v2051_v54  ;;  %v2367_v22 = vmul.f32 %v2277_v2, %v2277_v2 }
 0x2cf   :  { %v2398_v7 = vadd.f32 %v2366_v23, %v2334_v43 }
 0x2d0   :  { %v2399_v19 = vadd.f32 %v2367_v22, %v2335_v4 }
 0x2d1   :  { %v2422_v10 = vpack.c.bf16 %v2398_v7, %v2396_v62 }
 0x2d2   :  { %v2055_v57 = vpop.f32.mrb[40].mxu1  ;;  %v2281_v20 = vpop.f32.mrb[40].mxu0  ;;  %v2423_v11 = vpack.c.bf16 %v2399_v19, %v2397_v56 }
 0x2d3   :  { %v2336_v12 = vmul.f32 %v2055_v57, %v2055_v57  ;;  %v2368_v18 = vmul.f32 %v2281_v20, %v2281_v20  ;;  %v2057_v63 = vpop.f32.mrb[41].mxu1  ;;  %v2283_v6 = vpop.f32.mrb[41].mxu0 }
 0x2d4   :  { %v2337_v3 = vmul.f32 %v2057_v63, %v2057_v63  ;;  %v2369_v28 = vmul.f32 %v2283_v6, %v2283_v6  ;;  %v2059_v27 = vpop.f32.mrb[42].mxu1  ;;  %v2285_v21 = vpop.f32.mrb[42].mxu0  ;;  %2616 = vmatprep.mubr.bf16.mxu1 %v2423_v11 }
 0x2d5   :  { %v2400_v24 = vadd.f32 %v2368_v18, %v2336_v12  ;;  %v2338_v25 = vmul.f32 %v2059_v27, %v2059_v27  ;;  %v2370_v5 = vmul.f32 %v2285_v21, %v2285_v21  ;;  %v2061_v31 = vpop.f32.mrb[43].mxu1  ;;  %v2287_v34 = vpop.f32.mrb[43].mxu0  ;;  %2617 = vmatmul.mubr.bf16.gmra.mrb[68].mxu1 %v2422_v10 }
 0x2d6   :  { %v2401_v38 = vadd.f32 %v2369_v28, %v2337_v3  ;;  %v2339_v1 = vmul.f32 %v2061_v31, %v2061_v31  ;;  %v2371_v0 = vmul.f32 %v2287_v34, %v2287_v34 }
 0x2d7   :  { %v2402_v44 = vadd.f32 %v2370_v5, %v2338_v25 }
 0x2d8   :  { %v2403_v35 = vadd.f32 %v2371_v0, %v2339_v1 }
 0x2d9   :  { %v2424_v13 = vpack.c.bf16 %v2402_v44, %v2400_v24 }
 0x2da   :  { %v2065_v17 = vpop.f32.mrb[44].mxu1  ;;  %v2291_v41 = vpop.f32.mrb[44].mxu0  ;;  %v2425_v45 = vpack.c.bf16 %v2403_v35, %v2401_v38 }
 0x2db   :  { %v2340_v15 = vmul.f32 %v2065_v17, %v2065_v17  ;;  %v2372_v58 = vmul.f32 %v2291_v41, %v2291_v41  ;;  %v2067_v49 = vpop.f32.mrb[45].mxu1  ;;  %v2293_v36 = vpop.f32.mrb[45].mxu0 }
 0x2dc   :  { %v2341_v48 = vmul.f32 %v2067_v49, %v2067_v49  ;;  %v2373_v42 = vmul.f32 %v2293_v36, %v2293_v36  ;;  %v2069_v60 = vpop.f32.mrb[46].mxu1  ;;  %v2295_v26 = vpop.f32.mrb[46].mxu0  ;;  %2624 = vmatprep.mubr.bf16.mxu1 %v2425_v45  ;;  %v2977_v49 = vld [vmem:[%s6951_s6 + $0x10] sm:$0xff] }
 0x2dd   :  { %v2404_v46 = vadd.f32 %v2372_v58, %v2340_v15  ;;  %v2342_v59 = vmul.f32 %v2069_v60, %v2069_v60  ;;  %v2374_v30 = vmul.f32 %v2295_v26, %v2295_v26  ;;  %v2071_v33 = vpop.f32.mrb[47].mxu1  ;;  %v2297_v37 = vpop.f32.mrb[47].mxu0  ;;  %2625 = vmatmul.mubr.bf16.gmra.mrb[72].mxu1 %v2424_v13  ;;  %v2975_v15 = vld [vmem:[%s6951_s6] sm:$0xff]  ;;  %v2976_v58 = vld [vmem:[%s6951_s6 + $0x8] sm:$0xff] }
 0x2de   :  { %v2405_v47 = vadd.f32 %v2373_v42, %v2341_v48  ;;  %v2343_v14 = vmul.f32 %v2071_v33, %v2071_v33  ;;  %v2375_v50 = vmul.f32 %v2297_v37, %v2297_v37  ;;  %v4627_v36 = vpack.c.bf16 %v2976_v58, %v2975_v15  ;;  %v2978_v48 = vld [vmem:[%s6951_s6 + $0x18] sm:$0xff] }
 0x2df   :  { %v2406_v29 = vadd.f32 %v2374_v30, %v2342_v59  ;;  %v4631_v42 = vpack.c.bf16 %v2978_v48, %v2977_v49 }
 0x2e0   :  { %v2407_v40 = vadd.f32 %v2375_v50, %v2343_v14  ;;  %4628 = vmatprep.subr.bf16.mxu0 %v4627_v36  ;;  %v2737_v14 = vlaneseq }
 0x2e1   :  { %v2426_v51 = vpack.c.bf16 %v2406_v29, %v2404_v46  ;;  %4630 = vmatpush3.bf16.msra.mxu0 %v4627_v36 }
 0x2e2   :  { %v2075_v53 = vpop.f32.mrb[48].mxu1  ;;  %v2301_v32 = vpop.f32.mrb[48].mxu0  ;;  %v2427_v8 = vpack.c.bf16 %v2407_v40, %v2405_v47  ;;  %4632 = vmatprep.subr.bf16.mxu0 %v4631_v42 }
 0x2e3   :  { %v2344_v9 = vmul.f32 %v2075_v53, %v2075_v53  ;;  %v2376_v16 = vmul.f32 %v2301_v32, %v2301_v32  ;;  %v2077_v39 = vpop.f32.mrb[49].mxu1  ;;  %v2303_v61 = vpop.f32.mrb[49].mxu0  ;;  %v6148_v53 = vshrl.u32 %v2737_v14, 7 }
 0x2e4   :  { %v2345_v52 = vmul.f32 %v2077_v39, %v2077_v39  ;;  %v2377_v55 = vmul.f32 %v2303_v61, %v2303_v61  ;;  %v2079_v62 = vpop.f32.mrb[50].mxu1  ;;  %v2305_v43 = vpop.f32.mrb[50].mxu0  ;;  %2632 = vmatprep.mubr.bf16.mxu1 %v2427_v8 }
 0x2e5   :  { %v2408_v23 = vadd.f32 %v2376_v16, %v2344_v9  ;;  %v2346_v54 = vmul.f32 %v2079_v62, %v2079_v62  ;;  %v2378_v2 = vmul.f32 %v2305_v43, %v2305_v43  ;;  %v2081_v56 = vpop.f32.mrb[51].mxu1  ;;  %v2307_v4 = vpop.f32.mrb[51].mxu0  ;;  %2633 = vmatmul.mubr.bf16.gmra.mrb[76].mxu1 %v2426_v51  ;;  %4634 = vmatpush3.bf16.msra.mxu0 %v4631_v42  ;;  %v6151_v39 = vadd.s32 8, %v6148_v53 }
 0x2e6   :  { %v2409_v22 = vadd.f32 %v2377_v55, %v2345_v52  ;;  %v2347_v7 = vmul.f32 %v2081_v56, %v2081_v56  ;;  %v2379_v19 = vmul.f32 %v2307_v4, %v2307_v4  ;;  %v2743_v15 = vadd.s32 40, %v6148_v53 }
 0x2e7   :  { %v2410_v10 = vadd.f32 %v2378_v2, %v2346_v54  ;;  %v2757_v2 = vand.u32 15, %v6151_v39  ;;  %vm3177_vm11 = vcmp.ge.s32.totalorder %v6151_v39, 13 }
 0x2e8   :  { %v2411_v57 = vadd.f32 %v2379_v19, %v2347_v7 }
 0x2e9   :  { %v2428_v20 = vpack.c.bf16 %v2410_v10, %v2408_v23  ;;  %vm6156_vm7 = vcmp.lt.s32.totalorder %v2757_v2, 13 }
 0x2ea   :  { %v2085_v11 = vpop.f32.mrb[52].mxu1  ;;  %v2311_v12 = vpop.f32.mrb[52].mxu0  ;;  %v2429_v18 = vpack.c.bf16 %v2411_v57, %v2409_v22 }
 0x2eb   :  { %v2348_v63 = vmul.f32 %v2085_v11, %v2085_v11  ;;  %v2380_v6 = vmul.f32 %v2311_v12, %v2311_v12  ;;  %v2087_v3 = vpop.f32.mrb[53].mxu1  ;;  %v2313_v28 = vpop.f32.mrb[53].mxu0  ;;  %v2741_v12 = vadd.s32 24, %v6148_v53 }
 0x2ec   :  { %v2349_v27 = vmul.f32 %v2087_v3, %v2087_v3  ;;  %v2381_v21 = vmul.f32 %v2313_v28, %v2313_v28  ;;  %v2089_v24 = vpop.f32.mrb[54].mxu1  ;;  %v2315_v25 = vpop.f32.mrb[54].mxu0  ;;  %2640 = vmatprep.mubr.bf16.mxu1 %v2429_v18 }
 0x2ed   :  { %v2412_v5 = vadd.f32 %v2380_v6, %v2348_v63  ;;  %v2350_v31 = vmul.f32 %v2089_v24, %v2089_v24  ;;  %v2382_v34 = vmul.f32 %v2315_v25, %v2315_v25  ;;  %v2091_v38 = vpop.f32.mrb[55].mxu1  ;;  %v2317_v1 = vpop.f32.mrb[55].mxu0  ;;  %2641 = vmatmul.mubr.bf16.gmra.mrb[80].mxu1 %v2428_v20 }
 0x2ee   :  { %v2413_v0 = vadd.f32 %v2381_v21, %v2349_v27  ;;  %v2351_v44 = vmul.f32 %v2091_v38, %v2091_v38  ;;  %v2383_v35 = vmul.f32 %v2317_v1, %v2317_v1 }
 0x2ef   :  { %v2414_v13 = vadd.f32 %v2382_v34, %v2350_v31  ;;  %v2771_v34 = vand.u32 15, %v2741_v12 }
 0x2f0   :  { %v2415_v17 = vadd.f32 %v2383_v35, %v2351_v44 }
 0x2f1   :  { %v2430_v41 = vpack.c.bf16 %v2414_v13, %v2412_v5  ;;  %vm6171_vm8 = vcmp.lt.s32.totalorder %v2771_v34, 13 }
 0x2f2   :  { %v2431_v45 = vpack.c.bf16 %v2415_v17, %v2413_v0 }
 0x2f4   :  { %2648 = vmatprep.mubr.bf16.mxu1 %v2431_v45 }
 0x2f5   :  { %2649 = vmatmul.mubr.bf16.gmra.mrb[84].mxu1 %v2430_v41 }
 0x390   :  { %v4377_v60 = vpop.f32.mrb[56].mxu1 }
 0x391   :  { %v4378_v26 = vpop.f32.mrb[57].mxu1 }
 0x392   :  { %v4379_v46 = vadd.f32 %v4378_v26, %v4377_v60  ;;  %v4380_v59 = vpop.f32.mrb[58].mxu1 }
 0x393   :  { %v4381_v30 = vpop.f32.mrb[59].mxu1 }
 0x394   :  { %v2657_v33 = vmax.f32 %v4379_v46, 1e-10  ;;  %v4382_v37 = vadd.f32 %v4381_v30, %v4380_v59 }
 0x396   :  { %4942 = vlog2.f32 %v2657_v33  ;;  %v2658_v47 = vmax.f32 %v4382_v37, 1e-10  ;;  %v2785_v37 = vand.u32 15, %v2743_v15 }
 0x398   :  { %4944 = vlog2.f32 %v2658_v47  ;;  %v4383_v50 = vpop.f32.mrb[60].mxu1  ;;  %vm6186_vm9 = vcmp.lt.s32.totalorder %v2785_v37, 13 }
 0x399   :  { %v4384_v29 = vpop.f32.mrb[61].mxu1 }
 0x39a   :  { %v4385_v40 = vadd.f32 %v4384_v29, %v4383_v50  ;;  %v4386_v51 = vpop.f32.mrb[62].mxu1 }
 0x39b   :  { %v4387_v32 = vpop.f32.mrb[63].mxu1 }
 0x39c   :  { %v2659_v8 = vmax.f32 %v4385_v40, 1e-10  ;;  %v4388_v9 = vadd.f32 %v4387_v32, %v4386_v51 }
 0x39e   :  { %4946 = vlog2.f32 %v2659_v8  ;;  %v2660_v16 = vmax.f32 %v4388_v9, 1e-10 }
 0x3a0   :  { %v4943_v61 = vpop.eup %4942  ;;  %4948 = vlog2.f32 %v2660_v16  ;;  %v4389_v52 = vpop.f32.mrb[64].mxu1  ;;  %v2745_v16 = vadd.s32 56, %v6148_v53 }
 0x3a1   :  { %v4390_v55 = vpop.f32.mrb[65].mxu1  ;;  %v2674_v62 = vmul.f32 0.6931472, %v4943_v61 }
 0x3a2   :  { %v4945_v43 = vpop.eup %4944  ;;  %v4391_v23 = vadd.f32 %v4390_v55, %v4389_v52  ;;  %v4392_v54 = vpop.f32.mrb[66].mxu1 }
 0x3a3   :  { %v2676_v56 = vmul.f32 0.6931472, %v4945_v43  ;;  %v4393_v4 = vpop.f32.mrb[67].mxu1  ;;  %v2705_v22 = vmul.f32 0.4342945, %v2674_v62 }
 0x3a4   :  { %v2661_v7 = vmax.f32 %v4391_v23, 1e-10  ;;  %v4394_v19 = vadd.f32 %v4393_v4, %v4392_v54 }
 0x3a5   :  { %v6154_v10 = vmul.f32 10.0, %v2705_v22  ;;  %v2706_v57 = vmul.f32 0.4342945, %v2676_v56 }
 0x3a6   :  { %4950 = vlog2.f32 %v2661_v7  ;;  %v2662_v20 = vmax.f32 %v4394_v19, 1e-10  ;;  %v2799_v7 = vand.u32 15, %v2745_v16 }
 0x3a7   :  { %v2883_v18 = vsel %vm2882_vm6, %v6154_v10, -inf  ;;  %v6163_v63 = vmul.f32 10.0, %v2706_v57 }
 0x3a8   :  { %v4947_v6 = vpop.eup %4946  ;;  %4952 = vlog2.f32 %v2662_v20  ;;  %v4395_v3 = vpop.f32.mrb[68].mxu1  ;;  %2884 = vmax.xlane.f32.xlu0 %v2883_v18  ;;  %vm6201_vm10 = vcmp.lt.s32.totalorder %v2799_v7, 13 }
 0x3a9   :  { %v4396_v28 = vpop.f32.mrb[69].mxu1  ;;  %v2867_v27 = vsel %vm6156_vm7, %v6163_v63, -1e+30  ;;  %v2678_v21 = vmul.f32 0.6931472, %v4947_v6 }
 0x3aa   :  { %v4949_v24 = vpop.eup %4948  ;;  %v4397_v25 = vadd.f32 %v4396_v28, %v4395_v3  ;;  %v4398_v5 = vpop.f32.mrb[70].mxu1  ;;  %v2886_v31 = vsel %vm2882_vm6, %v2867_v27, -inf }
 0x3ab   :  { %v2680_v38 = vmul.f32 0.6931472, %v4949_v24  ;;  %v4399_v1 = vpop.f32.mrb[71].mxu1  ;;  %2887 = vmax.xlane.f32.xlu1 %v2886_v31  ;;  %v2707_v0 = vmul.f32 0.4342945, %v2678_v21 }
 0x3ac   :  { %v2663_v44 = vmax.f32 %v4397_v25, 1e-10  ;;  %v4400_v35 = vadd.f32 %v4399_v1, %v4398_v5 }
 0x3ad   :  { %v6169_v13 = vmul.f32 10.0, %v2707_v0  ;;  %v2708_v17 = vmul.f32 0.4342945, %v2680_v38 }
 0x3ae   :  { %4954 = vlog2.f32 %v2663_v44  ;;  %v2664_v41 = vmax.f32 %v4400_v35, 1e-10 }
 0x3af   :  { %v2889_v58 = vsel %vm2882_vm6, %v6169_v13, -inf  ;;  %v6178_v49 = vmul.f32 10.0, %v2708_v17  ;;  %v2979_v17 = vld [vmem:[%s6951_s6 + $0x20] sm:$0xff] }
 0x3b0   :  { %v4951_v36 = vpop.eup %4950  ;;  %4956 = vlog2.f32 %v2664_v41  ;;  %v4401_v48 = vpop.f32.mrb[72].mxu1  ;;  %2890 = vmax.xlane.f32.xlu0 %v2889_v58  ;;  %v2980_v41 = vld [vmem:[%s6951_s6 + $0x28] sm:$0xff] }
 0x3b1   :  { %v4402_v42 = vpop.f32.mrb[73].mxu1  ;;  %v2869_v60 = vsel %vm6171_vm8, %v6178_v49, -1e+30  ;;  %v2682_v26 = vmul.f32 0.6931472, %v4951_v36 }
 0x3b2   :  { %v4953_v46 = vpop.eup %4952  ;;  %v4403_v59 = vadd.f32 %v4402_v42, %v4401_v48  ;;  %v4404_v30 = vpop.f32.mrb[74].mxu1  ;;  %v2892_v33 = vsel %vm2882_vm6, %v2869_v60, -inf  ;;  %v4635_v48 = vpack.c.bf16 %v2980_v41, %v2979_v17 }
 0x3b3   :  { %v2684_v47 = vmul.f32 0.6931472, %v4953_v46  ;;  %v4405_v14 = vpop.f32.mrb[75].mxu1  ;;  %v2709_v50 = vmul.f32 0.4342945, %v2682_v26 }
 0x3b4   :  { %v2665_v29 = vmax.f32 %v4403_v59, 1e-10  ;;  %v4406_v40 = vadd.f32 %v4405_v14, %v4404_v30  ;;  %2893 = vmax.xlane.f32.xlu0 %v2892_v33  ;;  %4636 = vmatprep.subr.bf16.mxu0 %v4635_v48 }
 0x3b5   :  { %v6184_v51 = vmul.f32 10.0, %v2709_v50  ;;  %v2710_v32 = vmul.f32 0.4342945, %v2684_v47  ;;  %4638 = vmatpush3.bf16.msra.mxu0 %v4635_v48 }
 0x3b6   :  { %4958 = vlog2.f32 %v2665_v29  ;;  %v2666_v8 = vmax.f32 %v4406_v40, 1e-10 }
 0x3b7   :  { %v2895_v61 = vsel %vm2882_vm6, %v6184_v51, -inf  ;;  %v6193_v52 = vmul.f32 10.0, %v2710_v32 }
 0x3b8   :  { %v4955_v55 = vpop.eup %4954  ;;  %4960 = vlog2.f32 %v2666_v8  ;;  %v4407_v62 = vpop.f32.mrb[76].mxu1  ;;  %2896 = vmax.xlane.f32.xlu1 %v2895_v61 }
 0x3b9   :  { %v4408_v43 = vpop.f32.mrb[77].mxu1  ;;  %v2871_v23 = vsel %vm6186_vm9, %v6193_v52, -1e+30  ;;  %v2686_v54 = vmul.f32 0.6931472, %v4955_v55 }
 0x3ba   :  { %v4957_v2 = vpop.eup %4956  ;;  %v4409_v56 = vadd.f32 %v4408_v43, %v4407_v62  ;;  %v4410_v4 = vpop.f32.mrb[78].mxu1  ;;  %v2898_v22 = vsel %vm2882_vm6, %v2871_v23, -inf }
 0x3bb   :  { %v2688_v19 = vmul.f32 0.6931472, %v4957_v2  ;;  %v4411_v57 = vpop.f32.mrb[79].mxu1  ;;  %2899 = vmax.xlane.f32.xlu0 %v2898_v22  ;;  %v2711_v20 = vmul.f32 0.4342945, %v2686_v54 }
 0x3bc   :  { %v2667_v12 = vmax.f32 %v4409_v56, 1e-10  ;;  %v4412_v18 = vadd.f32 %v4411_v57, %v4410_v4 }
 0x3bd   :  { %v6199_v6 = vmul.f32 10.0, %v2711_v20  ;;  %v2712_v3 = vmul.f32 0.4342945, %v2688_v19 }
 0x3be   :  { %4962 = vlog2.f32 %v2667_v12  ;;  %v2668_v28 = vmax.f32 %v4412_v18, 1e-10 }
 0x3bf   :  { %v2901_v21 = vsel %vm2882_vm6, %v6199_v6, -inf  ;;  %v6207_v24 = vmul.f32 10.0, %v2712_v3 }
 0x3c0   :  { %v4959_v25 = vpop.eup %4958  ;;  %4964 = vlog2.f32 %v2668_v28  ;;  %v4413_v5 = vpop.f32.mrb[80].mxu1  ;;  %2902 = vmax.xlane.f32.xlu1 %v2901_v21 }
 0x3c1   :  { %v4414_v31 = vpop.f32.mrb[81].mxu1  ;;  %v2873_v34 = vsel %vm6201_vm10, %v6207_v24, -1e+30  ;;  %v2690_v38 = vmul.f32 0.6931472, %v4959_v25 }
 0x3c2   :  { %v4961_v1 = vpop.eup %4960  ;;  %v4415_v0 = vadd.f32 %v4414_v31, %v4413_v5  ;;  %v4416_v44 = vpop.f32.mrb[82].mxu1  ;;  %v2904_v35 = vsel %vm2882_vm6, %v2873_v34, -inf }
 0x3c3   :  { %v2692_v15 = vmul.f32 0.6931472, %v4961_v1  ;;  %v4417_v58 = vpop.f32.mrb[83].mxu1  ;;  %2905 = vmax.xlane.f32.xlu0 %v2904_v35  ;;  %v2713_v36 = vmul.f32 0.4342945, %v2690_v38 }
 0x3c4   :  { %v2669_v42 = vmax.f32 %v4415_v0, 1e-10  ;;  %v4418_v60 = vadd.f32 %v4417_v58, %v4416_v44  ;;  %v2982_v58 = vld [vmem:[%s6951_s6 + $0x38] sm:$0xff] }
 0x3c5   :  { %v6219_v26 = vmul.f32 10.0, %v2713_v36  ;;  %v2714_v46 = vmul.f32 0.4342945, %v2692_v15  ;;  %v2981_v15 = vld [vmem:[%s6951_s6 + $0x30] sm:$0xff]  ;;  %s4975_s6 = smov 13  }
 0x3c6   :  { %4966 = vlog2.f32 %v2669_v42  ;;  %v2670_v59 = vmax.f32 %v4418_v60, 1e-10  ;;  %v4639_v48 = vpack.c.bf16 %v2982_v58, %v2981_v15 }
 0x3c7   :  { %v2907_v30 = vsel %vm2882_vm6, %v6219_v26, -inf  ;;  %v6223_v33 = vmul.f32 10.0, %v2714_v46 }
 0x3c8   :  { %v4963_v37 = vpop.eup %4962  ;;  %4968 = vlog2.f32 %v2670_v59  ;;  %2908 = vmax.xlane.f32.xlu1 %v2907_v30  ;;  %v4419_v47 = vpop.f32.mrb[84].mxu1  ;;  %4640 = vmatprep.subr.bf16.mxu0 %v4639_v48 }
 0x3c9   :  { %v4420_v14 = vpop.f32.mrb[85].mxu1  ;;  %v2875_v50 = vsel %vm6156_vm7, %v6223_v33, -1e+30  ;;  %v2694_v29 = vmul.f32 0.6931472, %v4963_v37  ;;  %4642 = vmatpush3.bf16.msra.mxu0 %v4639_v48 }
 0x3ca   :  { %v4965_v40 = vpop.eup %4964  ;;  %v4421_v32 = vadd.f32 %v4420_v14, %v4419_v47  ;;  %v4422_v8 = vpop.f32.mrb[86].mxu1  ;;  %v2910_v16 = vsel %vm2882_vm6, %v2875_v50, -inf }
 0x3cb   :  { %v2696_v61 = vmul.f32 0.6931472, %v4965_v40  ;;  %2911 = vmax.xlane.f32.xlu0 %v2910_v16  ;;  %v4423_v55 = vpop.f32.mrb[87].mxu1  ;;  %v2715_v62 = vmul.f32 0.4342945, %v2694_v29 }
 0x3cc   :  { %v2671_v43 = vmax.f32 %v4421_v32, 1e-10  ;;  %v4424_v23 = vadd.f32 %v4423_v55, %v4422_v8 }
 0x3cd   :  { %v6229_v54 = vmul.f32 10.0, %v2715_v62  ;;  %v2716_v2 = vmul.f32 0.4342945, %v2696_v61 }
 0x3ce   :  { %4970 = vlog2.f32 %v2671_v43  ;;  %v2672_v56 = vmax.f32 %v4424_v23, 1e-10 }
 0x3cf   :  { %v2913_v11 = vsel %vm2882_vm6, %v6229_v54, -inf  ;;  %v6233_v4 = vmul.f32 10.0, %v2716_v2 }
 0x3d0   :  { %v4967_v22 = vpop.eup %4966  ;;  %4972 = vlog2.f32 %v2672_v56  ;;  %2914 = vmax.xlane.f32.xlu1 %v2913_v11 }
 0x3d1   :  { %v2877_v7 = vsel %vm6171_vm8, %v6233_v4, -1e+30  ;;  %v2698_v19 = vmul.f32 0.6931472, %v4967_v22 }
 0x3d2   :  { %v4969_v57 = vpop.eup %4968  ;;  %v2916_v20 = vsel %vm2882_vm6, %v2877_v7, -inf }
 0x3d3   :  { %v2700_v12 = vmul.f32 0.6931472, %v4969_v57  ;;  %2917 = vmax.xlane.f32.xlu0 %v2916_v20  ;;  %v2717_v18 = vmul.f32 0.4342945, %v2698_v19 }
 0x3d5   :  { %v6239_v3 = vmul.f32 10.0, %v2717_v18  ;;  %v2718_v28 = vmul.f32 0.4342945, %v2700_v12 }
 0x3d7   :  { %v2919_v21 = vsel %vm2882_vm6, %v6239_v3, -inf  ;;  %v6243_v25 = vmul.f32 10.0, %v2718_v28 }
 0x3d8   :  { %v4971_v5 = vpop.eup %4970  ;;  %2920 = vmax.xlane.f32.xlu1 %v2919_v21 }
 0x3d9   :  { %v2879_v45 = vsel %vm6186_vm9, %v6243_v25, -1e+30  ;;  %v2702_v31 = vmul.f32 0.6931472, %v4971_v5 }
 0x3da   :  { %v4973_v34 = vpop.eup %4972  ;;  %v2922_v38 = vsel %vm2882_vm6, %v2879_v45, -inf }
 0x3db   :  { %v2704_v1 = vmul.f32 0.6931472, %v4973_v34  ;;  %2923 = vmax.xlane.f32.xlu0 %v2922_v38  ;;  %v2719_v0 = vmul.f32 0.4342945, %v2702_v31 }
 0x3dd   :  { %v6249_v44 = vmul.f32 10.0, %v2719_v0  ;;  %v2720_v35 = vmul.f32 0.4342945, %v2704_v1 }
 0x3df   :  { %v2925_v17 = vsel %vm2882_vm6, %v6249_v44, -inf  ;;  %v6253_v41 = vmul.f32 10.0, %v2720_v35 }
 0x3e0   :  { %2926 = vmax.xlane.f32.xlu1 %v2925_v17 }
 0x3e1   :  { %v2881_v9 = vsel %vm6201_vm10, %v6253_v41, -1e+30 }
 0x3e2   :  { %v2928_v36 = vsel %vm2882_vm6, %v2881_v9, -inf }
 0x3e3   :  { %2929 = vmax.xlane.f32.xlu0 %v2928_v36 }
 0x435   :  { %v2885_v42 = vpop.xlane.xlu0 %2884 }
 0x438   :  { %v2888_v46 = vpop.xlane.xlu1 %2887 }
 0x43d   :  { %v2891_v60 = vpop.xlane.xlu0 %2890 }
 0x43e   :  { %v2931_v37 = vmax.f32 %v2885_v42, %v2891_v60 }
 0x441   :  { %v2894_v59 = vpop.xlane.xlu0 %2893 }
 0x442   :  { %v2932_v47 = vmax.f32 %v2888_v46, %v2894_v59 }
 0x445   :  { %v2897_v27 = vpop.xlane.xlu1 %2896 }
 0x446   :  { %v2933_v50 = vmax.f32 %v2931_v37, %v2897_v27 }
 0x448   :  { %v2900_v30 = vpop.xlane.xlu0 %2899 }
 0x449   :  { %v2934_v29 = vmax.f32 %v2932_v47, %v2900_v30 }
 0x44d   :  { %v2903_v14 = vpop.xlane.xlu1 %2902 }
 0x44e   :  { %v2935_v32 = vmax.f32 %v2933_v50, %v2903_v14 }
 0x450   :  { %v2906_v40 = vpop.xlane.xlu0 %2905 }
 0x451   :  { %v2936_v8 = vmax.f32 %v2934_v29, %v2906_v40 }
 0x453   :  { %v2937_v16 = vmax.f32 %v2935_v32, %v2936_v8 }
 0x455   :  { %v2938_v61 = vrot.slane %v2937_v16, 4  ;;  %v2909_v11 = vpop.xlane.xlu1 %2908 }
 0x457   :  { %v2939_v55 = vmax.f32 %v2937_v16, %v2938_v61 }
 0x458   :  { %v2912_v19 = vpop.xlane.xlu0 %2911 }
 0x459   :  { %v2940_v62 = vrot.slane %v2939_v55, 2 }
 0x45b   :  { %v2941_v43 = vmax.f32 %v2939_v55, %v2940_v62 }
 0x45d   :  { %v2942_v23 = vrot.slane %v2941_v43, 1  ;;  %v2915_v20 = vpop.xlane.xlu1 %2914 }
 0x45e   :  { %v2944_v5 = vmax.f32 %v2909_v11, %v2915_v20 }
 0x45f   :  { %v2943_v2 = vmax.f32 %v2941_v43, %v2942_v23 }
 0x460   :  { %v2918_v12 = vpop.xlane.xlu0 %2917 }
 0x461   :  { %v4278_v56 = vadd.f32 -80.0, %v2943_v2 }
 0x463   :  { %v2959_v22 = vmax.f32 %v6154_v10, %v4278_v56  ;;  %v2960_v7 = vmax.f32 %v6163_v63, %v4278_v56  ;;  %v2961_v57 = vmax.f32 %v6169_v13, %v4278_v56  ;;  %v2962_v18 = vmax.f32 %v6178_v49, %v4278_v56 }
 0x464   :  { %v2963_v28 = vmax.f32 %v6184_v51, %v4278_v56  ;;  %v2964_v63 = vmax.f32 %v6193_v52, %v4278_v56  ;;  %v2945_v13 = vmax.f32 %v2912_v19, %v2918_v12  ;;  %v2965_v45 = vmax.f32 %v6199_v6, %v4278_v56 }
 0x465   :  { %4571 = vmatprep.mubr.msk.f32.mxu0 %vm2882_vm6, %v2959_v22  ;;  %v2921_v21 = vpop.xlane.xlu1 %2920  ;;  %v2966_v51 = vmax.f32 %v6207_v24, %v4278_v56 }
 0x466   :  { %4572 = vmatmul.mubr.msk.f32.vlgmr.msra.gmra.mrb[56].mxu0 %vm2882_vm6, %v2960_v7  ;;  %v2946_v34 = vmax.f32 %v2944_v5, %v2921_v21 }
 0x467   :  { %4574 = vmatprep.mubr.msk.f32.mxu0 %vm2882_vm6, %v2961_v57 }
 0x468   :  { %v2924_v10 = vpop.xlane.xlu0 %2923 }
 0x469   :  { %v2947_v38 = vmax.f32 %v2945_v13, %v2924_v10 }
 0x46a   :  { %4575 = vmatmul.mubr.msk.f32.gmra.mrb[58].mxu0 %vm2882_vm6, %v2962_v18 }
 0x46b   :  { %4577 = vmatprep.mubr.msk.f32.mxu0 %vm2882_vm6, %v2963_v28 }
 0x46d   :  { %v2927_v31 = vpop.xlane.xlu1 %2926 }
 0x46e   :  { %4578 = vmatmul.mubr.msk.f32.gmra.mrb[60].mxu0 %vm2882_vm6, %v2964_v63  ;;  %v2948_v1 = vmax.f32 %v2946_v34, %v2927_v31 }
 0x46f   :  { %4580 = vmatprep.mubr.msk.f32.mxu0 %vm2882_vm6, %v2965_v45 }
 0x470   :  { %v2930_v49 = vpop.xlane.xlu0 %2929 }
 0x471   :  { %v2949_v0 = vmax.f32 %v2947_v38, %v2930_v49 }
 0x472   :  { %4581 = vmatmul.mubr.msk.f32.gmra.mrb[62].mxu0 %vm2882_vm6, %v2966_v51 }
 0x473   :  { %v2950_v35 = vmax.f32 %v2948_v1, %v2949_v0 }
 0x475   :  { %v2951_v52 = vrot.slane %v2950_v35, 4 }
 0x477   :  { %v2952_v17 = vmax.f32 %v2950_v35, %v2951_v52 }
 0x479   :  { %v2953_v9 = vrot.slane %v2952_v17, 2 }
 0x47b   :  { %v2954_v15 = vmax.f32 %v2952_v17, %v2953_v9 }
 0x47d   :  { %v2955_v6 = vrot.slane %v2954_v15, 1 }
 0x47f   :  { %v2956_v58 = vmax.f32 %v2954_v15, %v2955_v6 }
 0x481   :  { %v4279_v36 = vadd.f32 -80.0, %v2956_v58 }
 0x483   :  { %v2967_v48 = vmax.f32 %v6219_v26, %v4279_v36  ;;  %v2968_v42 = vmax.f32 %v6223_v33, %v4279_v36  ;;  %v2969_v24 = vmax.f32 %v6229_v54, %v4279_v36  ;;  %v2970_v60 = vmax.f32 %v6233_v4, %v4279_v36 }
 0x484   :  { %v2971_v46 = vmax.f32 %v6239_v3, %v4279_v36  ;;  %v2972_v26 = vmax.f32 %v6243_v25, %v4279_v36  ;;  %v2973_v33 = vmax.f32 %v6249_v44, %v4279_v36  ;;  %v2974_v54 = vmax.f32 %v6253_v41, %v4279_v36 }
 0x485   :  { %4583 = vmatprep.mubr.msk.f32.mxu0 %vm2882_vm6, %v2967_v48  ;;  %v6298_v4 = vsub.s32 4, %v6148_v53 }
 0x486   :  { %4584 = vmatmul.mubr.msk.f32.gmra.mrb[64].mxu0 %vm2882_vm6, %v2968_v42 }
 0x487   :  { %4586 = vmatprep.mubr.msk.f32.mxu0 %vm2882_vm6, %v2969_v24 }
 0x48a   :  { %4587 = vmatmul.mubr.msk.f32.gmra.mrb[66].mxu0 %vm2882_vm6, %v2970_v60 }
 0x48b   :  { %4589 = vmatprep.mubr.msk.f32.mxu0 %vm2882_vm6, %v2971_v46 }
 0x48e   :  { %4590 = vmatmul.mubr.msk.f32.gmra.mrb[68].mxu0 %vm2882_vm6, %v2972_v26 }
 0x48f   :  { %4592 = vmatprep.mubr.msk.f32.mxu0 %vm2882_vm6, %v2973_v33 }
 0x492   :  { %4593 = vmatmul.mubr.msk.f32.gmra.mrb[70].mxu0 %vm2882_vm6, %v2974_v54 }
 0x539   :  { %v4573_v3 = vpop.f32.mrb[56].mxu0 }
 0x53a   :  { %v3185_v59 = vrot.slane %v4573_v3, %v6298_v4  ;;  %v6302_v27 = vpop.f32.mrb[57].mxu0 }
 0x53b   :  { %v3246_v25 = vrot.slane %v6302_v27, 7  ;;  %v3295_v14 = vrot.slane %v6302_v27, 6  ;;  %v3391_v50 = vrot.slane %v6302_v27, 2  ;;  %v3343_v55 = vrot.slane %v6302_v27, 1 }
 0x53c   :  { %v6307_v44 = vsel %vm3177_vm11, %v3185_v59, %v4573_v3 }
 0x53d   :  { %v3247_v41 = vrot.slane %v6307_v44, 7  ;;  %v3296_v30 = vrot.slane %v6307_v44, 6  ;;  %v3344_v53 = vrot.slane %v6307_v44, 1  ;;  %v3392_v37 = vrot.slane %v6307_v44, 2  ;;  %v4576_v47 = vpop.f32.mrb[58].mxu0 }
 0x53e   :  { %v3189_v29 = vrot.slane %v4576_v47, %v6298_v4  ;;  %v6316_v40 = vpop.f32.mrb[59].mxu0  ;;  %v3286_v8 = vsel %vm607_vm1, %v6302_v27, %v3246_v25 }
 0x53f   :  { %v3431_v32 = vsel %vm954_vm4, %v3392_v37, %v3344_v53  ;;  %v3383_v16 = vsel %vm897_vm5, %v3344_v53, %v6307_v44  ;;  %v3393_v62 = vsel %vm954_vm4, %v3391_v50, %v3392_v37  ;;  %v6328_v23 = vsel %vm607_vm1, %v3246_v25, %v3247_v41 }
 0x540   :  { %v3439_v61 = vsel %vm897_vm5, %v3431_v32, %v6307_v44  ;;  %v3297_v2 = vsel %vm3294_vm12, %v3295_v14, %v3296_v30  ;;  %v3447_v56 = vmul.f32 2.0, %v3393_v62  ;;  %v3335_v22 = vsel %vm3294_vm12, %v3286_v8, %v3295_v14 }
 0x541   :  { %v3448_v43 = vmul.f32 2.0, %v3439_v61  ;;  %v4579_v11 = vpop.f32.mrb[60].mxu0  ;;  %v3345_v7 = vsel %vm897_vm5, %v3343_v55, %v3344_v53  ;;  %v6335_v19 = vsel %vm3177_vm11, %v3189_v29, %v4576_v47  ;;  %v3249_v57 = vrot.slane %v6316_v40, 7 }
 0x542   :  { %v6338_v20 = vpop.f32.mrb[61].mxu0  ;;  %v3463_v18 = vadd.f32 %v3447_v56, %v3345_v7  ;;  %v3250_v28 = vrot.slane %v6335_v19, 7  ;;  %v3298_v21 = vrot.slane %v6316_v40, 6  ;;  %v3299_v10 = vrot.slane %v6335_v19, 6 }
 0x543   :  { %v6340_v12 = vadd.f32 %v3448_v43, %v3383_v16  ;;  %v3347_v63 = vrot.slane %v6335_v19, 1  ;;  %v3395_v5 = vrot.slane %v6335_v19, 2  ;;  %v3287_v13 = vsel %vm607_vm1, %v6316_v40, %v3249_v57 }
 0x544   :  { %v3479_v45 = vsub.f32 %v3463_v18, %v3286_v8  ;;  %v3495_v31 = vmul.f32 2.0, %v3335_v22  ;;  %v6349_v34 = vmul.f32 2.0, %v3297_v2  ;;  %v3394_v38 = vrot.slane %v6316_v40, 2 }
 0x545   :  { %v4582_v49 = vpop.f32.mrb[62].mxu0  ;;  %v3480_v51 = vsub.f32 %v6340_v12, %v6328_v23  ;;  %v3432_v1 = vsel %vm954_vm4, %v3395_v5, %v3347_v63  ;;  %v6356_v0 = vsel %vm607_vm1, %v3249_v57, %v3250_v28  ;;  %v3346_v35 = vrot.slane %v6316_v40, 1 }
 0x546   :  { %v6359_v52 = vpop.f32.mrb[63].mxu0  ;;  %v3511_v17 = vsub.f32 %v3479_v45, %v3495_v31  ;;  %v3440_v9 = vsel %vm897_vm5, %v3432_v1, %v6335_v19  ;;  %v3336_v15 = vsel %vm3294_vm12, %v3287_v13, %v3298_v21  ;;  %v3396_v6 = vsel %vm954_vm4, %v3394_v38, %v3395_v5 }
 0x547   :  { %v3384_v58 = vsel %vm897_vm5, %v3347_v63, %v6335_v19  ;;  %v3300_v36 = vsel %vm3294_vm12, %v3298_v21, %v3299_v10  ;;  %v3449_v48 = vmul.f32 2.0, %v3396_v6  ;;  %v3193_v42 = vrot.slane %v4579_v11, %v6298_v4 }
 0x548   :  { %v6369_v24 = vmul.f32 0.1, %v3511_v17  ;;  %v3450_v60 = vmul.f32 2.0, %v3440_v9  ;;  %v3348_v46 = vsel %vm897_vm5, %v3346_v35, %v3347_v63  ;;  %v3252_v26 = vrot.slane %v6338_v20, 7 }
 0x549   :  { %v3465_v33 = vadd.f32 %v3449_v48, %v3348_v46  ;;  %v3497_v54 = vmul.f32 2.0, %v3336_v15  ;;  %v6375_v3 = vsel %vm3177_vm11, %v3193_v42, %v4579_v11  ;;  %v3301_v59 = vrot.slane %v6338_v20, 6 }
 0x54a   :  { %v3253_v25 = vrot.slane %v6375_v3, 7  ;;  %v3302_v41 = vrot.slane %v6375_v3, 6  ;;  %v3350_v30 = vrot.slane %v6375_v3, 1  ;;  %v3398_v53 = vrot.slane %v6375_v3, 2  ;;  %3903 = vrot.lane.b32.xlu1 %v6369_v24, %s4975_s6 }
 0x54b   :  { %v3481_v37 = vsub.f32 %v3465_v33, %v3287_v13  ;;  %v3288_v47 = vsel %vm607_vm1, %v6338_v20, %v3252_v26  ;;  %v3349_v14 = vrot.slane %v6338_v20, 1  ;;  %v3197_v50 = vrot.slane %v4582_v49, %v6298_v4 }
 0x54c   :  { %v3466_v29 = vadd.f32 %v3450_v60, %v3384_v58  ;;  %v3385_v32 = vsel %vm897_vm5, %v3350_v30, %v6375_v3  ;;  %v3433_v8 = vsel %vm954_vm4, %v3398_v53, %v3350_v30  ;;  %v3397_v16 = vrot.slane %v6338_v20, 2 }
 0x54d   :  { %v3513_v61 = vsub.f32 %v3481_v37, %v3497_v54  ;;  %v3441_v55 = vsel %vm897_vm5, %v3433_v8, %v6375_v3  ;;  %v3254_v62 = vsel %vm607_vm1, %v3252_v26, %v3253_v25  ;;  %v3303_v43 = vsel %vm3294_vm12, %v3301_v59, %v3302_v41 }
 0x54e   :  { %v3452_v2 = vmul.f32 2.0, %v3441_v55  ;;  %v3337_v56 = vsel %vm3294_vm12, %v3288_v47, %v3301_v59  ;;  %v3351_v11 = vsel %vm897_vm5, %v3349_v14, %v3350_v30  ;;  %v3399_v22 = vsel %vm954_vm4, %v3397_v16, %v3398_v53 }
 0x54f   :  { %v6399_v7 = vmul.f32 0.1, %v3513_v61  ;;  %v3451_v57 = vmul.f32 2.0, %v3399_v22  ;;  %v6403_v18 = vsel %vm3177_vm11, %v3197_v50, %v4582_v49  ;;  %v3255_v28 = vrot.slane %v6359_v52, 7 }
 0x550   :  { %v3468_v21 = vadd.f32 %v3452_v2, %v3385_v32  ;;  %v3256_v10 = vrot.slane %v6403_v18, 7  ;;  %v3305_v63 = vrot.slane %v6403_v18, 6  ;;  %v3353_v5 = vrot.slane %v6403_v18, 1 }
 0x551   :  { %v3467_v13 = vadd.f32 %v3451_v57, %v3351_v11  ;;  %v3401_v45 = vrot.slane %v6403_v18, 2  ;;  %v3289_v31 = vsel %vm607_vm1, %v6359_v52, %v3255_v28  ;;  %v3304_v38 = vrot.slane %v6359_v52, 6  ;;  %3907 = vrot.lane.b32.xlu1 %v6399_v7, %s4975_s6 }
 0x552   :  { %v3482_v49 = vsub.f32 %v3466_v29, %v6356_v0  ;;  %v3498_v1 = vmul.f32 2.0, %v3300_v36  ;;  %v3484_v35 = vsub.f32 %v3468_v21, %v3254_v62  ;;  %v3499_v17 = vmul.f32 2.0, %v3337_v56 }
 0x553   :  { %v3500_v9 = vmul.f32 2.0, %v3303_v43  ;;  %v3386_v15 = vsel %vm897_vm5, %v3353_v5, %v6403_v18  ;;  %v3434_v6 = vsel %vm954_vm4, %v3401_v45, %v3353_v5  ;;  %v3352_v58 = vrot.slane %v6359_v52, 1 }
 0x554   :  { %v3483_v48 = vsub.f32 %v3467_v13, %v3288_v47  ;;  %v3442_v42 = vsel %vm897_vm5, %v3434_v6, %v6403_v18  ;;  %v3338_v60 = vsel %vm3294_vm12, %v3289_v31, %v3304_v38  ;;  %v3400_v46 = vrot.slane %v6359_v52, 2 }
 0x555   :  { %v3454_v0 = vmul.f32 2.0, %v3442_v42  ;;  %v3257_v36 = vsel %vm607_vm1, %v3255_v28, %v3256_v10  ;;  %v3306_v26 = vsel %vm3294_vm12, %v3304_v38, %v3305_v63  ;;  %v3512_v33 = vsub.f32 %v3480_v51, %v6349_v34 }
 0x556   :  { %v3354_v54 = vsel %vm897_vm5, %v3352_v58, %v3353_v5  ;;  %v3402_v59 = vsel %vm954_vm4, %v3400_v46, %v3401_v45  ;;  %v3514_v25 = vsub.f32 %v3482_v49, %v3498_v1  ;;  %v3516_v41 = vsub.f32 %v3484_v35, %v3500_v9 }
 0x557   :  { %v3470_v30 = vadd.f32 %v3454_v0, %v3386_v15  ;;  %v3453_v53 = vmul.f32 2.0, %v3402_v59  ;;  %v3501_v37 = vmul.f32 2.0, %v3338_v60  ;;  %v3528_v47 = vmul.f32 0.1, %v3512_v33 }
 0x558   :  { %v3515_v14 = vsub.f32 %v3483_v48, %v3499_v17  ;;  %v3502_v50 = vmul.f32 2.0, %v3306_v26  ;;  %v3530_v29 = vmul.f32 0.1, %v3514_v25  ;;  %v3532_v32 = vmul.f32 0.1, %v3516_v41 }
 0x559   :  { %v4585_v8 = vpop.f32.mrb[64].mxu0  ;;  %v3469_v16 = vadd.f32 %v3453_v53, %v3354_v54  ;;  %v3486_v61 = vsub.f32 %v3470_v30, %v3257_v36  ;;  %v3546_v23 = vrot.slane %v3528_v47, %v6298_v4  ;;  %v3607_v43 = vrot.slane %v6369_v24, 7 }
 0x55a   :  { %v3201_v12 = vrot.slane %v4585_v8, %v6298_v4  ;;  %v6434_v34 = vpop.f32.mrb[65].mxu0  ;;  %v3550_v51 = vrot.slane %v3530_v29, %v6298_v4  ;;  %v3554_v55 = vrot.slane %v3532_v32, %v6298_v4  ;;  %v6448_v57 = vmul.f32 0.1, %v3515_v14 }
 0x55b   :  { %v3258_v62 = vrot.slane %v6434_v34, 7  ;;  %v3485_v2 = vsub.f32 %v3469_v16, %v3289_v31  ;;  %v6442_v56 = vsel %vm3177_vm11, %v3546_v23, %v3528_v47  ;;  %v3518_v22 = vsub.f32 %v3486_v61, %v3502_v50 }
 0x55c   :  { %v6446_v11 = vsel %vm3177_vm11, %v3201_v12, %v4585_v8  ;;  %3905 = vrot.lane.b32.xlu0 %v6442_v56, %s4975_s6  ;;  %v6454_v28 = vsel %vm3177_vm11, %v3550_v51, %v3530_v29  ;;  %v6466_v49 = vsel %vm3177_vm11, %v3554_v55, %v3532_v32  ;;  %v3307_v1 = vrot.slane %v6434_v34, 6 }
 0x55d   :  { %v3259_v21 = vrot.slane %v6446_v11, 7  ;;  %v3308_v10 = vrot.slane %v6446_v11, 6  ;;  %v4588_v63 = vpop.f32.mrb[66].mxu0  ;;  %v3517_v5 = vsub.f32 %v3485_v2, %v3501_v37  ;;  %3909 = vrot.lane.b32.xlu1 %v6454_v28, %s4975_s6  ;;  %v3356_v13 = vrot.slane %v6446_v11, 1 }
 0x55e   :  { %v3404_v45 = vrot.slane %v6446_v11, 2  ;;  %v3534_v31 = vmul.f32 0.1, %v3518_v22  ;;  %v6462_v38 = vpop.f32.mrb[67].mxu0  ;;  %v3290_v9 = vsel %vm607_vm1, %v6434_v34, %v3258_v62  ;;  %v3647_v15 = vsel %vm607_vm1, %v6369_v24, %v3607_v43 }
 0x55f   :  { %v6477_v6 = vmul.f32 0.1, %v3517_v5  ;;  %v3403_v48 = vrot.slane %v6434_v34, 2  ;;  %v3655_v42 = vrot.slane %v6369_v24, 6  ;;  %v6490_v0 = vsel %vm607_vm1, %v3258_v62, %v3259_v21 }
 0x560   :  { %v3435_v35 = vsel %vm954_vm4, %v3404_v45, %v3356_v13  ;;  %v3558_v17 = vrot.slane %v3534_v31, %v6298_v4  ;;  %3911 = vrot.lane.b32.xlu0 %v6448_v57, %s4975_s6  ;;  %v3309_v36 = vsel %vm3294_vm12, %v3307_v1, %v3308_v10  ;;  %v3355_v26 = vrot.slane %v6434_v34, 1 }
 0x561   :  { %v3443_v58 = vsel %vm897_vm5, %v3435_v35, %v6446_v11  ;;  %v6485_v60 = vpop.f32.mrb[68].mxu0  ;;  %3913 = vrot.lane.b32.xlu1 %v6466_v49, %s4975_s6  ;;  %v3387_v54 = vsel %vm897_vm5, %v3356_v13, %v6446_v11  ;;  %v3339_v25 = vsel %vm3294_vm12, %v3290_v9, %v3307_v1  ;;  %v3405_v41 = vsel %vm954_vm4, %v3403_v48, %v3404_v45 }
 0x562   :  { %v3456_v46 = vmul.f32 2.0, %v3443_v58  ;;  %v6494_v33 = vpop.f32.mrb[69].mxu0  ;;  %v6500_v59 = vsel %vm3177_vm11, %v3558_v17, %v3534_v31  ;;  %v3455_v30 = vmul.f32 2.0, %v3405_v41  ;;  %v3704_v53 = vrot.slane %v6442_v56, 1 }
 0x563   :  { %v3751_v37 = vrot.slane %v6369_v24, 2  ;;  %v3752_v47 = vrot.slane %v6442_v56, 2  ;;  %v3357_v14 = vsel %vm897_vm5, %v3355_v26, %v3356_v13  ;;  %v3695_v50 = vsel %vm3294_vm12, %v3647_v15, %v3655_v42 }
 0x564   :  { %3915 = vrot.lane.b32.xlu0 %v6477_v6, %s4975_s6  ;;  %v3703_v29 = vrot.slane %v6369_v24, 1  ;;  %v3205_v32 = vrot.slane %v4588_v63, %v6298_v4  ;;  %v6515_v16 = vadd.f32 %v3456_v46, %v3387_v54  ;;  %v3471_v61 = vadd.f32 %v3455_v30, %v3357_v14 }
 0x565   :  { %v6513_v8 = vpop.f32.mrb[70].mxu0  ;;  %3917 = vrot.lane.b32.xlu1 %v6500_v59, %s4975_s6  ;;  %v3753_v23 = vsel %vm954_vm4, %v3751_v37, %v3752_v47  ;;  %v3608_v12 = vrot.slane %v6442_v56, 7  ;;  %v3503_v55 = vmul.f32 2.0, %v3339_v25  ;;  %v6523_v62 = vmul.f32 2.0, %v3309_v36 }
 0x566   :  { %v6521_v51 = vpop.f32.mrb[71].mxu0  ;;  %v3807_v2 = vmul.f32 2.0, %v3753_v23  ;;  %v6527_v22 = vsel %vm3177_vm11, %v3205_v32, %v4588_v63  ;;  %v3487_v21 = vsub.f32 %v3471_v61, %v3290_v9  ;;  %v3705_v10 = vsel %vm897_vm5, %v3703_v29, %v3704_v53 }
 0x567   :  { %v3359_v5 = vrot.slane %v6527_v22, 1  ;;  %v3656_v13 = vrot.slane %v6442_v56, 6  ;;  %v3855_v31 = vmul.f32 2.0, %v3695_v50  ;;  %v3407_v1 = vrot.slane %v6527_v22, 2 }
 0x568   :  { %v3823_v45 = vadd.f32 %v3807_v2, %v3705_v10  ;;  %v3791_v35 = vsel %vm954_vm4, %v3752_v47, %v3704_v53  ;;  %v3488_v17 = vsub.f32 %v6515_v16, %v6490_v0  ;;  %v3519_v58 = vsub.f32 %v3487_v21, %v3503_v55 }
 0x569   :  { %v3609_v63 = vsel %vm607_vm1, %v3607_v43, %v3608_v12  ;;  %v3799_v9 = vsel %vm897_vm5, %v3791_v35, %v6442_v56  ;;  %v3436_v46 = vsel %vm954_vm4, %v3407_v1, %v3359_v5  ;;  %v3261_v26 = vrot.slane %v6462_v38, 7 }
 0x56a   :  { %v3839_v48 = vsub.f32 %v3823_v45, %v3647_v15  ;;  %v3808_v36 = vmul.f32 2.0, %v3799_v9  ;;  %v3311_v54 = vrot.slane %v6527_v22, 6  ;;  %v3444_v25 = vsel %vm897_vm5, %v3436_v46, %v6527_v22 }
 0x56b   :  { %v3657_v41 = vsel %vm3294_vm12, %v3655_v42, %v3656_v13  ;;  %v3743_v24 = vsel %vm897_vm5, %v3704_v53, %v6442_v56  ;;  %v3262_v30 = vrot.slane %v6527_v22, 7  ;;  %v3310_v15 = vrot.slane %v6462_v38, 6 }
 0x56c   :  { %v3871_v43 = vsub.f32 %v3839_v48, %v3855_v31  ;;  %v3824_v37 = vadd.f32 %v3808_v36, %v3743_v24  ;;  %v3388_v47 = vsel %vm897_vm5, %v3359_v5, %v6527_v22  ;;  %v3458_v14 = vmul.f32 2.0, %v3444_v25 }
 0x56d   :  { %v3291_v50 = vsel %vm607_vm1, %v6462_v38, %v3261_v26  ;;  %v3406_v29 = vrot.slane %v6462_v38, 2  ;;  %v6556_v32 = vmul.f32 0.1, %v3519_v58  ;;  %v3856_v56 = vmul.f32 2.0, %v3657_v41 }
 0x56e   :  { %v3887_v42 = vmul.f32 0.1, %v3871_v43  ;;  %v3840_v61 = vsub.f32 %v3824_v37, %v3609_v63  ;;  %v3312_v53 = vsel %vm3294_vm12, %v3310_v15, %v3311_v54  ;;  %v3358_v23 = vrot.slane %v6462_v38, 1 }
 0x56f   :  { %v3408_v12 = vsel %vm954_vm4, %v3406_v29, %v3407_v1  ;;  %v3610_v55 = vrot.slane %v6399_v7, 7  ;;  %v3340_v21 = vsel %vm3294_vm12, %v3291_v50, %v3310_v15  ;;  %v3658_v13 = vrot.slane %v6399_v7, 6 }
 0x570   :  { %3967 = vrot.lane.b32.xlu0 %v3887_v42, %s4976_s12  ;;  %v3872_v2 = vsub.f32 %v3840_v61, %v3856_v56  ;;  %v3457_v10 = vmul.f32 2.0, %v3408_v12  ;;  %v6565_v45 = vadd.f32 %v3458_v14, %v3388_v47  ;;  %v3360_v31 = vsel %vm897_vm5, %v3358_v23, %v3359_v5 }
 0x571   :  { %v3648_v35 = vsel %vm607_vm1, %v6399_v7, %v3610_v55  ;;  %v3707_v1 = vrot.slane %v6454_v28, 1  ;;  %v3754_v9 = vrot.slane %v6399_v7, 2  ;;  %v3755_v48 = vrot.slane %v6454_v28, 2 }
 0x572   :  { %v3888_v58 = vmul.f32 0.1, %v3872_v2  ;;  %v3473_v63 = vadd.f32 %v3457_v10, %v3360_v31  ;;  %v6574_v46 = vsel %vm607_vm1, %v3261_v26, %v3262_v30  ;;  %v3505_v36 = vmul.f32 2.0, %v3340_v21 }
 0x573   :  { %v6576_v54 = vmul.f32 2.0, %v3312_v53  ;;  %v3209_v5 = vrot.slane %v6485_v60, %v6298_v4  ;;  %v3696_v25 = vsel %vm3294_vm12, %v3648_v35, %v3658_v13  ;;  %v3706_v41 = vrot.slane %v6399_v7, 1 }
 0x574   :  { %3969 = vrot.lane.b32.xlu1 %v3888_v58, %s4976_s12  ;;  %v3756_v24 = vsel %vm954_vm4, %v3754_v9, %v3755_v48  ;;  %v3611_v43 = vrot.slane %v6454_v28, 7  ;;  %v3659_v30 = vrot.slane %v6454_v28, 6  ;;  %v3792_v15 = vsel %vm954_vm4, %v3755_v48, %v3707_v1 }
 0x575   :  { %v3809_v37 = vmul.f32 2.0, %v3756_v24  ;;  %v6588_v26 = vsel %vm3177_vm11, %v3209_v5, %v6485_v60  ;;  %v3489_v47 = vsub.f32 %v3473_v63, %v3291_v50  ;;  %v3490_v14 = vsub.f32 %v6565_v45, %v6574_v46 }
 0x576   :  { %v3708_v7 = vsel %vm897_vm5, %v3706_v41, %v3707_v1  ;;  %v3362_v29 = vrot.slane %v6588_v26, 1  ;;  %v3857_v61 = vmul.f32 2.0, %v3696_v25  ;;  %v3410_v56 = vrot.slane %v6588_v26, 2 }
 0x577   :  { %v3825_v42 = vadd.f32 %v3809_v37, %v3708_v7  ;;  %v3800_v60 = vsel %vm897_vm5, %v3792_v15, %v6454_v28  ;;  %v3265_v53 = vrot.slane %v6588_v26, 7  ;;  %v3612_v23 = vsel %vm607_vm1, %v3610_v55, %v3611_v43 }
 0x578   :  { %v3744_v50 = vsel %vm897_vm5, %v3707_v1, %v6454_v28  ;;  %v3810_v12 = vmul.f32 2.0, %v3800_v60  ;;  %v3437_v21 = vsel %vm954_vm4, %v3410_v56, %v3362_v29  ;;  %v3660_v10 = vsel %vm3294_vm12, %v3658_v13, %v3659_v30 }
 0x579   :  { %v3841_v2 = vsub.f32 %v3825_v42, %v3648_v35  ;;  %v3264_v31 = vrot.slane %v6494_v33, 7  ;;  %v6606_v58 = vsub.f32 %v3489_v47, %v3505_v36  ;;  %v3314_v63 = vrot.slane %v6588_v26, 6 }
 0x57a   :  { %v3445_v9 = vsel %vm897_vm5, %v3437_v21, %v6588_v26  ;;  %v3826_v48 = vadd.f32 %v3810_v12, %v3744_v50  ;;  %v3389_v28 = vsel %vm897_vm5, %v3362_v29, %v6588_v26  ;;  %v3313_v35 = vrot.slane %v6494_v33, 6 }
 0x57b   :  { %v3873_v55 = vsub.f32 %v3841_v2, %v3857_v61  ;;  %v3409_v1 = vrot.slane %v6494_v33, 2  ;;  %v3460_v5 = vmul.f32 2.0, %v3445_v9  ;;  %v3858_v25 = vmul.f32 2.0, %v3660_v10 }
 0x57c   :  { %v3842_v13 = vsub.f32 %v3826_v48, %v3612_v23  ;;  %v6617_v36 = vsel %vm607_vm1, %v6494_v33, %v3264_v31  ;;  %v6620_v24 = vsel %vm607_vm1, %v3264_v31, %v3265_v53  ;;  %v3361_v43 = vrot.slane %v6494_v33, 1 }
 0x57d   :  { %v3889_v41 = vmul.f32 0.1, %v3873_v55  ;;  %v3411_v37 = vsel %vm954_vm4, %v3409_v1, %v3410_v56  ;;  %v3315_v15 = vsel %vm3294_vm12, %v3313_v35, %v3314_v63  ;;  %v3613_v7 = vrot.slane %v6448_v57, 7 }
 0x57e   :  { %v3874_v30 = vsub.f32 %v3842_v13, %v3858_v25  ;;  %v3459_v47 = vmul.f32 2.0, %v3411_v37  ;;  %v3341_v42 = vsel %vm3294_vm12, %v6617_v36, %v3313_v35  ;;  %v3363_v61 = vsel %vm897_vm5, %v3361_v43, %v3362_v29 }
 0x57f   :  { %3971 = vrot.lane.b32.xlu0 %v3889_v41, %s4976_s12  ;;  %v3661_v60 = vrot.slane %v6448_v57, 6  ;;  %v3710_v53 = vrot.slane %v6466_v49, 1  ;;  %v6632_v23 = vadd.f32 %v3460_v5, %v3389_v28  ;;  %v3649_v12 = vsel %vm607_vm1, %v6448_v57, %v3613_v7 }
 0x580   :  { %v3890_v56 = vmul.f32 0.1, %v3874_v30  ;;  %v6634_v50 = vadd.f32 %v3459_v47, %v3363_v61  ;;  %v3757_v21 = vrot.slane %v6448_v57, 2  ;;  %v3758_v10 = vrot.slane %v6466_v49, 2 }
 0x581   :  { %v3697_v2 = vsel %vm3294_vm12, %v3649_v12, %v3661_v60  ;;  %v3213_v29 = vrot.slane %v6513_v8, %v6298_v4  ;;  %v3507_v31 = vmul.f32 2.0, %v3341_v42  ;;  %v6644_v63 = vmul.f32 2.0, %v3315_v15 }
 0x582   :  { %3973 = vrot.lane.b32.xlu1 %v3890_v56, %s4976_s12  ;;  %v3709_v9 = vrot.slane %v6448_v57, 1  ;;  %v3662_v48 = vrot.slane %v6466_v49, 6  ;;  %v3759_v55 = vsel %vm954_vm4, %v3757_v21, %v3758_v10  ;;  %v3614_v35 = vrot.slane %v6466_v49, 7 }
 0x583   :  { %v6652_v28 = vsel %vm3177_vm11, %v3213_v29, %v6513_v8  ;;  %v3793_v1 = vsel %vm954_vm4, %v3758_v10, %v3710_v53  ;;  %v3491_v5 = vsub.f32 %v6634_v50, %v6617_v36  ;;  %v3811_v25 = vmul.f32 2.0, %v3759_v55 }
 0x584   :  { %v3711_v13 = vsel %vm897_vm5, %v3709_v9, %v3710_v53  ;;  %v3859_v57 = vmul.f32 2.0, %v3697_v2  ;;  %v3365_v41 = vrot.slane %v6652_v28, 1  ;;  %v3413_v43 = vrot.slane %v6652_v28, 2 }
 0x585   :  { %v3663_v37 = vsel %vm3294_vm12, %v3661_v60, %v3662_v48  ;;  %v3745_v8 = vsel %vm897_vm5, %v3710_v53, %v6466_v49  ;;  %v3827_v30 = vadd.f32 %v3811_v25, %v3711_v13  ;;  %v3268_v15 = vrot.slane %v6652_v28, 7 }
 0x586   :  { %v3317_v47 = vrot.slane %v6652_v28, 6  ;;  %v3801_v36 = vsel %vm897_vm5, %v3793_v1, %v6466_v49  ;;  %v3438_v42 = vsel %vm954_vm4, %v3413_v43, %v3365_v41  ;;  %v3615_v61 = vsel %vm607_vm1, %v3613_v7, %v3614_v35 }
 0x587   :  { %v3812_v56 = vmul.f32 2.0, %v3801_v36  ;;  %v3267_v50 = vrot.slane %v6521_v51, 7  ;;  %v3843_v2 = vsub.f32 %v3827_v30, %v3649_v12  ;;  %v3446_v60 = vsel %vm897_vm5, %v3438_v42, %v6652_v28 }
 0x588   :  { %v3860_v53 = vmul.f32 2.0, %v3663_v37  ;;  %v3316_v21 = vrot.slane %v6521_v51, 6  ;;  %v3390_v10 = vsel %vm897_vm5, %v3365_v41, %v6652_v28  ;;  %v3462_v29 = vmul.f32 2.0, %v3446_v60 }
 0x589   :  { %v3828_v9 = vadd.f32 %v3812_v56, %v3745_v8  ;;  %v3293_v49 = vsel %vm607_vm1, %v6521_v51, %v3267_v50  ;;  %v3875_v48 = vsub.f32 %v3843_v2, %v3859_v57  ;;  %v3269_v7 = vsel %vm607_vm1, %v3267_v50, %v3268_v15 }
 0x58a   :  { %v3318_v55 = vsel %vm3294_vm12, %v3316_v21, %v3317_v47  ;;  %v3364_v12 = vrot.slane %v6521_v51, 1  ;;  %v3478_v35 = vadd.f32 %v3462_v29, %v3390_v10  ;;  %v3342_v13 = vsel %vm3294_vm12, %v3293_v49, %v3316_v21 }
 0x58b   :  { %v3844_v1 = vsub.f32 %v3828_v9, %v3615_v61  ;;  %v3412_v25 = vrot.slane %v6521_v51, 2  ;;  %v3891_v37 = vmul.f32 0.1, %v3875_v48  ;;  %v3510_v8 = vmul.f32 2.0, %v3318_v55 }
 0x58c   :  { %v3366_v30 = vsel %vm897_vm5, %v3364_v12, %v3365_v41  ;;  %v3616_v36 = vrot.slane %v6477_v6, 7  ;;  %v3494_v15 = vsub.f32 %v3478_v35, %v3269_v7  ;;  %v3664_v47 = vrot.slane %v6477_v6, 6 }
 0x58d   :  { %v3876_v42 = vsub.f32 %v3844_v1, %v3860_v53  ;;  %v3414_v57 = vsel %vm954_vm4, %v3412_v25, %v3413_v43  ;;  %3975 = vrot.lane.b32.xlu0 %v3891_v37, %s4976_s12  ;;  %v3712_v50 = vrot.slane %v6477_v6, 1  ;;  %v3713_v2 = vrot.slane %v6500_v59, 1 }
 0x58e   :  { %v3461_v56 = vmul.f32 2.0, %v3414_v57  ;;  %v3650_v61 = vsel %vm607_vm1, %v6477_v6, %v3616_v36  ;;  %v3526_v60 = vsub.f32 %v3494_v15, %v3510_v8  ;;  %v3760_v21 = vrot.slane %v6477_v6, 2 }
 0x58f   :  { %v3892_v41 = vmul.f32 0.1, %v3876_v42  ;;  %v3761_v53 = vrot.slane %v6500_v59, 2  ;;  %v3492_v43 = vsub.f32 %v6632_v23, %v6620_v24  ;;  %v3523_v10 = vsub.f32 %v3491_v5, %v3507_v31 }
 0x590   :  { %v3477_v29 = vadd.f32 %v3461_v56, %v3366_v30  ;;  %v3509_v9 = vmul.f32 2.0, %v3342_v13  ;;  %v3698_v48 = vsel %vm3294_vm12, %v3650_v61, %v3664_v47  ;;  %v3714_v7 = vsel %vm897_vm5, %v3712_v50, %v3713_v2 }
 0x591   :  { %3977 = vrot.lane.b32.xlu1 %v3892_v41, %s4976_s12  ;;  %v3762_v55 = vsel %vm954_vm4, %v3760_v21, %v3761_v53  ;;  %v3665_v12 = vrot.slane %v6500_v59, 6  ;;  %v3617_v1 = vrot.slane %v6500_v59, 7  ;;  %v3794_v25 = vsel %vm954_vm4, %v3761_v53, %v3713_v2 }
 0x592   :  { %v3493_v35 = vsub.f32 %v3477_v29, %v3293_v49  ;;  %v3813_v6 = vmul.f32 2.0, %v3762_v55  ;;  %v3542_v24 = vmul.f32 0.1, %v3526_v60  ;;  %v3802_v23 = vsel %vm897_vm5, %v3794_v25, %v6500_v59 }
 0x593   :  { %v3520_v31 = vsub.f32 %v3488_v17, %v6523_v62  ;;  %v3522_v5 = vsub.f32 %v3490_v14, %v6576_v54  ;;  %v3666_v13 = vsel %vm3294_vm12, %v3664_v47, %v3665_v12  ;;  %v3746_v37 = vsel %vm897_vm5, %v3713_v2, %v6500_v59 }
 0x594   :  { %v3829_v49 = vadd.f32 %v3813_v6, %v3714_v7  ;;  %v3814_v30 = vmul.f32 2.0, %v3802_v23  ;;  %v3525_v8 = vsub.f32 %v3493_v35, %v3509_v9  ;;  %v3524_v15 = vsub.f32 %v3492_v43, %v6644_v63 }
 0x595   :  { %v3536_v42 = vmul.f32 0.1, %v3520_v31  ;;  %v3538_v57 = vmul.f32 0.1, %v3522_v5  ;;  %v3861_v0 = vmul.f32 2.0, %v3698_v48  ;;  %v3618_v16 = vsel %vm607_vm1, %v3616_v36, %v3617_v1 }
 0x596   :  { %v3845_v56 = vsub.f32 %v3829_v49, %v3650_v61  ;;  %v3830_v62 = vadd.f32 %v3814_v30, %v3746_v37  ;;  %v3862_v17 = vmul.f32 2.0, %v3666_v13  ;;  %v3540_v46 = vmul.f32 0.1, %v3524_v15 }
 0x597   :  { %v3562_v45 = vrot.slane %v3536_v42, %v6298_v4  ;;  %v3619_v54 = vrot.slane %v6556_v32, 7  ;;  %v3566_v59 = vrot.slane %v3538_v57, %v6298_v4  ;;  %v3574_v50 = vrot.slane %v3542_v24, %v6298_v4 }
 0x598   :  { %v3877_v14 = vsub.f32 %v3845_v56, %v3861_v0  ;;  %v3846_v47 = vsub.f32 %v3830_v62, %v3618_v16  ;;  %v6723_v2 = vmul.f32 0.1, %v6606_v58  ;;  %v6725_v63 = vmul.f32 0.1, %v3523_v10 }
 0x599   :  { %v6727_v61 = vmul.f32 0.1, %v3525_v8  ;;  %v3584_v36 = vsel %vm3177_vm11, %v3562_v45, %v3536_v42  ;;  %v3667_v21 = vrot.slane %v6556_v32, 6  ;;  %v3570_v43 = vrot.slane %v3540_v46, %v6298_v4 }
 0x59a   :  { %v3893_v41 = vmul.f32 0.1, %v3877_v14  ;;  %v3878_v60 = vsub.f32 %v3846_v47, %v3862_v17  ;;  %v3716_v53 = vrot.slane %v3584_v36, 1  ;;  %v3651_v29 = vsel %vm607_vm1, %v6556_v32, %v3619_v54 }
 0x59b   :  { %v3763_v58 = vrot.slane %v6556_v32, 2  ;;  %v3764_v9 = vrot.slane %v3584_v36, 2  ;;  %v3586_v48 = vsel %vm3177_vm11, %v3566_v59, %v3538_v57  ;;  %v6741_v7 = vsel %vm3177_vm11, %v3574_v50, %v3542_v24 }
 0x59c   :  { %3979 = vrot.lane.b32.xlu0 %v3893_v41, %s4976_s12  ;;  %v3894_v10 = vmul.f32 0.1, %v3878_v60  ;;  %v3668_v55 = vrot.slane %v3584_v36, 6  ;;  %v3715_v12 = vrot.slane %v6556_v32, 1  ;;  %v3622_v6 = vrot.slane %v6723_v2, 7 }
 0x59d   :  { %v3765_v4 = vsel %vm954_vm4, %v3763_v58, %v3764_v9  ;;  %v3795_v35 = vsel %vm954_vm4, %v3764_v9, %v3716_v53  ;;  %v3699_v1 = vsel %vm3294_vm12, %v3651_v29, %v3667_v21  ;;  %v3620_v23 = vrot.slane %v3584_v36, 7 }
 0x59e   :  { %3981 = vrot.lane.b32.xlu1 %v3894_v10, %s4976_s12  ;;  %v3815_v25 = vmul.f32 2.0, %v3765_v4  ;;  %v3803_v31 = vsel %vm897_vm5, %v3795_v35, %v3584_v36  ;;  %v6752_v24 = vsel %vm3177_vm11, %v3570_v43, %v3540_v46  ;;  %v3717_v5 = vsel %vm897_vm5, %v3715_v12, %v3716_v53 }
 0x59f   :  { %v3669_v49 = vsel %vm3294_vm12, %v3667_v21, %v3668_v55  ;;  %v3816_v13 = vmul.f32 2.0, %v3803_v31  ;;  %v3747_v30 = vsel %vm897_vm5, %v3716_v53, %v3584_v36  ;;  %v3670_v8 = vrot.slane %v6723_v2, 6 }
 0x5a0   :  { %3919 = vrot.lane.b32.xlu0 %v6556_v32, %s4975_s6  ;;  %v3831_v37 = vadd.f32 %v3815_v25, %v3717_v5  ;;  %v3719_v42 = vrot.slane %v3586_v48, 1  ;;  %v3652_v39 = vsel %vm607_vm1, %v6723_v2, %v3622_v6  ;;  %v3766_v15 = vrot.slane %v6723_v2, 2 }
 0x5a1   :  { %v3832_v57 = vadd.f32 %v3816_v13, %v3747_v30  ;;  %v3767_v56 = vrot.slane %v3586_v48, 2  ;;  %v3863_v0 = vmul.f32 2.0, %v3699_v1  ;;  %v3621_v16 = vsel %vm607_vm1, %v3619_v54, %v3620_v23 }
 0x5a2   :  { %3921 = vrot.lane.b32.xlu1 %v3584_v36, %s4975_s6  ;;  %v3864_v62 = vmul.f32 2.0, %v3669_v49  ;;  %v3671_v32 = vrot.slane %v3586_v48, 6  ;;  %v3847_v17 = vsub.f32 %v3831_v37, %v3651_v29  ;;  %v3718_v46 = vrot.slane %v6723_v2, 1 }
 0x5a3   :  { %v3848_v45 = vsub.f32 %v3832_v57, %v3621_v16  ;;  %v3768_v14 = vsel %vm954_vm4, %v3766_v15, %v3767_v56  ;;  %v3700_v47 = vsel %vm3294_vm12, %v3652_v39, %v3670_v8  ;;  %v3623_v50 = vrot.slane %v3586_v48, 7 }
 0x5a4   :  { %3923 = vrot.lane.b32.xlu0 %v6723_v2, %s4975_s6  ;;  %v3817_v59 = vmul.f32 2.0, %v3768_v14  ;;  %v3796_v36 = vsel %vm954_vm4, %v3767_v56, %v3719_v42  ;;  %v3720_v41 = vsel %vm897_vm5, %v3718_v46, %v3719_v42  ;;  %v3748_v54 = vsel %vm897_vm5, %v3719_v42, %v3586_v48 }
 0x5a5   :  { %v3804_v60 = vsel %vm897_vm5, %v3796_v36, %v3586_v48  ;;  %v3625_v21 = vrot.slane %v6725_v63, 7  ;;  %v3672_v43 = vsel %vm3294_vm12, %v3670_v8, %v3671_v32  ;;  %v3673_v29 = vrot.slane %v6725_v63, 6 }
 0x5a6   :  { %3925 = vrot.lane.b32.xlu1 %v3586_v48, %s4975_s6  ;;  %v3833_v53 = vadd.f32 %v3817_v59, %v3720_v41  ;;  %v3818_v2 = vmul.f32 2.0, %v3804_v60  ;;  %v3879_v58 = vsub.f32 %v3847_v17, %v3863_v0  ;;  %v3880_v9 = vsub.f32 %v3848_v45, %v3864_v62 }
 0x5a7   :  { %v3653_v10 = vsel %vm607_vm1, %v6725_v63, %v3625_v21  ;;  %v3722_v55 = vrot.slane %v6752_v24, 1  ;;  %v3865_v4 = vmul.f32 2.0, %v3700_v47  ;;  %v3624_v48 = vsel %vm607_vm1, %v3622_v6, %v3623_v50 }
 0x5a8   :  { %3927 = vrot.lane.b32.xlu0 %v6725_v63, %s4975_s6  ;;  %v3849_v12 = vsub.f32 %v3833_v53, %v3652_v39  ;;  %v3834_v35 = vadd.f32 %v3818_v2, %v3748_v54  ;;  %v3866_v1 = vmul.f32 2.0, %v3672_v43  ;;  %v3721_v25 = vrot.slane %v6725_v63, 1 }
 0x5a9   :  { %v3769_v23 = vrot.slane %v6725_v63, 2  ;;  %v3770_v31 = vrot.slane %v6752_v24, 2  ;;  %v3701_v49 = vsel %vm3294_vm12, %v3653_v10, %v3673_v29  ;;  %v3626_v13 = vrot.slane %v6752_v24, 7 }
 0x5aa   :  { %3929 = vrot.lane.b32.xlu1 %v6752_v24, %s4975_s6  ;;  %v3850_v5 = vsub.f32 %v3834_v35, %v3624_v48  ;;  %v3674_v37 = vrot.slane %v6752_v24, 6  ;;  %v3895_v30 = vmul.f32 0.1, %v3879_v58  ;;  %v3896_v6 = vmul.f32 0.1, %v3880_v9 }
 0x5ab   :  { %v3771_v8 = vsel %vm954_vm4, %v3769_v23, %v3770_v31  ;;  %v3797_v42 = vsel %vm954_vm4, %v3770_v31, %v3722_v55  ;;  %v3881_v63 = vsub.f32 %v3849_v12, %v3865_v4  ;;  %v3723_v57 = vsel %vm897_vm5, %v3721_v25, %v3722_v55 }
 0x5ac   :  { %3931 = vrot.lane.b32.xlu0 %v6727_v61, %s4975_s6  ;;  %v3819_v39 = vmul.f32 2.0, %v3771_v8  ;;  %v3628_v15 = vrot.slane %v6727_v61, 7  ;;  %v3882_v56 = vsub.f32 %v3850_v5, %v3866_v1  ;;  %v3867_v0 = vmul.f32 2.0, %v3701_v49 }
 0x5ad   :  { %v3749_v16 = vsel %vm897_vm5, %v3722_v55, %v6752_v24  ;;  %v3805_v62 = vsel %vm897_vm5, %v3797_v42, %v6752_v24  ;;  %v3627_v17 = vsel %vm607_vm1, %v3625_v21, %v3626_v13  ;;  %v3675_v45 = vsel %vm3294_vm12, %v3673_v29, %v3674_v37 }
 0x5ae   :  { %3933 = vrot.lane.b32.xlu1 %v6741_v7, %s4975_s6  ;;  %v3835_v32 = vadd.f32 %v3819_v39, %v3723_v57  ;;  %v3820_v46 = vmul.f32 2.0, %v3805_v62  ;;  %v3676_v14 = vrot.slane %v6727_v61, 6  ;;  %v3725_v47 = vrot.slane %v6741_v7, 1 }
 0x5af   :  { %v3772_v59 = vrot.slane %v6727_v61, 2  ;;  %v3773_v50 = vrot.slane %v6741_v7, 2  ;;  %v3897_v24 = vmul.f32 0.1, %v3881_v63  ;;  %v3654_v54 = vsel %vm607_vm1, %v6727_v61, %v3628_v15 }
 0x5b0   :  { %3983 = vrot.lane.b32.xlu0 %v3895_v30, %s4976_s12  ;;  %v3851_v36 = vsub.f32 %v3835_v32, %v3653_v10  ;;  %v3836_v41 = vadd.f32 %v3820_v46, %v3749_v16  ;;  %v3898_v60 = vmul.f32 0.1, %v3882_v56  ;;  %v3868_v21 = vmul.f32 2.0, %v3675_v45 }
 0x5b1   :  { %v3724_v53 = vrot.slane %v6727_v61, 1  ;;  %v3774_v43 = vsel %vm954_vm4, %v3772_v59, %v3773_v50  ;;  %v3677_v9 = vrot.slane %v6741_v7, 6  ;;  %v3702_v55 = vsel %vm3294_vm12, %v3654_v54, %v3676_v14 }
 0x5b2   :  { %3985 = vrot.lane.b32.xlu1 %v3896_v6, %s4976_s12  ;;  %v3883_v2 = vsub.f32 %v3851_v36, %v3867_v0  ;;  %v3852_v29 = vsub.f32 %v3836_v41, %v3627_v17  ;;  %v3821_v58 = vmul.f32 2.0, %v3774_v43  ;;  %v3629_v12 = vrot.slane %v6741_v7, 7 }
 0x5b3   :  { %v3726_v10 = vsel %vm897_vm5, %v3724_v53, %v3725_v47  ;;  %v3798_v4 = vsel %vm954_vm4, %v3773_v50, %v3725_v47  ;;  %v3869_v31 = vmul.f32 2.0, %v3702_v55  ;;  %v3678_v5 = vsel %vm3294_vm12, %v3676_v14, %v3677_v9 }
 0x5b4   :  { %3987 = vrot.lane.b32.xlu0 %v3897_v24, %s4976_s12  ;;  %v3899_v61 = vmul.f32 0.1, %v3883_v2  ;;  %v3884_v48 = vsub.f32 %v3852_v29, %v3868_v21  ;;  %v3837_v35 = vadd.f32 %v3821_v58, %v3726_v10  ;;  %v3806_v1 = vsel %vm897_vm5, %v3798_v4, %v6741_v7 }
 0x5b5   :  { %v3822_v25 = vmul.f32 2.0, %v3806_v1  ;;  %v3750_v49 = vsel %vm897_vm5, %v3725_v47, %v6741_v7  ;;  %v3630_v6 = vsel %vm607_vm1, %v3628_v15, %v3629_v12  ;;  %v3870_v42 = vmul.f32 2.0, %v3678_v5 }
 0x5b6   :  { %3989 = vrot.lane.b32.xlu1 %v3898_v60, %s4976_s12  ;;  %v3853_v23 = vsub.f32 %v3837_v35, %v3654_v54  ;;  %v3900_v37 = vmul.f32 0.1, %v3884_v48 }
 0x5b7   :  { %v3838_v13 = vadd.f32 %v3822_v25, %v3750_v49 }
 0x5b8   :  { %3991 = vrot.lane.b32.xlu0 %v3899_v61, %s4976_s12  ;;  %v3885_v30 = vsub.f32 %v3853_v23, %v3869_v31 }
 0x5b9   :  { %v3854_v8 = vsub.f32 %v3838_v13, %v3630_v6 }
 0x5ba   :  { %3993 = vrot.lane.b32.xlu1 %v3900_v37, %s4976_s12  ;;  %v3901_v63 = vmul.f32 0.1, %v3885_v30 }
 0x5bb   :  { %v3886_v57 = vsub.f32 %v3854_v8, %v3870_v42 }
 0x5bc   :  { %3995 = vrot.lane.b32.xlu0 %v3901_v63, %s4976_s12  ;;  %v3904_v56 = vpop.permute.xlu1 %3903 }
 0x5bd   :  { %v3902_v39 = vmul.f32 0.1, %v3886_v57  ;;  %v4016_v45 = vsel %vm4015_vm13, %v6302_v27, %v3904_v56 }
 0x5bf   :  { %3997 = vrot.lane.b32.xlu1 %v3902_v39, %s4976_s12 }
 0x5c3   :  { %v3908_v7 = vpop.permute.xlu1 %3907 }
 0x5c4   :  { %v4018_v27 = vsel %vm4015_vm13, %v6316_v40, %v3908_v7 }
 0x5ce   :  { %v3906_v0 = vpop.permute.xlu0 %3905 }
 0x5cf   :  { %v3910_v16 = vpop.permute.xlu1 %3909  ;;  %v4017_v59 = vsel %vm4015_vm13, %v6307_v44, %v3906_v0 }
 0x5d0   :  { %v4019_v44 = vsel %vm4015_vm13, %v6335_v19, %v3910_v16 }
 0x5d2   :  { %v3912_v62 = vpop.permute.xlu0 %3911 }
 0x5d3   :  { %v3914_v32 = vpop.permute.xlu1 %3913  ;;  %v4020_v40 = vsel %vm4015_vm13, %v6338_v20, %v3912_v62 }
 0x5d4   :  { %v4021_v58 = vsel %vm4015_vm13, %v6375_v3, %v3914_v32 }
 0x5d6   :  { %v3916_v17 = vpop.permute.xlu0 %3915 }
 0x5d7   :  { %v3918_v15 = vpop.permute.xlu1 %3917  ;;  %v4022_v20 = vsel %vm4015_vm13, %v6359_v52, %v3916_v17 }
 0x5d8   :  { %v4023_v3 = vsel %vm4015_vm13, %v6403_v18, %v3918_v15 }
 0x5e2   :  { %v3968_v46 = vpop.permute.xlu0 %3967 }
 0x5e3   :  { %v4033_v14 = vsel %vm4032_vm14, %v4016_v45, %v3968_v46 }
 0x5e4   :  { %v4050_v47 = vsel %vm4049_vm15, %v4033_v14, 0.0 }
 0x5e5   :  { %4066 = vst [vmem:[%s6952_s7] sm:$0xff] %v4050_v47 }
 0x5e6   :  { %v3970_v50 = vpop.permute.xlu1 %3969 }
 0x5e7   :  { %v4034_v24 = vsel %vm4032_vm14, %v4017_v59, %v3970_v50 }
 0x5e8   :  { %v4051_v36 = vsel %vm4049_vm15, %v4034_v24, 0.0 }
 0x5e9   :  { %4067 = vst [vmem:[%s6952_s7 + $0x8] sm:$0xff] %v4051_v36 }
 0x5f1   :  { %v3972_v41 = vpop.permute.xlu0 %3971 }
 0x5f2   :  { %v4035_v54 = vsel %vm4032_vm14, %v4018_v27, %v3972_v41 }
 0x5f3   :  { %v4052_v60 = vsel %vm4049_vm15, %v4035_v54, 0.0 }
 0x5f4   :  { %4068 = vst [vmem:[%s6952_s7 + $0x10] sm:$0xff] %v4052_v60  ;;  %v3974_v21 = vpop.permute.xlu1 %3973 }
 0x5f5   :  { %v4036_v53 = vsel %vm4032_vm14, %v4019_v44, %v3974_v21 }
 0x5f6   :  { %v4053_v43 = vsel %vm4049_vm15, %v4036_v53, 0.0 }
 0x5f7   :  { %4069 = vst [vmem:[%s6952_s7 + $0x18] sm:$0xff] %v4053_v43 }
 0x5ff   :  { %v3976_v2 = vpop.permute.xlu0 %3975 }
 0x600   :  { %v4037_v29 = vsel %vm4032_vm14, %v4020_v40, %v3976_v2 }
 0x601   :  { %v4054_v19 = vsel %vm4049_vm15, %v4037_v29, 0.0 }
 0x602   :  { %4070 = vst [vmem:[%s6952_s7 + $0x20] sm:$0xff] %v4054_v19 }
 0x603   :  { %v3978_v9 = vpop.permute.xlu1 %3977 }
 0x604   :  { %v4038_v55 = vsel %vm4032_vm14, %v4021_v58, %v3978_v9 }
 0x605   :  { %v4055_v10 = vsel %vm4049_vm15, %v4038_v55, 0.0 }
 0x606   :  { %4071 = vst [vmem:[%s6952_s7 + $0x28] sm:$0xff] %v4055_v10 }
 0x60e   :  { %v3980_v12 = vpop.permute.xlu0 %3979 }
 0x60f   :  { %v4039_v4 = vsel %vm4032_vm14, %v4022_v20, %v3980_v12 }
 0x610   :  { %v4056_v61 = vsel %vm4049_vm15, %v4039_v4, 0.0  ;;  %v3982_v48 = vpop.permute.xlu1 %3981 }
 0x611   :  { %4072 = vst [vmem:[%s6952_s7 + $0x30] sm:$0xff] %v4056_v61  ;;  %v4040_v35 = vsel %vm4032_vm14, %v4023_v3, %v3982_v48 }
 0x612   :  { %v4057_v1 = vsel %vm4049_vm15, %v4040_v35, 0.0  ;;  %v3920_v25 = vpop.permute.xlu0 %3919 }
 0x613   :  { %4073 = vst [vmem:[%s6952_s7 + $0x38] sm:$0xff] %v4057_v1  ;;  %v4024_v37 = vsel %vm4015_vm13, %v6434_v34, %v3920_v25 }
 0x614   :  { %v3922_v52 = vpop.permute.xlu1 %3921 }
 0x615   :  { %v4025_v8 = vsel %vm4015_vm13, %v6446_v11, %v3922_v52 }
 0x616   :  { %v3924_v23 = vpop.permute.xlu0 %3923 }
 0x617   :  { %v4026_v39 = vsel %vm4015_vm13, %v6462_v38, %v3924_v23 }
 0x618   :  { %v3926_v31 = vpop.permute.xlu1 %3925 }
 0x619   :  { %v4027_v7 = vsel %vm4015_vm13, %v6527_v22, %v3926_v31 }
 0x61a   :  { %v3928_v18 = vpop.permute.xlu0 %3927 }
 0x61b   :  { %v4028_v62 = vsel %vm4015_vm13, %v6494_v33, %v3928_v18 }
 0x61c   :  { %v3930_v5 = vpop.permute.xlu1 %3929 }
 0x61d   :  { %v4029_v15 = vsel %vm4015_vm13, %v6588_v26, %v3930_v5 }
 0x61e   :  { %v3932_v49 = vpop.permute.xlu0 %3931 }
 0x61f   :  { %v4030_v14 = vsel %vm4015_vm13, %v6521_v51, %v3932_v49 }
 0x620   :  { %v3934_v13 = vpop.permute.xlu1 %3933 }
 0x621   :  { %v4031_v24 = vsel %vm4015_vm13, %v6652_v28, %v3934_v13 }
 0x622   :  { %v3984_v30 = vpop.permute.xlu0 %3983 }
 0x623   :  { %v4041_v6 = vsel %vm4032_vm14, %v4024_v37, %v3984_v30 }
 0x624   :  { %v4058_v42 = vsel %vm4049_vm15, %v4041_v6, 0.0  ;;  %v3986_v63 = vpop.permute.xlu1 %3985 }
 0x625   :  { %4074 = vst [vmem:[%s6952_s7 + $0x40] sm:$0xff] %v4058_v42  ;;  %v4042_v57 = vsel %vm4032_vm14, %v4025_v8, %v3986_v63 }
 0x626   :  { %v4059_v34 = vsel %vm4049_vm15, %v4042_v57, 0.0  ;;  %v3988_v56 = vpop.permute.xlu0 %3987 }
 0x627   :  { %4075 = vst [vmem:[%s6952_s7 + $0x48] sm:$0xff] %v4059_v34  ;;  %v4043_v11 = vsel %vm4032_vm14, %v4026_v39, %v3988_v56 }
 0x628   :  { %v4060_v0 = vsel %vm4049_vm15, %v4043_v11, 0.0  ;;  %v3990_v16 = vpop.permute.xlu1 %3989 }
 0x629   :  { %4076 = vst [vmem:[%s6952_s7 + $0x50] sm:$0xff] %v4060_v0  ;;  %v4044_v38 = vsel %vm4032_vm14, %v4027_v7, %v3990_v16 }
 0x62a   :  { %v4061_v32 = vsel %vm4049_vm15, %v4044_v38, 0.0  ;;  %v3992_v17 = vpop.permute.xlu0 %3991 }
 0x62b   :  { %4077 = vst [vmem:[%s6952_s7 + $0x58] sm:$0xff] %v4061_v32  ;;  %v4045_v22 = vsel %vm4032_vm14, %v4028_v62, %v3992_v17 }
 0x62c   :  { %v4062_v45 = vsel %vm4049_vm15, %v4045_v22, 0.0  ;;  %v3994_v46 = vpop.permute.xlu1 %3993 }
 0x62d   :  { %4078 = vst [vmem:[%s6952_s7 + $0x60] sm:$0xff] %v4062_v45  ;;  %v4046_v33 = vsel %vm4032_vm14, %v4029_v15, %v3994_v46 }
 0x62e   :  { %v4063_v47 = vsel %vm4049_vm15, %v4046_v33, 0.0  ;;  %v3996_v59 = vpop.permute.xlu0 %3995 }
 0x62f   :  { %4079 = vst [vmem:[%s6952_s7 + $0x68] sm:$0xff] %v4063_v47  ;;  %v4047_v26 = vsel %vm4032_vm14, %v4030_v14, %v3996_v59 }
 0x630   :  { %v4064_v50 = vsel %vm4049_vm15, %v4047_v26, 0.0 }
 0x631   :  { %4080 = vst [vmem:[%s6952_s7 + $0x70] sm:$0xff] %v4064_v50  ;;  %v3998_v36 = vpop.permute.xlu1 %3997 }
 0x632   :  { %v4048_v51 = vsel %vm4032_vm14, %v4031_v24, %v3998_v36 }
 0x633   :  { %v4065_v27 = vsel %vm4049_vm15, %v4048_v51, 0.0 }
 0x634   :  { %4081 = vst [vmem:[%s6952_s7 + $0x78] sm:$0xff] %v4065_v27 }

</bundles_post_ra>
